<compile_context>
chip_gen: v7x
topology: tpu7x:2x2x1
jax: 0.10.0
libtpu: 0.0.40
codegen_flags: <defaults>
</compile_context>

<pallas_src>
import functools
import math

import jax
import jax.numpy as jnp
from jax import lax
from jax.experimental import pallas as pl
from jax.experimental.pallas import tpu as pltpu


# ------------------------------ fused EncoderCell kernel ------------------------------ #

def _encoder_cell_kernel(
    x_ref, mask_ref,
    ln0_g, ln0_b, glu_w3, glu_b,
    ln1_g, ln1_b, lr_w3, lr_b,
    mid_g, mid_b, dw_w, dw_b, pw_w, pw_b,
    ln2_g, ln2_b, wqkv, bqkv, wo, bo,
    ln3_g, ln3_b, pff_w1, pff_b1, pff_w2, pff_b2,
    o_ref,
    pad_ref,
    *, seq_len, hidden, pff_dim, n_heads, pad_val, apply_proj):
    S, H, F = seq_len, hidden, pff_dim
    dh = H // n_heads
    f32 = jnp.float32

    def ln(v, g_ref, b_ref):
        mu = jnp.mean(v, axis=-1, keepdims=True)
        vc = v - mu
        var = jnp.mean(vc * vc, axis=-1, keepdims=True)
        return vc * lax.rsqrt(var + 1e-5) * g_ref[...] + b_ref[...]

    # Zero the shift scratch once; only rows [4:4+S] are ever rewritten, so the 4 halo
    # rows on each side stay zero and provide the conv zero-padding.
    pad_ref[...] = jnp.zeros_like(pad_ref)

    def conv3(v, w3_ref, b_ref):
        # 1-D conv, kernel=3, padding=1 ('same', zeros), as three shifted MXU matmuls.
        pad_ref[4:4 + S, :H] = v
        out = jnp.dot(pad_ref[3:3 + S, :H], w3_ref[0], preferred_element_type=f32)
        out = out + jnp.dot(v, w3_ref[1], preferred_element_type=f32)
        out = out + jnp.dot(pad_ref[5:5 + S, :H], w3_ref[2], preferred_element_type=f32)
        return out + b_ref[...]

    x = x_ref[0].astype(f32)                                        # (S, H)

    # ---- B01: GatedConvolution = Conv1d(H -> 2H, k=3, pad=1) + GLU gate ----
    h0 = ln(x, ln0_g, ln0_b)
    glu = conv3(h0, glu_w3, glu_b)                                  # (S, 2H)
    b01 = glu[:, :H] * jax.nn.sigmoid(glu[:, H:])                   # (S, H)

    # ---- B02: left Linear(H->F)+ReLU and right Conv1d(H->H/2,k=3)+ReLU (pad->F) ----
    # Packed into one k=3 conv with output width 2F: cols [0:F] = left Linear (center tap
    # only), cols [F:F+H/2] = right conv, cols [F+H/2:2F] = 0.  Dropout = identity (eval).
    h1 = ln(b01, ln1_g, ln1_b)
    lr = jnp.maximum(conv3(h1, lr_w3, lr_b), 0.0)                   # (S, 2F)
    colF = lax.broadcasted_iota(jnp.int32, (1, F), 1)
    pad_row = jnp.where(colF < H // 2, 0.0, pad_val).astype(f32)    # F.pad(value=pad_id)
    b02 = lr[:, :F] + lr[:, F:] + pad_row                           # (S, F)

    # ---- B03: SeparableConv1D = depthwise(k=9,'same') + pointwise(F -> H/2), pad->H ----
    h2 = ln(b02, mid_g, mid_b)                                      # (S, F)
    pad_ref[4:4 + S, :F] = h2
    dw = dw_b[...] + h2 * dw_w[4:5, :]
    for kk in range(9):                                             # VPU work (co-issues)
        if kk == 4:
            continue
        dw = dw + pad_ref[kk:kk + S, :F] * dw_w[kk:kk + 1, :]
    # pointwise weight has zero cols >= H/2 and bias=pad_val there, so the matmul output
    # already carries the F.pad(value=pad_id) columns.
    sep = jnp.dot(dw, pw_w[...], preferred_element_type=f32) + pw_b[...]    # (S, H)
    b03 = sep + b01

    # ---- B04: multi-head self-attention (fused QKV, mask bias built in-kernel) ----
    # TODO(synk): MultiHeadAttention class was not provided in the reference; assuming
    # standard scaled-dot-product MHA with fused q/k/v projections, a key-padding mask
    # from e_mask, and an output projection applied only when apply_proj=True.
    h3 = ln(b03, ln2_g, ln2_b)                                      # (S, H)
    qkv = jnp.dot(h3, wqkv[...], preferred_element_type=f32) + bqkv[...]    # (S, 3H)
    v_all = qkv[:, 2 * H:]
    bias = jnp.where(mask_ref[0] != 0, 0.0, -1e9).astype(f32)       # (1, S) key-pad bias
    colH = lax.broadcasted_iota(jnp.int32, (S, H), 1)
    scale = 1.0 / math.sqrt(dh)
    ctx = jnp.zeros((S, H), f32)
    for hh in range(n_heads):
        q = qkv[:, hh * dh:(hh + 1) * dh]
        k = qkv[:, H + hh * dh:H + (hh + 1) * dh]
        s = lax.dot_general(q, k, (((1,), (1,)), ((), ())),
                            preferred_element_type=f32) * scale + bias
        s = s - jnp.max(s, axis=-1, keepdims=True)
        p = jnp.exp(s)
        p = p * pl.reciprocal(jnp.sum(p, axis=-1, keepdims=True), approx=True)
        # this head's values, zeroed outside its own lane range (masked-V sum == concat)
        vh = jnp.where((colH >= hh * dh) & (colH < (hh + 1) * dh), v_all, 0.0)
        ctx = ctx + jnp.dot(p, vh, preferred_element_type=f32)
    if apply_proj:
        ctx = jnp.dot(ctx, wo[...], preferred_element_type=f32) + bo[...]
    b04 = h3 + ctx

    # ---- output: pff (Linear -> SiLU -> Linear) + residual ----
    h4 = ln(b04, ln3_g, ln3_b)
    y = jnp.dot(h4, pff_w1[...], preferred_element_type=f32) + pff_b1[...]
    y = y * jax.nn.sigmoid(y)                                       # SiLU
    out = jnp.dot(y, pff_w2[...], preferred_element_type=f32) + pff_b2[...] + b04
    o_ref[0] = out.astype(o_ref.dtype)


_CELL_PARAM_ORDER = (
    "ln0_g", "ln0_b", "glu_w3", "glu_b",
    "ln1_g", "ln1_b", "lr_w3", "lr_b",
    "mid_g", "mid_b", "dw_w", "dw_b", "pw_w", "pw_b",
    "ln2_g", "ln2_b", "wqkv", "bqkv", "wo", "bo",
    "ln3_g", "ln3_b", "pff_w1", "pff_b1", "pff_w2", "pff_b2",
)


def _bcast_spec(shape):
    zeros = (0,) * len(shape)
    return pl.BlockSpec(shape, lambda b, _z=zeros: _z)


def encoder_cell(x, mask, p, cfg, apply_proj):
    """One fused EncoderCell: single pallas_call, grid parallel over batch."""
    B, S, H = x.shape
    F = cfg["pff_dim"]
    weights = [p[name] for name in _CELL_PARAM_ORDER]

    kern = functools.partial(
        _encoder_cell_kernel,
        seq_len=S, hidden=H, pff_dim=F,
        n_heads=cfg["n_heads"], pad_val=float(cfg["pad_id"]),
        apply_proj=bool(apply_proj))

    in_specs = (
        [pl.BlockSpec((1, S, H), lambda b: (b, 0, 0)),       # activation: one batch row / step
         pl.BlockSpec((1, 1, S), lambda b: (b, 0, 0))]       # pad mask
        + [_bcast_spec(w.shape) for w in weights])           # weights: same block every step

    return pl.pallas_call(
        kern,
        out_shape=jax.ShapeDtypeStruct((B, S, H), x.dtype),
        grid=(B,),
        in_specs=in_specs,
        out_specs=pl.BlockSpec((1, S, H), lambda b: (b, 0, 0)),
        scratch_shapes=[pltpu.VMEM((S + 8, max(H, F)), jnp.float32)],
        compiler_params=pltpu.CompilerParams(dimension_semantics=("parallel",)),
    )(x, mask, *weights)


# ------------------------------------ model glue ------------------------------------- #

def sinusoidal_pe(seq_len, dim):
    pos = jnp.arange(seq_len, dtype=jnp.float32)[:, None]
    i = jnp.arange(dim // 2, dtype=jnp.float32)[None, :]
    angle = pos / jnp.power(10000.0, 2.0 * i / dim)
    pe = jnp.zeros((seq_len, dim), jnp.float32)
    pe = pe.at[:, 0::2].set(jnp.sin(angle))
    pe = pe.at[:, 1::2].set(jnp.cos(angle))
    return pe


def embed(tokens, table, pe, hidden_dim):
    # TODO(synk): Embeddings class was not provided; assuming scaled token embedding plus
    # (precomputed) sinusoidal positional encoding; dropout omitted (eval mode).
    emb = jnp.take(table, tokens, axis=0) * math.sqrt(hidden_dim)
    return emb + pe[: tokens.shape[1]][None]


def evolved_encoder_forward(params, x_tokens, e_mask, cfg):
    h = embed(x_tokens, params["emb"], params["pe"], cfg["hidden_dim"])
    B = x_tokens.shape[0]
    mask = e_mask.reshape(B, 1, e_mask.shape[-1]).astype(jnp.int32)

    n_cells = len(params["cells"])
    for idx, cell_p in enumerate(params["cells"]):
        if cfg["attn"] == "orig":
            ap = False
        elif "half" in cfg["attn"]:
            ap = (idx + 1) // 2 >= n_cells // 2
        else:
            ap = True
        h = encoder_cell(h, mask, cell_p, cfg, apply_proj=ap)
    return h


# ------------------------------------- parameters ------------------------------------ #

def init_params(key, cfg, max_len=64):
    H, F, V = cfg["hidden_dim"], cfg["pff_dim"], cfg["vocab_size"]
    pad_val = float(cfg["pad_id"])
    n_cells = cfg["n_layers"] // 2
    keys = iter(jax.random.split(key, 512))

    def w(shape, scale=0.05):
        return jax.random.normal(next(keys), shape, jnp.float32) * scale

    def zeros(*shape):
        return jnp.zeros(shape, jnp.float32)

    def ones(*shape):
        return jnp.ones(shape, jnp.float32)

    def cell_params():
        # Left Linear(H->F) and right Conv1d(H->H/2, k=3) packed into one k=3 conv with
        # output width 2F: the Linear only uses the centre tap; cols >= F+H/2 are zero so
        # ReLU yields 0 there and the in-kernel pad_row supplies pad_id.
        left_w = w((H, F))
        right_w3 = w((3, H, H // 2))
        lr_w3 = jnp.zeros((3, H, 2 * F), jnp.float32)
        lr_w3 = lr_w3.at[1, :, :F].set(left_w)
        lr_w3 = lr_w3.at[:, :, F:F + H // 2].set(right_w3)
        # Pointwise conv (F -> H/2), padded up to H with zero weights and bias = pad_id so
        # the matmul output directly carries F.pad(value=pad_id).
        pw_w = jnp.zeros((F, H), jnp.float32).at[:, :H // 2].set(w((F, H // 2)))
        pw_b = jnp.zeros((1, H), jnp.float32).at[0, H // 2:].set(pad_val)
        return dict(
            ln0_g=ones(1, H), ln0_b=zeros(1, H),
            glu_w3=w((3, H, 2 * H)), glu_b=zeros(1, 2 * H),      # GLU conv, per-tap weights
            ln1_g=ones(1, H), ln1_b=zeros(1, H),
            lr_w3=lr_w3, lr_b=zeros(1, 2 * F),
            mid_g=ones(1, F), mid_b=zeros(1, F),
            dw_w=w((9, F)), dw_b=zeros(1, F),                    # depthwise (k, channel)
            pw_w=pw_w, pw_b=pw_b,
            ln2_g=ones(1, H), ln2_b=zeros(1, H),
            wqkv=w((H, 3 * H)), bqkv=zeros(1, 3 * H),            # fused Q/K/V projection
            wo=w((H, H)), bo=zeros(1, H),
            ln3_g=ones(1, H), ln3_b=zeros(1, H),
            pff_w1=w((H, F)), pff_b1=zeros(1, F),
            pff_w2=w((F, H)), pff_b2=zeros(1, H),
        )

    return dict(
        emb=w((V, H), 1.0),
        pe=sinusoidal_pe(max_len, H),
        cells=[cell_params() for _ in range(n_cells)],
    )


# ---------------------------------------- main ---------------------------------------- #

if __name__ == "__main__":
    cfg = dict(hidden_dim=32, pff_dim=64, vocab_size=40, n_layers=4, n_heads=4,
               pad_id=0, attn="orig", dropout_ratio=0.0)

    key = jax.random.PRNGKey(0)
    pkey, xkey = jax.random.split(key)
    params = init_params(pkey, cfg)

    B, S = 2, 8
    x = jax.random.randint(xkey, (B, S), 1, cfg["vocab_size"], dtype=jnp.int32)
    x = x.at[0, -1].set(cfg["pad_id"])                # exercise the encoder pad mask
    e_mask = (x != cfg["pad_id"])[:, None, :]         # (B, 1, S), as passed to EvolvedEncoder

    fwd = jax.jit(functools.partial(evolved_encoder_forward, cfg=cfg))
    out = fwd(params, x, e_mask)
    jax.block_until_ready(out)
    assert out.shape == (B, S, cfg["hidden_dim"])
    print("KERNEL_OK")
</pallas_src>

<mosaic_0001>
module attributes {stable_mosaic.version = 11 : i64} {
  func.func @_encoder_cell_kernel(%arg0: i32, %arg1: memref<1x8x32xf32, #tpu.memory_space<vmem>>, %arg2: memref<1x1x8xi32, #tpu.memory_space<vmem>>, %arg3: memref<1x32xf32, #tpu.memory_space<vmem>>, %arg4: memref<1x32xf32, #tpu.memory_space<vmem>>, %arg5: memref<3x32x64xf32, #tpu.memory_space<vmem>>, %arg6: memref<1x64xf32, #tpu.memory_space<vmem>>, %arg7: memref<1x32xf32, #tpu.memory_space<vmem>>, %arg8: memref<1x32xf32, #tpu.memory_space<vmem>>, %arg9: memref<3x32x128xf32, #tpu.memory_space<vmem>>, %arg10: memref<1x128xf32, #tpu.memory_space<vmem>>, %arg11: memref<1x64xf32, #tpu.memory_space<vmem>>, %arg12: memref<1x64xf32, #tpu.memory_space<vmem>>, %arg13: memref<9x64xf32, #tpu.memory_space<vmem>>, %arg14: memref<1x64xf32, #tpu.memory_space<vmem>>, %arg15: memref<64x32xf32, #tpu.memory_space<vmem>>, %arg16: memref<1x32xf32, #tpu.memory_space<vmem>>, %arg17: memref<1x32xf32, #tpu.memory_space<vmem>>, %arg18: memref<1x32xf32, #tpu.memory_space<vmem>>, %arg19: memref<32x96xf32, #tpu.memory_space<vmem>>, %arg20: memref<1x96xf32, #tpu.memory_space<vmem>>, %arg21: memref<32x32xf32, #tpu.memory_space<vmem>>, %arg22: memref<1x32xf32, #tpu.memory_space<vmem>>, %arg23: memref<1x32xf32, #tpu.memory_space<vmem>>, %arg24: memref<1x32xf32, #tpu.memory_space<vmem>>, %arg25: memref<32x64xf32, #tpu.memory_space<vmem>>, %arg26: memref<1x64xf32, #tpu.memory_space<vmem>>, %arg27: memref<64x32xf32, #tpu.memory_space<vmem>>, %arg28: memref<1x32xf32, #tpu.memory_space<vmem>>, %arg29: memref<1x8x32xf32, #tpu.memory_space<vmem>>, %arg30: memref<16x64xf32, #tpu.memory_space<vmem>>) attributes {dimension_semantics = [#tpu.dimension_semantics<parallel>], iteration_bounds = array<i64: 2>, scalar_prefetch = 0 : i64, scratch_operands = 1 : i64, tpu.core_type = #tpu.core_type<tc>, window_params = [{transform_indices = @transform_0, window_bounds = array<i64: 1, 8, 32>}, {transform_indices = @transform_1, window_bounds = array<i64: 1, 1, 8>}, {pipeline_mode = #tpu.pipeline_mode<synchronous>, transform_indices = @transform_2, window_bounds = array<i64: 1, 32>}, {pipeline_mode = #tpu.pipeline_mode<synchronous>, transform_indices = @transform_3, window_bounds = array<i64: 1, 32>}, {pipeline_mode = #tpu.pipeline_mode<synchronous>, transform_indices = @transform_4, window_bounds = array<i64: 3, 32, 64>}, {pipeline_mode = #tpu.pipeline_mode<synchronous>, transform_indices = @transform_5, window_bounds = array<i64: 1, 64>}, {pipeline_mode = #tpu.pipeline_mode<synchronous>, transform_indices = @transform_6, window_bounds = array<i64: 1, 32>}, {pipeline_mode = #tpu.pipeline_mode<synchronous>, transform_indices = @transform_7, window_bounds = array<i64: 1, 32>}, {pipeline_mode = #tpu.pipeline_mode<synchronous>, transform_indices = @transform_8, window_bounds = array<i64: 3, 32, 128>}, {pipeline_mode = #tpu.pipeline_mode<synchronous>, transform_indices = @transform_9, window_bounds = array<i64: 1, 128>}, {pipeline_mode = #tpu.pipeline_mode<synchronous>, transform_indices = @transform_10, window_bounds = array<i64: 1, 64>}, {pipeline_mode = #tpu.pipeline_mode<synchronous>, transform_indices = @transform_11, window_bounds = array<i64: 1, 64>}, {pipeline_mode = #tpu.pipeline_mode<synchronous>, transform_indices = @transform_12, window_bounds = array<i64: 9, 64>}, {pipeline_mode = #tpu.pipeline_mode<synchronous>, transform_indices = @transform_13, window_bounds = array<i64: 1, 64>}, {pipeline_mode = #tpu.pipeline_mode<synchronous>, transform_indices = @transform_14, window_bounds = array<i64: 64, 32>}, {pipeline_mode = #tpu.pipeline_mode<synchronous>, transform_indices = @transform_15, window_bounds = array<i64: 1, 32>}, {pipeline_mode = #tpu.pipeline_mode<synchronous>, transform_indices = @transform_16, window_bounds = array<i64: 1, 32>}, {pipeline_mode = #tpu.pipeline_mode<synchronous>, transform_indices = @transform_17, window_bounds = array<i64: 1, 32>}, {pipeline_mode = #tpu.pipeline_mode<synchronous>, transform_indices = @transform_18, window_bounds = array<i64: 32, 96>}, {pipeline_mode = #tpu.pipeline_mode<synchronous>, transform_indices = @transform_19, window_bounds = array<i64: 1, 96>}, {pipeline_mode = #tpu.pipeline_mode<synchronous>, transform_indices = @transform_20, window_bounds = array<i64: 32, 32>}, {pipeline_mode = #tpu.pipeline_mode<synchronous>, transform_indices = @transform_21, window_bounds = array<i64: 1, 32>}, {pipeline_mode = #tpu.pipeline_mode<synchronous>, transform_indices = @transform_22, window_bounds = array<i64: 1, 32>}, {pipeline_mode = #tpu.pipeline_mode<synchronous>, transform_indices = @transform_23, window_bounds = array<i64: 1, 32>}, {pipeline_mode = #tpu.pipeline_mode<synchronous>, transform_indices = @transform_24, window_bounds = array<i64: 32, 64>}, {pipeline_mode = #tpu.pipeline_mode<synchronous>, transform_indices = @transform_25, window_bounds = array<i64: 1, 64>}, {pipeline_mode = #tpu.pipeline_mode<synchronous>, transform_indices = @transform_26, window_bounds = array<i64: 64, 32>}, {pipeline_mode = #tpu.pipeline_mode<synchronous>, transform_indices = @transform_27, window_bounds = array<i64: 1, 32>}, {transform_indices = @transform_28, window_bounds = array<i64: 1, 8, 32>}]} {
    %cst = arith.constant 0.000000e+00 : f32
    %0 = vector.broadcast %cst : f32 to vector<16x64xf32>
    %c0 = arith.constant 0 : index
    %c0_0 = arith.constant 0 : index
    %1 = vector.load %arg30[%c0, %c0_0] : memref<16x64xf32, #tpu.memory_space<vmem>>, vector<16x64xf32>
    tpu.vector_store %arg30[%c0, %c0_0], %0 {strides = array<i32>} : memref<16x64xf32, #tpu.memory_space<vmem>>, vector<16x64xf32>,
    %c0_1 = arith.constant 0 : index
    %c0_2 = arith.constant 0 : index
    %c0_3 = arith.constant 0 : index
    %2 = vector.load %arg1[%c0_1, %c0_2, %c0_3] : memref<1x8x32xf32, #tpu.memory_space<vmem>>, vector<1x8x32xf32>
    %3 = vector.shape_cast %2 : vector<1x8x32xf32> to vector<8x32xf32>
    %cst_4 = arith.constant dense<0.000000e+00> : vector<8xf32>
    %4 = vector.multi_reduction <add>, %3, %cst_4 [1] : vector<8x32xf32> to vector<8xf32>
    %5 = vector.shape_cast %4 : vector<8xf32> to vector<8x1xf32>
    %cst_5 = arith.constant 3.200000e+01 : f32
    %6 = vector.broadcast %cst_5 : f32 to vector<8x1xf32>
    %7 = arith.divf %5, %6 : vector<8x1xf32>
    %8 = vector.broadcast %7 : vector<8x1xf32> to vector<8x32xf32>
    %9 = arith.subf %3, %8 : vector<8x32xf32>
    %10 = arith.mulf %9, %9 : vector<8x32xf32>
    %cst_6 = arith.constant dense<0.000000e+00> : vector<8xf32>
    %11 = vector.multi_reduction <add>, %10, %cst_6 [1] : vector<8x32xf32> to vector<8xf32>
    %12 = vector.shape_cast %11 : vector<8xf32> to vector<8x1xf32>
    %cst_7 = arith.constant 3.200000e+01 : f32
    %13 = vector.broadcast %cst_7 : f32 to vector<8x1xf32>
    %14 = arith.divf %12, %13 : vector<8x1xf32>
    %cst_8 = arith.constant 9.99999974E-6 : f32
    %15 = vector.broadcast %cst_8 : f32 to vector<8x1xf32>
    %16 = arith.addf %14, %15 : vector<8x1xf32>
    %17 = math.rsqrt %16 : vector<8x1xf32>
    %18 = vector.broadcast %17 : vector<8x1xf32> to vector<8x32xf32>
    %19 = arith.mulf %9, %18 : vector<8x32xf32>
    %c0_9 = arith.constant 0 : index
    %c0_10 = arith.constant 0 : index
    %20 = vector.load %arg3[%c0_9, %c0_10] : memref<1x32xf32, #tpu.memory_space<vmem>>, vector<1x32xf32>
    %21 = vector.broadcast %20 : vector<1x32xf32> to vector<8x32xf32>
    %22 = arith.mulf %19, %21 : vector<8x32xf32>
    %c0_11 = arith.constant 0 : index
    %c0_12 = arith.constant 0 : index
    %23 = vector.load %arg4[%c0_11, %c0_12] : memref<1x32xf32, #tpu.memory_space<vmem>>, vector<1x32xf32>
    %24 = vector.broadcast %23 : vector<1x32xf32> to vector<8x32xf32>
    %25 = arith.addf %22, %24 : vector<8x32xf32>
    %c4 = arith.constant 4 : index
    %c0_13 = arith.constant 0 : index
    %26 = vector.load %arg30[%c4, %c0_13] : memref<16x64xf32, #tpu.memory_space<vmem>>, vector<8x32xf32>
    tpu.vector_store %arg30[%c4, %c0_13], %25 {strides = array<i32>} : memref<16x64xf32, #tpu.memory_space<vmem>>, vector<8x32xf32>,
    %c3 = arith.constant 3 : index
    %c0_14 = arith.constant 0 : index
    %27 = vector.load %arg30[%c3, %c0_14] : memref<16x64xf32, #tpu.memory_space<vmem>>, vector<8x32xf32>
    %c0_15 = arith.constant 0 : index
    %c0_16 = arith.constant 0 : index
    %c0_17 = arith.constant 0 : index
    %28 = vector.load %arg5[%c0_15, %c0_16, %c0_17] : memref<3x32x64xf32, #tpu.memory_space<vmem>>, vector<1x32x64xf32>
    %29 = vector.shape_cast %28 : vector<1x32x64xf32> to vector<32x64xf32>
    %cst_18 = arith.constant dense<0.000000e+00> : vector<8x64xf32>
    %30 = tpu.matmul %27, %29, %cst_18 {dimension_numbers = #tpu.dot_dimension_numbers<[1], [0], [0], [1], [0, 0, 1, 1], [], []>} : vector<8x32xf32>, vector<32x64xf32>, vector<8x64xf32> -> vector<8x64xf32>
    %c1 = arith.constant 1 : index
    %c0_19 = arith.constant 0 : index
    %c0_20 = arith.constant 0 : index
    %31 = vector.load %arg5[%c1, %c0_19, %c0_20] : memref<3x32x64xf32, #tpu.memory_space<vmem>>, vector<1x32x64xf32>
    %32 = vector.shape_cast %31 : vector<1x32x64xf32> to vector<32x64xf32>
    %cst_21 = arith.constant dense<0.000000e+00> : vector<8x64xf32>
    %33 = tpu.matmul %25, %32, %cst_21 {dimension_numbers = #tpu.dot_dimension_numbers<[1], [0], [0], [1], [0, 0, 1, 1], [], []>} : vector<8x32xf32>, vector<32x64xf32>, vector<8x64xf32> -> vector<8x64xf32>
    %34 = arith.addf %30, %33 : vector<8x64xf32>
    %c5 = arith.constant 5 : index
    %c0_22 = arith.constant 0 : index
    %35 = vector.load %arg30[%c5, %c0_22] : memref<16x64xf32, #tpu.memory_space<vmem>>, vector<8x32xf32>
    %c2 = arith.constant 2 : index
    %c0_23 = arith.constant 0 : index
    %c0_24 = arith.constant 0 : index
    %36 = vector.load %arg5[%c2, %c0_23, %c0_24] : memref<3x32x64xf32, #tpu.memory_space<vmem>>, vector<1x32x64xf32>
    %37 = vector.shape_cast %36 : vector<1x32x64xf32> to vector<32x64xf32>
    %cst_25 = arith.constant dense<0.000000e+00> : vector<8x64xf32>
    %38 = tpu.matmul %35, %37, %cst_25 {dimension_numbers = #tpu.dot_dimension_numbers<[1], [0], [0], [1], [0, 0, 1, 1], [], []>} : vector<8x32xf32>, vector<32x64xf32>, vector<8x64xf32> -> vector<8x64xf32>
    %39 = arith.addf %34, %38 : vector<8x64xf32>
    %c0_26 = arith.constant 0 : index
    %c0_27 = arith.constant 0 : index
    %40 = vector.load %arg6[%c0_26, %c0_27] : memref<1x64xf32, #tpu.memory_space<vmem>>, vector<1x64xf32>
    %41 = vector.broadcast %40 : vector<1x64xf32> to vector<8x64xf32>
    %42 = arith.addf %39, %41 : vector<8x64xf32>
    %43 = vector.extract_strided_slice %42 {offsets = [0, 0], sizes = [8, 32], strides = [1, 1]} : vector<8x64xf32> to vector<8x32xf32>
    %44 = vector.extract_strided_slice %42 {offsets = [0, 32], sizes = [8, 32], strides = [1, 1]} : vector<8x64xf32> to vector<8x32xf32>
    %45 = arith.negf %44 : vector<8x32xf32>
    %46 = math.exp %45 : vector<8x32xf32>
    %cst_28 = arith.constant 1.000000e+00 : f32
    %47 = vector.broadcast %cst_28 : f32 to vector<8x32xf32>
    %48 = arith.addf %47, %46 : vector<8x32xf32>
    %49 = arith.divf %47, %48 : vector<8x32xf32>
    %50 = arith.mulf %43, %49 : vector<8x32xf32>
    %cst_29 = arith.constant dense<0.000000e+00> : vector<8xf32>
    %51 = vector.multi_reduction <add>, %50, %cst_29 [1] : vector<8x32xf32> to vector<8xf32>
    %52 = vector.shape_cast %51 : vector<8xf32> to vector<8x1xf32>
    %cst_30 = arith.constant 3.200000e+01 : f32
    %53 = vector.broadcast %cst_30 : f32 to vector<8x1xf32>
    %54 = arith.divf %52, %53 : vector<8x1xf32>
    %55 = vector.broadcast %54 : vector<8x1xf32> to vector<8x32xf32>
    %56 = arith.subf %50, %55 : vector<8x32xf32>
    %57 = arith.mulf %56, %56 : vector<8x32xf32>
    %cst_31 = arith.constant dense<0.000000e+00> : vector<8xf32>
    %58 = vector.multi_reduction <add>, %57, %cst_31 [1] : vector<8x32xf32> to vector<8xf32>
    %59 = vector.shape_cast %58 : vector<8xf32> to vector<8x1xf32>
    %cst_32 = arith.constant 3.200000e+01 : f32
    %60 = vector.broadcast %cst_32 : f32 to vector<8x1xf32>
    %61 = arith.divf %59, %60 : vector<8x1xf32>
    %cst_33 = arith.constant 9.99999974E-6 : f32
    %62 = vector.broadcast %cst_33 : f32 to vector<8x1xf32>
    %63 = arith.addf %61, %62 : vector<8x1xf32>
    %64 = math.rsqrt %63 : vector<8x1xf32>
    %65 = vector.broadcast %64 : vector<8x1xf32> to vector<8x32xf32>
    %66 = arith.mulf %56, %65 : vector<8x32xf32>
    %c0_34 = arith.constant 0 : index
    %c0_35 = arith.constant 0 : index
    %67 = vector.load %arg7[%c0_34, %c0_35] : memref<1x32xf32, #tpu.memory_space<vmem>>, vector<1x32xf32>
    %68 = vector.broadcast %67 : vector<1x32xf32> to vector<8x32xf32>
    %69 = arith.mulf %66, %68 : vector<8x32xf32>
    %c0_36 = arith.constant 0 : index
    %c0_37 = arith.constant 0 : index
    %70 = vector.load %arg8[%c0_36, %c0_37] : memref<1x32xf32, #tpu.memory_space<vmem>>, vector<1x32xf32>
    %71 = vector.broadcast %70 : vector<1x32xf32> to vector<8x32xf32>
    %72 = arith.addf %69, %71 : vector<8x32xf32>
    %c4_38 = arith.constant 4 : index
    %c0_39 = arith.constant 0 : index
    %73 = vector.load %arg30[%c4_38, %c0_39] : memref<16x64xf32, #tpu.memory_space<vmem>>, vector<8x32xf32>
    tpu.vector_store %arg30[%c4_38, %c0_39], %72 {strides = array<i32>} : memref<16x64xf32, #tpu.memory_space<vmem>>, vector<8x32xf32>,
    %c3_40 = arith.constant 3 : index
    %c0_41 = arith.constant 0 : index
    %74 = vector.load %arg30[%c3_40, %c0_41] : memref<16x64xf32, #tpu.memory_space<vmem>>, vector<8x32xf32>
    %c0_42 = arith.constant 0 : index
    %c0_43 = arith.constant 0 : index
    %c0_44 = arith.constant 0 : index
    %75 = vector.load %arg9[%c0_42, %c0_43, %c0_44] : memref<3x32x128xf32, #tpu.memory_space<vmem>>, vector<1x32x128xf32>
    %76 = vector.shape_cast %75 : vector<1x32x128xf32> to vector<32x128xf32>
    %cst_45 = arith.constant dense<0.000000e+00> : vector<8x128xf32>
    %77 = tpu.matmul %74, %76, %cst_45 {dimension_numbers = #tpu.dot_dimension_numbers<[1], [0], [0], [1], [0, 0, 1, 1], [], []>} : vector<8x32xf32>, vector<32x128xf32>, vector<8x128xf32> -> vector<8x128xf32>
    %c1_46 = arith.constant 1 : index
    %c0_47 = arith.constant 0 : index
    %c0_48 = arith.constant 0 : index
    %78 = vector.load %arg9[%c1_46, %c0_47, %c0_48] : memref<3x32x128xf32, #tpu.memory_space<vmem>>, vector<1x32x128xf32>
    %79 = vector.shape_cast %78 : vector<1x32x128xf32> to vector<32x128xf32>
    %cst_49 = arith.constant dense<0.000000e+00> : vector<8x128xf32>
    %80 = tpu.matmul %72, %79, %cst_49 {dimension_numbers = #tpu.dot_dimension_numbers<[1], [0], [0], [1], [0, 0, 1, 1], [], []>} : vector<8x32xf32>, vector<32x128xf32>, vector<8x128xf32> -> vector<8x128xf32>
    %81 = arith.addf %77, %80 : vector<8x128xf32>
    %c5_50 = arith.constant 5 : index
    %c0_51 = arith.constant 0 : index
    %82 = vector.load %arg30[%c5_50, %c0_51] : memref<16x64xf32, #tpu.memory_space<vmem>>, vector<8x32xf32>
    %c2_52 = arith.constant 2 : index
    %c0_53 = arith.constant 0 : index
    %c0_54 = arith.constant 0 : index
    %83 = vector.load %arg9[%c2_52, %c0_53, %c0_54] : memref<3x32x128xf32, #tpu.memory_space<vmem>>, vector<1x32x128xf32>
    %84 = vector.shape_cast %83 : vector<1x32x128xf32> to vector<32x128xf32>
    %cst_55 = arith.constant dense<0.000000e+00> : vector<8x128xf32>
    %85 = tpu.matmul %82, %84, %cst_55 {dimension_numbers = #tpu.dot_dimension_numbers<[1], [0], [0], [1], [0, 0, 1, 1], [], []>} : vector<8x32xf32>, vector<32x128xf32>, vector<8x128xf32> -> vector<8x128xf32>
    %86 = arith.addf %81, %85 : vector<8x128xf32>
    %c0_56 = arith.constant 0 : index
    %c0_57 = arith.constant 0 : index
    %87 = vector.load %arg10[%c0_56, %c0_57] : memref<1x128xf32, #tpu.memory_space<vmem>>, vector<1x128xf32>
    %88 = vector.broadcast %87 : vector<1x128xf32> to vector<8x128xf32>
    %89 = arith.addf %86, %88 : vector<8x128xf32>
    %cst_58 = arith.constant 0.000000e+00 : f32
    %90 = vector.broadcast %cst_58 : f32 to vector<8x128xf32>
    %91 = arith.maximumf %89, %90 : vector<8x128xf32>
    %92 = tpu.iota {dimensions = array<i32: 1>} : vector<1x64xi32>
    %c16_i32 = arith.constant 16 : i32
    %93 = vector.broadcast %c16_i32 : i32 to vector<1x64xi32>
    %94 = arith.cmpi slt, %92, %93 : vector<1x64xi32>
    %cst_59 = arith.constant 0.000000e+00 : f32
    %cst_60 = arith.constant 0.000000e+00 : f32
    %95 = vector.broadcast %cst_59 : f32 to vector<1x64xf32>
    %96 = vector.broadcast %cst_60 : f32 to vector<1x64xf32>
    %97 = arith.select %94, %95, %96 : vector<1x64xi1>, vector<1x64xf32>
    %98 = vector.extract_strided_slice %91 {offsets = [0, 0], sizes = [8, 64], strides = [1, 1]} : vector<8x128xf32> to vector<8x64xf32>
    %99 = vector.extract_strided_slice %91 {offsets = [0, 64], sizes = [8, 64], strides = [1, 1]} : vector<8x128xf32> to vector<8x64xf32>
    %100 = arith.addf %98, %99 : vector<8x64xf32>
    %101 = vector.broadcast %97 : vector<1x64xf32> to vector<8x64xf32>
    %102 = arith.addf %100, %101 : vector<8x64xf32>
    %cst_61 = arith.constant dense<0.000000e+00> : vector<8xf32>
    %103 = vector.multi_reduction <add>, %102, %cst_61 [1] : vector<8x64xf32> to vector<8xf32>
    %104 = vector.shape_cast %103 : vector<8xf32> to vector<8x1xf32>
    %cst_62 = arith.constant 6.400000e+01 : f32
    %105 = vector.broadcast %cst_62 : f32 to vector<8x1xf32>
    %106 = arith.divf %104, %105 : vector<8x1xf32>
    %107 = vector.broadcast %106 : vector<8x1xf32> to vector<8x64xf32>
    %108 = arith.subf %102, %107 : vector<8x64xf32>
    %109 = arith.mulf %108, %108 : vector<8x64xf32>
    %cst_63 = arith.constant dense<0.000000e+00> : vector<8xf32>
    %110 = vector.multi_reduction <add>, %109, %cst_63 [1] : vector<8x64xf32> to vector<8xf32>
    %111 = vector.shape_cast %110 : vector<8xf32> to vector<8x1xf32>
    %cst_64 = arith.constant 6.400000e+01 : f32
    %112 = vector.broadcast %cst_64 : f32 to vector<8x1xf32>
    %113 = arith.divf %111, %112 : vector<8x1xf32>
    %cst_65 = arith.constant 9.99999974E-6 : f32
    %114 = vector.broadcast %cst_65 : f32 to vector<8x1xf32>
    %115 = arith.addf %113, %114 : vector<8x1xf32>
    %116 = math.rsqrt %115 : vector<8x1xf32>
    %117 = vector.broadcast %116 : vector<8x1xf32> to vector<8x64xf32>
    %118 = arith.mulf %108, %117 : vector<8x64xf32>
    %c0_66 = arith.constant 0 : index
    %c0_67 = arith.constant 0 : index
    %119 = vector.load %arg11[%c0_66, %c0_67] : memref<1x64xf32, #tpu.memory_space<vmem>>, vector<1x64xf32>
    %120 = vector.broadcast %119 : vector<1x64xf32> to vector<8x64xf32>
    %121 = arith.mulf %118, %120 : vector<8x64xf32>
    %c0_68 = arith.constant 0 : index
    %c0_69 = arith.constant 0 : index
    %122 = vector.load %arg12[%c0_68, %c0_69] : memref<1x64xf32, #tpu.memory_space<vmem>>, vector<1x64xf32>
    %123 = vector.broadcast %122 : vector<1x64xf32> to vector<8x64xf32>
    %124 = arith.addf %121, %123 : vector<8x64xf32>
    %c4_70 = arith.constant 4 : index
    %c0_71 = arith.constant 0 : index
    %125 = vector.load %arg30[%c4_70, %c0_71] : memref<16x64xf32, #tpu.memory_space<vmem>>, vector<8x64xf32>
    tpu.vector_store %arg30[%c4_70, %c0_71], %124 {strides = array<i32>} : memref<16x64xf32, #tpu.memory_space<vmem>>, vector<8x64xf32>,
    %c0_72 = arith.constant 0 : index
    %c0_73 = arith.constant 0 : index
    %126 = vector.load %arg14[%c0_72, %c0_73] : memref<1x64xf32, #tpu.memory_space<vmem>>, vector<1x64xf32>
    %c4_74 = arith.constant 4 : index
    %c0_75 = arith.constant 0 : index
    %127 = vector.load %arg13[%c4_74, %c0_75] : memref<9x64xf32, #tpu.memory_space<vmem>>, vector<1x64xf32>
    %128 = vector.broadcast %127 : vector<1x64xf32> to vector<8x64xf32>
    %129 = arith.mulf %124, %128 : vector<8x64xf32>
    %130 = vector.broadcast %126 : vector<1x64xf32> to vector<8x64xf32>
    %131 = arith.addf %130, %129 : vector<8x64xf32>
    %c0_76 = arith.constant 0 : index
    %c0_77 = arith.constant 0 : index
    %132 = vector.load %arg30[%c0_76, %c0_77] : memref<16x64xf32, #tpu.memory_space<vmem>>, vector<8x64xf32>
    %c0_78 = arith.constant 0 : index
    %c0_79 = arith.constant 0 : index
    %133 = vector.load %arg13[%c0_78, %c0_79] : memref<9x64xf32, #tpu.memory_space<vmem>>, vector<1x64xf32>
    %134 = vector.broadcast %133 : vector<1x64xf32> to vector<8x64xf32>
    %135 = arith.mulf %132, %134 : vector<8x64xf32>
    %136 = arith.addf %131, %135 : vector<8x64xf32>
    %c1_80 = arith.constant 1 : index
    %c0_81 = arith.constant 0 : index
    %137 = vector.load %arg30[%c1_80, %c0_81] : memref<16x64xf32, #tpu.memory_space<vmem>>, vector<8x64xf32>
    %c1_82 = arith.constant 1 : index
    %c0_83 = arith.constant 0 : index
    %138 = vector.load %arg13[%c1_82, %c0_83] : memref<9x64xf32, #tpu.memory_space<vmem>>, vector<1x64xf32>
    %139 = vector.broadcast %138 : vector<1x64xf32> to vector<8x64xf32>
    %140 = arith.mulf %137, %139 : vector<8x64xf32>
    %141 = arith.addf %136, %140 : vector<8x64xf32>
    %c2_84 = arith.constant 2 : index
    %c0_85 = arith.constant 0 : index
    %142 = vector.load %arg30[%c2_84, %c0_85] : memref<16x64xf32, #tpu.memory_space<vmem>>, vector<8x64xf32>
    %c2_86 = arith.constant 2 : index
    %c0_87 = arith.constant 0 : index
    %143 = vector.load %arg13[%c2_86, %c0_87] : memref<9x64xf32, #tpu.memory_space<vmem>>, vector<1x64xf32>
    %144 = vector.broadcast %143 : vector<1x64xf32> to vector<8x64xf32>
    %145 = arith.mulf %142, %144 : vector<8x64xf32>
    %146 = arith.addf %141, %145 : vector<8x64xf32>
    %c3_88 = arith.constant 3 : index
    %c0_89 = arith.constant 0 : index
    %147 = vector.load %arg30[%c3_88, %c0_89] : memref<16x64xf32, #tpu.memory_space<vmem>>, vector<8x64xf32>
    %c3_90 = arith.constant 3 : index
    %c0_91 = arith.constant 0 : index
    %148 = vector.load %arg13[%c3_90, %c0_91] : memref<9x64xf32, #tpu.memory_space<vmem>>, vector<1x64xf32>
    %149 = vector.broadcast %148 : vector<1x64xf32> to vector<8x64xf32>
    %150 = arith.mulf %147, %149 : vector<8x64xf32>
    %151 = arith.addf %146, %150 : vector<8x64xf32>
    %c5_92 = arith.constant 5 : index
    %c0_93 = arith.constant 0 : index
    %152 = vector.load %arg30[%c5_92, %c0_93] : memref<16x64xf32, #tpu.memory_space<vmem>>, vector<8x64xf32>
    %c5_94 = arith.constant 5 : index
    %c0_95 = arith.constant 0 : index
    %153 = vector.load %arg13[%c5_94, %c0_95] : memref<9x64xf32, #tpu.memory_space<vmem>>, vector<1x64xf32>
    %154 = vector.broadcast %153 : vector<1x64xf32> to vector<8x64xf32>
    %155 = arith.mulf %152, %154 : vector<8x64xf32>
    %156 = arith.addf %151, %155 : vector<8x64xf32>
    %c6 = arith.constant 6 : index
    %c0_96 = arith.constant 0 : index
    %157 = vector.load %arg30[%c6, %c0_96] : memref<16x64xf32, #tpu.memory_space<vmem>>, vector<8x64xf32>
    %c6_97 = arith.constant 6 : index
    %c0_98 = arith.constant 0 : index
    %158 = vector.load %arg13[%c6_97, %c0_98] : memref<9x64xf32, #tpu.memory_space<vmem>>, vector<1x64xf32>
    %159 = vector.broadcast %158 : vector<1x64xf32> to vector<8x64xf32>
    %160 = arith.mulf %157, %159 : vector<8x64xf32>
    %161 = arith.addf %156, %160 : vector<8x64xf32>
    %c7 = arith.constant 7 : index
    %c0_99 = arith.constant 0 : index
    %162 = vector.load %arg30[%c7, %c0_99] : memref<16x64xf32, #tpu.memory_space<vmem>>, vector<8x64xf32>
    %c7_100 = arith.constant 7 : index
    %c0_101 = arith.constant 0 : index
    %163 = vector.load %arg13[%c7_100, %c0_101] : memref<9x64xf32, #tpu.memory_space<vmem>>, vector<1x64xf32>
    %164 = vector.broadcast %163 : vector<1x64xf32> to vector<8x64xf32>
    %165 = arith.mulf %162, %164 : vector<8x64xf32>
    %166 = arith.addf %161, %165 : vector<8x64xf32>
    %c8 = arith.constant 8 : index
    %c0_102 = arith.constant 0 : index
    %167 = vector.load %arg30[%c8, %c0_102] : memref<16x64xf32, #tpu.memory_space<vmem>>, vector<8x64xf32>
    %c8_103 = arith.constant 8 : index
    %c0_104 = arith.constant 0 : index
    %168 = vector.load %arg13[%c8_103, %c0_104] : memref<9x64xf32, #tpu.memory_space<vmem>>, vector<1x64xf32>
    %169 = vector.broadcast %168 : vector<1x64xf32> to vector<8x64xf32>
    %170 = arith.mulf %167, %169 : vector<8x64xf32>
    %171 = arith.addf %166, %170 : vector<8x64xf32>
    %c0_105 = arith.constant 0 : index
    %c0_106 = arith.constant 0 : index
    %172 = vector.load %arg15[%c0_105, %c0_106] : memref<64x32xf32, #tpu.memory_space<vmem>>, vector<64x32xf32>
    %cst_107 = arith.constant dense<0.000000e+00> : vector<8x32xf32>
    %173 = tpu.matmul %171, %172, %cst_107 {dimension_numbers = #tpu.dot_dimension_numbers<[1], [0], [0], [1], [0, 0, 1, 1], [], []>} : vector<8x64xf32>, vector<64x32xf32>, vector<8x32xf32> -> vector<8x32xf32>
    %c0_108 = arith.constant 0 : index
    %c0_109 = arith.constant 0 : index
    %174 = vector.load %arg16[%c0_108, %c0_109] : memref<1x32xf32, #tpu.memory_space<vmem>>, vector<1x32xf32>
    %175 = vector.broadcast %174 : vector<1x32xf32> to vector<8x32xf32>
    %176 = arith.addf %173, %175 : vector<8x32xf32>
    %177 = arith.addf %176, %50 : vector<8x32xf32>
    %cst_110 = arith.constant dense<0.000000e+00> : vector<8xf32>
    %178 = vector.multi_reduction <add>, %177, %cst_110 [1] : vector<8x32xf32> to vector<8xf32>
    %179 = vector.shape_cast %178 : vector<8xf32> to vector<8x1xf32>
    %cst_111 = arith.constant 3.200000e+01 : f32
    %180 = vector.broadcast %cst_111 : f32 to vector<8x1xf32>
    %181 = arith.divf %179, %180 : vector<8x1xf32>
    %182 = vector.broadcast %181 : vector<8x1xf32> to vector<8x32xf32>
    %183 = arith.subf %177, %182 : vector<8x32xf32>
    %184 = arith.mulf %183, %183 : vector<8x32xf32>
    %cst_112 = arith.constant dense<0.000000e+00> : vector<8xf32>
    %185 = vector.multi_reduction <add>, %184, %cst_112 [1] : vector<8x32xf32> to vector<8xf32>
    %186 = vector.shape_cast %185 : vector<8xf32> to vector<8x1xf32>
    %cst_113 = arith.constant 3.200000e+01 : f32
    %187 = vector.broadcast %cst_113 : f32 to vector<8x1xf32>
    %188 = arith.divf %186, %187 : vector<8x1xf32>
    %cst_114 = arith.constant 9.99999974E-6 : f32
    %189 = vector.broadcast %cst_114 : f32 to vector<8x1xf32>
    %190 = arith.addf %188, %189 : vector<8x1xf32>
    %191 = math.rsqrt %190 : vector<8x1xf32>
    %192 = vector.broadcast %191 : vector<8x1xf32> to vector<8x32xf32>
    %193 = arith.mulf %183, %192 : vector<8x32xf32>
    %c0_115 = arith.constant 0 : index
    %c0_116 = arith.constant 0 : index
    %194 = vector.load %arg17[%c0_115, %c0_116] : memref<1x32xf32, #tpu.memory_space<vmem>>, vector<1x32xf32>
    %195 = vector.broadcast %194 : vector<1x32xf32> to vector<8x32xf32>
    %196 = arith.mulf %193, %195 : vector<8x32xf32>
    %c0_117 = arith.constant 0 : index
    %c0_118 = arith.constant 0 : index
    %197 = vector.load %arg18[%c0_117, %c0_118] : memref<1x32xf32, #tpu.memory_space<vmem>>, vector<1x32xf32>
    %198 = vector.broadcast %197 : vector<1x32xf32> to vector<8x32xf32>
    %199 = arith.addf %196, %198 : vector<8x32xf32>
    %c0_119 = arith.constant 0 : index
    %c0_120 = arith.constant 0 : index
    %200 = vector.load %arg19[%c0_119, %c0_120] : memref<32x96xf32, #tpu.memory_space<vmem>>, vector<32x96xf32>
    %cst_121 = arith.constant dense<0.000000e+00> : vector<8x96xf32>
    %201 = tpu.matmul %199, %200, %cst_121 {dimension_numbers = #tpu.dot_dimension_numbers<[1], [0], [0], [1], [0, 0, 1, 1], [], []>} : vector<8x32xf32>, vector<32x96xf32>, vector<8x96xf32> -> vector<8x96xf32>
    %c0_122 = arith.constant 0 : index
    %c0_123 = arith.constant 0 : index
    %202 = vector.load %arg20[%c0_122, %c0_123] : memref<1x96xf32, #tpu.memory_space<vmem>>, vector<1x96xf32>
    %203 = vector.broadcast %202 : vector<1x96xf32> to vector<8x96xf32>
    %204 = arith.addf %201, %203 : vector<8x96xf32>
    %205 = vector.extract_strided_slice %204 {offsets = [0, 64], sizes = [8, 32], strides = [1, 1]} : vector<8x96xf32> to vector<8x32xf32>
    %c0_124 = arith.constant 0 : index
    %c0_125 = arith.constant 0 : index
    %c0_126 = arith.constant 0 : index
    %206 = vector.load %arg2[%c0_124, %c0_125, %c0_126] : memref<1x1x8xi32, #tpu.memory_space<vmem>>, vector<1x1x8xi32>
    %207 = vector.shape_cast %206 : vector<1x1x8xi32> to vector<1x8xi32>
    %c0_i32 = arith.constant 0 : i32
    %208 = vector.broadcast %c0_i32 : i32 to vector<1x8xi32>
    %209 = arith.cmpi ne, %207, %208 : vector<1x8xi32>
    %cst_127 = arith.constant 0.000000e+00 : f32
    %cst_128 = arith.constant -1.000000e+09 : f32
    %210 = vector.broadcast %cst_127 : f32 to vector<1x8xf32>
    %211 = vector.broadcast %cst_128 : f32 to vector<1x8xf32>
    %212 = arith.select %209, %210, %211 : vector<1x8xi1>, vector<1x8xf32>
    %213 = tpu.iota {dimensions = array<i32: 1>} : vector<8x32xi32>
    %cst_129 = arith.constant 0.000000e+00 : f32
    %214 = vector.broadcast %cst_129 : f32 to vector<8x32xf32>
    %215 = vector.extract_strided_slice %204 {offsets = [0, 0], sizes = [8, 8], strides = [1, 1]} : vector<8x96xf32> to vector<8x8xf32>
    %216 = vector.extract_strided_slice %204 {offsets = [0, 32], sizes = [8, 8], strides = [1, 1]} : vector<8x96xf32> to vector<8x8xf32>
    %cst_130 = arith.constant dense<0.000000e+00> : vector<8x8xf32>
    %217 = tpu.matmul %215, %216, %cst_130 {dimension_numbers = #tpu.dot_dimension_numbers<[1], [1], [0], [0], [0, 0, 1, 0], [], []>} : vector<8x8xf32>, vector<8x8xf32>, vector<8x8xf32> -> vector<8x8xf32>
    %cst_131 = arith.constant 0.353553385 : f32
    %218 = vector.broadcast %cst_131 : f32 to vector<8x8xf32>
    %219 = arith.mulf %217, %218 : vector<8x8xf32>
    %220 = vector.broadcast %212 : vector<1x8xf32> to vector<8x8xf32>
    %221 = arith.addf %219, %220 : vector<8x8xf32>
    %cst_132 = arith.constant dense<0xFF800000> : vector<8xf32>
    %222 = vector.multi_reduction <maximumf>, %221, %cst_132 [1] : vector<8x8xf32> to vector<8xf32>
    %223 = vector.shape_cast %222 : vector<8xf32> to vector<8x1xf32>
    %224 = vector.broadcast %223 : vector<8x1xf32> to vector<8x8xf32>
    %225 = arith.subf %221, %224 : vector<8x8xf32>
    %226 = math.exp %225 : vector<8x8xf32>
    %cst_133 = arith.constant dense<0.000000e+00> : vector<8xf32>
    %227 = vector.multi_reduction <add>, %226, %cst_133 [1] : vector<8x8xf32> to vector<8xf32>
    %228 = vector.shape_cast %227 : vector<8xf32> to vector<8x1xf32>
    %229 = tpu.reciprocal %228 {approx = true} : vector<8x1xf32> -> vector<8x1xf32>
    %230 = vector.broadcast %229 : vector<8x1xf32> to vector<8x8xf32>
    %231 = arith.mulf %226, %230 : vector<8x8xf32>
    %c0_i32_134 = arith.constant 0 : i32
    %232 = vector.broadcast %c0_i32_134 : i32 to vector<8x32xi32>
    %233 = arith.cmpi sge, %213, %232 : vector<8x32xi32>
    %c8_i32 = arith.constant 8 : i32
    %234 = vector.broadcast %c8_i32 : i32 to vector<8x32xi32>
    %235 = arith.cmpi slt, %213, %234 : vector<8x32xi32>
    %236 = arith.andi %233, %235 : vector<8x32xi1>
    %cst_135 = arith.constant 0.000000e+00 : f32
    %237 = vector.broadcast %cst_135 : f32 to vector<8x32xf32>
    %238 = arith.select %236, %205, %237 : vector<8x32xi1>, vector<8x32xf32>
    %cst_136 = arith.constant dense<0.000000e+00> : vector<8x32xf32>
    %239 = tpu.matmul %231, %238, %cst_136 {dimension_numbers = #tpu.dot_dimension_numbers<[1], [0], [0], [1], [0, 0, 1, 1], [], []>} : vector<8x8xf32>, vector<8x32xf32>, vector<8x32xf32> -> vector<8x32xf32>
    %240 = arith.addf %214, %239 : vector<8x32xf32>
    %241 = vector.extract_strided_slice %204 {offsets = [0, 8], sizes = [8, 8], strides = [1, 1]} : vector<8x96xf32> to vector<8x8xf32>
    %242 = vector.extract_strided_slice %204 {offsets = [0, 40], sizes = [8, 8], strides = [1, 1]} : vector<8x96xf32> to vector<8x8xf32>
    %cst_137 = arith.constant dense<0.000000e+00> : vector<8x8xf32>
    %243 = tpu.matmul %241, %242, %cst_137 {dimension_numbers = #tpu.dot_dimension_numbers<[1], [1], [0], [0], [0, 0, 1, 0], [], []>} : vector<8x8xf32>, vector<8x8xf32>, vector<8x8xf32> -> vector<8x8xf32>
    %cst_138 = arith.constant 0.353553385 : f32
    %244 = vector.broadcast %cst_138 : f32 to vector<8x8xf32>
    %245 = arith.mulf %243, %244 : vector<8x8xf32>
    %246 = vector.broadcast %212 : vector<1x8xf32> to vector<8x8xf32>
    %247 = arith.addf %245, %246 : vector<8x8xf32>
    %cst_139 = arith.constant dense<0xFF800000> : vector<8xf32>
    %248 = vector.multi_reduction <maximumf>, %247, %cst_139 [1] : vector<8x8xf32> to vector<8xf32>
    %249 = vector.shape_cast %248 : vector<8xf32> to vector<8x1xf32>
    %250 = vector.broadcast %249 : vector<8x1xf32> to vector<8x8xf32>
    %251 = arith.subf %247, %250 : vector<8x8xf32>
    %252 = math.exp %251 : vector<8x8xf32>
    %cst_140 = arith.constant dense<0.000000e+00> : vector<8xf32>
    %253 = vector.multi_reduction <add>, %252, %cst_140 [1] : vector<8x8xf32> to vector<8xf32>
    %254 = vector.shape_cast %253 : vector<8xf32> to vector<8x1xf32>
    %255 = tpu.reciprocal %254 {approx = true} : vector<8x1xf32> -> vector<8x1xf32>
    %256 = vector.broadcast %255 : vector<8x1xf32> to vector<8x8xf32>
    %257 = arith.mulf %252, %256 : vector<8x8xf32>
    %c8_i32_141 = arith.constant 8 : i32
    %258 = vector.broadcast %c8_i32_141 : i32 to vector<8x32xi32>
    %259 = arith.cmpi sge, %213, %258 : vector<8x32xi32>
    %c16_i32_142 = arith.constant 16 : i32
    %260 = vector.broadcast %c16_i32_142 : i32 to vector<8x32xi32>
    %261 = arith.cmpi slt, %213, %260 : vector<8x32xi32>
    %262 = arith.andi %259, %261 : vector<8x32xi1>
    %cst_143 = arith.constant 0.000000e+00 : f32
    %263 = vector.broadcast %cst_143 : f32 to vector<8x32xf32>
    %264 = arith.select %262, %205, %263 : vector<8x32xi1>, vector<8x32xf32>
    %cst_144 = arith.constant dense<0.000000e+00> : vector<8x32xf32>
    %265 = tpu.matmul %257, %264, %cst_144 {dimension_numbers = #tpu.dot_dimension_numbers<[1], [0], [0], [1], [0, 0, 1, 1], [], []>} : vector<8x8xf32>, vector<8x32xf32>, vector<8x32xf32> -> vector<8x32xf32>
    %266 = arith.addf %240, %265 : vector<8x32xf32>
    %267 = vector.extract_strided_slice %204 {offsets = [0, 16], sizes = [8, 8], strides = [1, 1]} : vector<8x96xf32> to vector<8x8xf32>
    %268 = vector.extract_strided_slice %204 {offsets = [0, 48], sizes = [8, 8], strides = [1, 1]} : vector<8x96xf32> to vector<8x8xf32>
    %cst_145 = arith.constant dense<0.000000e+00> : vector<8x8xf32>
    %269 = tpu.matmul %267, %268, %cst_145 {dimension_numbers = #tpu.dot_dimension_numbers<[1], [1], [0], [0], [0, 0, 1, 0], [], []>} : vector<8x8xf32>, vector<8x8xf32>, vector<8x8xf32> -> vector<8x8xf32>
    %cst_146 = arith.constant 0.353553385 : f32
    %270 = vector.broadcast %cst_146 : f32 to vector<8x8xf32>
    %271 = arith.mulf %269, %270 : vector<8x8xf32>
    %272 = vector.broadcast %212 : vector<1x8xf32> to vector<8x8xf32>
    %273 = arith.addf %271, %272 : vector<8x8xf32>
    %cst_147 = arith.constant dense<0xFF800000> : vector<8xf32>
    %274 = vector.multi_reduction <maximumf>, %273, %cst_147 [1] : vector<8x8xf32> to vector<8xf32>
    %275 = vector.shape_cast %274 : vector<8xf32> to vector<8x1xf32>
    %276 = vector.broadcast %275 : vector<8x1xf32> to vector<8x8xf32>
    %277 = arith.subf %273, %276 : vector<8x8xf32>
    %278 = math.exp %277 : vector<8x8xf32>
    %cst_148 = arith.constant dense<0.000000e+00> : vector<8xf32>
    %279 = vector.multi_reduction <add>, %278, %cst_148 [1] : vector<8x8xf32> to vector<8xf32>
    %280 = vector.shape_cast %279 : vector<8xf32> to vector<8x1xf32>
    %281 = tpu.reciprocal %280 {approx = true} : vector<8x1xf32> -> vector<8x1xf32>
    %282 = vector.broadcast %281 : vector<8x1xf32> to vector<8x8xf32>
    %283 = arith.mulf %278, %282 : vector<8x8xf32>
    %c16_i32_149 = arith.constant 16 : i32
    %284 = vector.broadcast %c16_i32_149 : i32 to vector<8x32xi32>
    %285 = arith.cmpi sge, %213, %284 : vector<8x32xi32>
    %c24_i32 = arith.constant 24 : i32
    %286 = vector.broadcast %c24_i32 : i32 to vector<8x32xi32>
    %287 = arith.cmpi slt, %213, %286 : vector<8x32xi32>
    %288 = arith.andi %285, %287 : vector<8x32xi1>
    %cst_150 = arith.constant 0.000000e+00 : f32
    %289 = vector.broadcast %cst_150 : f32 to vector<8x32xf32>
    %290 = arith.select %288, %205, %289 : vector<8x32xi1>, vector<8x32xf32>
    %cst_151 = arith.constant dense<0.000000e+00> : vector<8x32xf32>
    %291 = tpu.matmul %283, %290, %cst_151 {dimension_numbers = #tpu.dot_dimension_numbers<[1], [0], [0], [1], [0, 0, 1, 1], [], []>} : vector<8x8xf32>, vector<8x32xf32>, vector<8x32xf32> -> vector<8x32xf32>
    %292 = arith.addf %266, %291 : vector<8x32xf32>
    %293 = vector.extract_strided_slice %204 {offsets = [0, 24], sizes = [8, 8], strides = [1, 1]} : vector<8x96xf32> to vector<8x8xf32>
    %294 = vector.extract_strided_slice %204 {offsets = [0, 56], sizes = [8, 8], strides = [1, 1]} : vector<8x96xf32> to vector<8x8xf32>
    %cst_152 = arith.constant dense<0.000000e+00> : vector<8x8xf32>
    %295 = tpu.matmul %293, %294, %cst_152 {dimension_numbers = #tpu.dot_dimension_numbers<[1], [1], [0], [0], [0, 0, 1, 0], [], []>} : vector<8x8xf32>, vector<8x8xf32>, vector<8x8xf32> -> vector<8x8xf32>
    %cst_153 = arith.constant 0.353553385 : f32
    %296 = vector.broadcast %cst_153 : f32 to vector<8x8xf32>
    %297 = arith.mulf %295, %296 : vector<8x8xf32>
    %298 = vector.broadcast %212 : vector<1x8xf32> to vector<8x8xf32>
    %299 = arith.addf %297, %298 : vector<8x8xf32>
    %cst_154 = arith.constant dense<0xFF800000> : vector<8xf32>
    %300 = vector.multi_reduction <maximumf>, %299, %cst_154 [1] : vector<8x8xf32> to vector<8xf32>
    %301 = vector.shape_cast %300 : vector<8xf32> to vector<8x1xf32>
    %302 = vector.broadcast %301 : vector<8x1xf32> to vector<8x8xf32>
    %303 = arith.subf %299, %302 : vector<8x8xf32>
    %304 = math.exp %303 : vector<8x8xf32>
    %cst_155 = arith.constant dense<0.000000e+00> : vector<8xf32>
    %305 = vector.multi_reduction <add>, %304, %cst_155 [1] : vector<8x8xf32> to vector<8xf32>
    %306 = vector.shape_cast %305 : vector<8xf32> to vector<8x1xf32>
    %307 = tpu.reciprocal %306 {approx = true} : vector<8x1xf32> -> vector<8x1xf32>
    %308 = vector.broadcast %307 : vector<8x1xf32> to vector<8x8xf32>
    %309 = arith.mulf %304, %308 : vector<8x8xf32>
    %c24_i32_156 = arith.constant 24 : i32
    %310 = vector.broadcast %c24_i32_156 : i32 to vector<8x32xi32>
    %311 = arith.cmpi sge, %213, %310 : vector<8x32xi32>
    %c32_i32 = arith.constant 32 : i32
    %312 = vector.broadcast %c32_i32 : i32 to vector<8x32xi32>
    %313 = arith.cmpi slt, %213, %312 : vector<8x32xi32>
    %314 = arith.andi %311, %313 : vector<8x32xi1>
    %cst_157 = arith.constant 0.000000e+00 : f32
    %315 = vector.broadcast %cst_157 : f32 to vector<8x32xf32>
    %316 = arith.select %314, %205, %315 : vector<8x32xi1>, vector<8x32xf32>
    %cst_158 = arith.constant dense<0.000000e+00> : vector<8x32xf32>
    %317 = tpu.matmul %309, %316, %cst_158 {dimension_numbers = #tpu.dot_dimension_numbers<[1], [0], [0], [1], [0, 0, 1, 1], [], []>} : vector<8x8xf32>, vector<8x32xf32>, vector<8x32xf32> -> vector<8x32xf32>
    %318 = arith.addf %292, %317 : vector<8x32xf32>
    %319 = arith.addf %199, %318 : vector<8x32xf32>
    %cst_159 = arith.constant dense<0.000000e+00> : vector<8xf32>
    %320 = vector.multi_reduction <add>, %319, %cst_159 [1] : vector<8x32xf32> to vector<8xf32>
    %321 = vector.shape_cast %320 : vector<8xf32> to vector<8x1xf32>
    %cst_160 = arith.constant 3.200000e+01 : f32
    %322 = vector.broadcast %cst_160 : f32 to vector<8x1xf32>
    %323 = arith.divf %321, %322 : vector<8x1xf32>
    %324 = vector.broadcast %323 : vector<8x1xf32> to vector<8x32xf32>
    %325 = arith.subf %319, %324 : vector<8x32xf32>
    %326 = arith.mulf %325, %325 : vector<8x32xf32>
    %cst_161 = arith.constant dense<0.000000e+00> : vector<8xf32>
    %327 = vector.multi_reduction <add>, %326, %cst_161 [1] : vector<8x32xf32> to vector<8xf32>
    %328 = vector.shape_cast %327 : vector<8xf32> to vector<8x1xf32>
    %cst_162 = arith.constant 3.200000e+01 : f32
    %329 = vector.broadcast %cst_162 : f32 to vector<8x1xf32>
    %330 = arith.divf %328, %329 : vector<8x1xf32>
    %cst_163 = arith.constant 9.99999974E-6 : f32
    %331 = vector.broadcast %cst_163 : f32 to vector<8x1xf32>
    %332 = arith.addf %330, %331 : vector<8x1xf32>
    %333 = math.rsqrt %332 : vector<8x1xf32>
    %334 = vector.broadcast %333 : vector<8x1xf32> to vector<8x32xf32>
    %335 = arith.mulf %325, %334 : vector<8x32xf32>
    %c0_164 = arith.constant 0 : index
    %c0_165 = arith.constant 0 : index
    %336 = vector.load %arg23[%c0_164, %c0_165] : memref<1x32xf32, #tpu.memory_space<vmem>>, vector<1x32xf32>
    %337 = vector.broadcast %336 : vector<1x32xf32> to vector<8x32xf32>
    %338 = arith.mulf %335, %337 : vector<8x32xf32>
    %c0_166 = arith.constant 0 : index
    %c0_167 = arith.constant 0 : index
    %339 = vector.load %arg24[%c0_166, %c0_167] : memref<1x32xf32, #tpu.memory_space<vmem>>, vector<1x32xf32>
    %340 = vector.broadcast %339 : vector<1x32xf32> to vector<8x32xf32>
    %341 = arith.addf %338, %340 : vector<8x32xf32>
    %c0_168 = arith.constant 0 : index
    %c0_169 = arith.constant 0 : index
    %342 = vector.load %arg25[%c0_168, %c0_169] : memref<32x64xf32, #tpu.memory_space<vmem>>, vector<32x64xf32>
    %cst_170 = arith.constant dense<0.000000e+00> : vector<8x64xf32>
    %343 = tpu.matmul %341, %342, %cst_170 {dimension_numbers = #tpu.dot_dimension_numbers<[1], [0], [0], [1], [0, 0, 1, 1], [], []>} : vector<8x32xf32>, vector<32x64xf32>, vector<8x64xf32> -> vector<8x64xf32>
    %c0_171 = arith.constant 0 : index
    %c0_172 = arith.constant 0 : index
    %344 = vector.load %arg26[%c0_171, %c0_172] : memref<1x64xf32, #tpu.memory_space<vmem>>, vector<1x64xf32>
    %345 = vector.broadcast %344 : vector<1x64xf32> to vector<8x64xf32>
    %346 = arith.addf %343, %345 : vector<8x64xf32>
    %347 = arith.negf %346 : vector<8x64xf32>
    %348 = math.exp %347 : vector<8x64xf32>
    %cst_173 = arith.constant 1.000000e+00 : f32
    %349 = vector.broadcast %cst_173 : f32 to vector<8x64xf32>
    %350 = arith.addf %349, %348 : vector<8x64xf32>
    %351 = arith.divf %349, %350 : vector<8x64xf32>
    %352 = arith.mulf %346, %351 : vector<8x64xf32>
    %c0_174 = arith.constant 0 : index
    %c0_175 = arith.constant 0 : index
    %353 = vector.load %arg27[%c0_174, %c0_175] : memref<64x32xf32, #tpu.memory_space<vmem>>, vector<64x32xf32>
    %cst_176 = arith.constant dense<0.000000e+00> : vector<8x32xf32>
    %354 = tpu.matmul %352, %353, %cst_176 {dimension_numbers = #tpu.dot_dimension_numbers<[1], [0], [0], [1], [0, 0, 1, 1], [], []>} : vector<8x64xf32>, vector<64x32xf32>, vector<8x32xf32> -> vector<8x32xf32>
    %c0_177 = arith.constant 0 : index
    %c0_178 = arith.constant 0 : index
    %355 = vector.load %arg28[%c0_177, %c0_178] : memref<1x32xf32, #tpu.memory_space<vmem>>, vector<1x32xf32>
    %356 = vector.broadcast %355 : vector<1x32xf32> to vector<8x32xf32>
    %357 = arith.addf %354, %356 : vector<8x32xf32>
    %358 = arith.addf %357, %319 : vector<8x32xf32>
    %c0_179 = arith.constant 0 : index
    %c0_180 = arith.constant 0 : index
    %c0_181 = arith.constant 0 : index
    %359 = vector.load %arg29[%c0_179, %c0_180, %c0_181] : memref<1x8x32xf32, #tpu.memory_space<vmem>>, vector<1x8x32xf32>
    %360 = vector.shape_cast %359 : vector<1x8x32xf32> to vector<8x32xf32>
    %361 = vector.shape_cast %358 : vector<8x32xf32> to vector<1x8x32xf32>
    tpu.vector_store %arg29[%c0_179, %c0_180, %c0_181], %361 {strides = array<i32>} : memref<1x8x32xf32, #tpu.memory_space<vmem>>, vector<1x8x32xf32>,
    return
  }
  func.func @transform_0(%arg0: i32) -> (i32, i32, i32) {
    %c0_i32 = arith.constant 0 : i32
    %c0_i32_0 = arith.constant 0 : i32
    %c0_i32_1 = arith.constant 0 : i32
    return %arg0, %c0_i32, %c0_i32_0 : i32, i32, i32
  }
  func.func @transform_1(%arg0: i32) -> (i32, i32, i32) {
    %c0_i32 = arith.constant 0 : i32
    %c0_i32_0 = arith.constant 0 : i32
    %c0_i32_1 = arith.constant 0 : i32
    return %arg0, %c0_i32, %c0_i32_0 : i32, i32, i32
  }
  func.func @transform_2(%arg0: i32) -> (i32, i32) {
    %c0_i32 = arith.constant 0 : i32
    %c0_i32_0 = arith.constant 0 : i32
    %c0_i32_1 = arith.constant 0 : i32
    return %c0_i32, %c0_i32_0 : i32, i32
  }
  func.func @transform_3(%arg0: i32) -> (i32, i32) {
    %c0_i32 = arith.constant 0 : i32
    %c0_i32_0 = arith.constant 0 : i32
    %c0_i32_1 = arith.constant 0 : i32
    return %c0_i32, %c0_i32_0 : i32, i32
  }
  func.func @transform_4(%arg0: i32) -> (i32, i32, i32) {
    %c0_i32 = arith.constant 0 : i32
    %c0_i32_0 = arith.constant 0 : i32
    %c0_i32_1 = arith.constant 0 : i32
    %c0_i32_2 = arith.constant 0 : i32
    return %c0_i32, %c0_i32_0, %c0_i32_1 : i32, i32, i32
  }
  func.func @transform_5(%arg0: i32) -> (i32, i32) {
    %c0_i32 = arith.constant 0 : i32
    %c0_i32_0 = arith.constant 0 : i32
    %c0_i32_1 = arith.constant 0 : i32
    return %c0_i32, %c0_i32_0 : i32, i32
  }
  func.func @transform_6(%arg0: i32) -> (i32, i32) {
    %c0_i32 = arith.constant 0 : i32
    %c0_i32_0 = arith.constant 0 : i32
    %c0_i32_1 = arith.constant 0 : i32
    return %c0_i32, %c0_i32_0 : i32, i32
  }
  func.func @transform_7(%arg0: i32) -> (i32, i32) {
    %c0_i32 = arith.constant 0 : i32
    %c0_i32_0 = arith.constant 0 : i32
    %c0_i32_1 = arith.constant 0 : i32
    return %c0_i32, %c0_i32_0 : i32, i32
  }
  func.func @transform_8(%arg0: i32) -> (i32, i32, i32) {
    %c0_i32 = arith.constant 0 : i32
    %c0_i32_0 = arith.constant 0 : i32
    %c0_i32_1 = arith.constant 0 : i32
    %c0_i32_2 = arith.constant 0 : i32
    return %c0_i32, %c0_i32_0, %c0_i32_1 : i32, i32, i32
  }
  func.func @transform_9(%arg0: i32) -> (i32, i32) {
    %c0_i32 = arith.constant 0 : i32
    %c0_i32_0 = arith.constant 0 : i32
    %c0_i32_1 = arith.constant 0 : i32
    return %c0_i32, %c0_i32_0 : i32, i32
  }
  func.func @transform_10(%arg0: i32) -> (i32, i32) {
    %c0_i32 = arith.constant 0 : i32
    %c0_i32_0 = arith.constant 0 : i32
    %c0_i32_1 = arith.constant 0 : i32
    return %c0_i32, %c0_i32_0 : i32, i32
  }
  func.func @transform_11(%arg0: i32) -> (i32, i32) {
    %c0_i32 = arith.constant 0 : i32
    %c0_i32_0 = arith.constant 0 : i32
    %c0_i32_1 = arith.constant 0 : i32
    return %c0_i32, %c0_i32_0 : i32, i32
  }
  func.func @transform_12(%arg0: i32) -> (i32, i32) {
    %c0_i32 = arith.constant 0 : i32
    %c0_i32_0 = arith.constant 0 : i32
    %c0_i32_1 = arith.constant 0 : i32
    return %c0_i32, %c0_i32_0 : i32, i32
  }
  func.func @transform_13(%arg0: i32) -> (i32, i32) {
    %c0_i32 = arith.constant 0 : i32
    %c0_i32_0 = arith.constant 0 : i32
    %c0_i32_1 = arith.constant 0 : i32
    return %c0_i32, %c0_i32_0 : i32, i32
  }
  func.func @transform_14(%arg0: i32) -> (i32, i32) {
    %c0_i32 = arith.constant 0 : i32
    %c0_i32_0 = arith.constant 0 : i32
    %c0_i32_1 = arith.constant 0 : i32
    return %c0_i32, %c0_i32_0 : i32, i32
  }
  func.func @transform_15(%arg0: i32) -> (i32, i32) {
    %c0_i32 = arith.constant 0 : i32
    %c0_i32_0 = arith.constant 0 : i32
    %c0_i32_1 = arith.constant 0 : i32
    return %c0_i32, %c0_i32_0 : i32, i32
  }
  func.func @transform_16(%arg0: i32) -> (i32, i32) {
    %c0_i32 = arith.constant 0 : i32
    %c0_i32_0 = arith.constant 0 : i32
    %c0_i32_1 = arith.constant 0 : i32
    return %c0_i32, %c0_i32_0 : i32, i32
  }
  func.func @transform_17(%arg0: i32) -> (i32, i32) {
    %c0_i32 = arith.constant 0 : i32
    %c0_i32_0 = arith.constant 0 : i32
    %c0_i32_1 = arith.constant 0 : i32
    return %c0_i32, %c0_i32_0 : i32, i32
  }
  func.func @transform_18(%arg0: i32) -> (i32, i32) {
    %c0_i32 = arith.constant 0 : i32
    %c0_i32_0 = arith.constant 0 : i32
    %c0_i32_1 = arith.constant 0 : i32
    return %c0_i32, %c0_i32_0 : i32, i32
  }
  func.func @transform_19(%arg0: i32) -> (i32, i32) {
    %c0_i32 = arith.constant 0 : i32
    %c0_i32_0 = arith.constant 0 : i32
    %c0_i32_1 = arith.constant 0 : i32
    return %c0_i32, %c0_i32_0 : i32, i32
  }
  func.func @transform_20(%arg0: i32) -> (i32, i32) {
    %c0_i32 = arith.constant 0 : i32
    %c0_i32_0 = arith.constant 0 : i32
    %c0_i32_1 = arith.constant 0 : i32
    return %c0_i32, %c0_i32_0 : i32, i32
  }
  func.func @transform_21(%arg0: i32) -> (i32, i32) {
    %c0_i32 = arith.constant 0 : i32
    %c0_i32_0 = arith.constant 0 : i32
    %c0_i32_1 = arith.constant 0 : i32
    return %c0_i32, %c0_i32_0 : i32, i32
  }
  func.func @transform_22(%arg0: i32) -> (i32, i32) {
    %c0_i32 = arith.constant 0 : i32
    %c0_i32_0 = arith.constant 0 : i32
    %c0_i32_1 = arith.constant 0 : i32
    return %c0_i32, %c0_i32_0 : i32, i32
  }
  func.func @transform_23(%arg0: i32) -> (i32, i32) {
    %c0_i32 = arith.constant 0 : i32
    %c0_i32_0 = arith.constant 0 : i32
    %c0_i32_1 = arith.constant 0 : i32
    return %c0_i32, %c0_i32_0 : i32, i32
  }
  func.func @transform_24(%arg0: i32) -> (i32, i32) {
    %c0_i32 = arith.constant 0 : i32
    %c0_i32_0 = arith.constant 0 : i32
    %c0_i32_1 = arith.constant 0 : i32
    return %c0_i32, %c0_i32_0 : i32, i32
  }
  func.func @transform_25(%arg0: i32) -> (i32, i32) {
    %c0_i32 = arith.constant 0 : i32
    %c0_i32_0 = arith.constant 0 : i32
    %c0_i32_1 = arith.constant 0 : i32
    return %c0_i32, %c0_i32_0 : i32, i32
  }
  func.func @transform_26(%arg0: i32) -> (i32, i32) {
    %c0_i32 = arith.constant 0 : i32
    %c0_i32_0 = arith.constant 0 : i32
    %c0_i32_1 = arith.constant 0 : i32
    return %c0_i32, %c0_i32_0 : i32, i32
  }
  func.func @transform_27(%arg0: i32) -> (i32, i32) {
    %c0_i32 = arith.constant 0 : i32
    %c0_i32_0 = arith.constant 0 : i32
    %c0_i32_1 = arith.constant 0 : i32
    return %c0_i32, %c0_i32_0 : i32, i32
  }
  func.func @transform_28(%arg0: i32) -> (i32, i32, i32) {
    %c0_i32 = arith.constant 0 : i32
    %c0_i32_0 = arith.constant 0 : i32
    %c0_i32_1 = arith.constant 0 : i32
    return %arg0, %c0_i32, %c0_i32_0 : i32, i32, i32
  }
}

module attributes {stable_mosaic.version = 11 : i64} {
  func.func @_encoder_cell_kernel(%arg0: i32, %arg1: memref<1x8x32xf32, #tpu.memory_space<vmem>>, %arg2: memref<1x1x8xi32, #tpu.memory_space<vmem>>, %arg3: memref<1x32xf32, #tpu.memory_space<vmem>>, %arg4: memref<1x32xf32, #tpu.memory_space<vmem>>, %arg5: memref<3x32x64xf32, #tpu.memory_space<vmem>>, %arg6: memref<1x64xf32, #tpu.memory_space<vmem>>, %arg7: memref<1x32xf32, #tpu.memory_space<vmem>>, %arg8: memref<1x32xf32, #tpu.memory_space<vmem>>, %arg9: memref<3x32x128xf32, #tpu.memory_space<vmem>>, %arg10: memref<1x128xf32, #tpu.memory_space<vmem>>, %arg11: memref<1x64xf32, #tpu.memory_space<vmem>>, %arg12: memref<1x64xf32, #tpu.memory_space<vmem>>, %arg13: memref<9x64xf32, #tpu.memory_space<vmem>>, %arg14: memref<1x64xf32, #tpu.memory_space<vmem>>, %arg15: memref<64x32xf32, #tpu.memory_space<vmem>>, %arg16: memref<1x32xf32, #tpu.memory_space<vmem>>, %arg17: memref<1x32xf32, #tpu.memory_space<vmem>>, %arg18: memref<1x32xf32, #tpu.memory_space<vmem>>, %arg19: memref<32x96xf32, #tpu.memory_space<vmem>>, %arg20: memref<1x96xf32, #tpu.memory_space<vmem>>, %arg21: memref<32x32xf32, #tpu.memory_space<vmem>>, %arg22: memref<1x32xf32, #tpu.memory_space<vmem>>, %arg23: memref<1x32xf32, #tpu.memory_space<vmem>>, %arg24: memref<1x32xf32, #tpu.memory_space<vmem>>, %arg25: memref<32x64xf32, #tpu.memory_space<vmem>>, %arg26: memref<1x64xf32, #tpu.memory_space<vmem>>, %arg27: memref<64x32xf32, #tpu.memory_space<vmem>>, %arg28: memref<1x32xf32, #tpu.memory_space<vmem>>, %arg29: memref<1x8x32xf32, #tpu.memory_space<vmem>>, %arg30: memref<16x64xf32, #tpu.memory_space<vmem>>) attributes {dimension_semantics = [#tpu.dimension_semantics<parallel>], iteration_bounds = array<i64: 2>, scalar_prefetch = 0 : i64, scratch_operands = 1 : i64, tpu.core_type = #tpu.core_type<tc>, window_params = [{transform_indices = @transform_0, window_bounds = array<i64: 1, 8, 32>}, {transform_indices = @transform_1, window_bounds = array<i64: 1, 1, 8>}, {pipeline_mode = #tpu.pipeline_mode<synchronous>, transform_indices = @transform_2, window_bounds = array<i64: 1, 32>}, {pipeline_mode = #tpu.pipeline_mode<synchronous>, transform_indices = @transform_3, window_bounds = array<i64: 1, 32>}, {pipeline_mode = #tpu.pipeline_mode<synchronous>, transform_indices = @transform_4, window_bounds = array<i64: 3, 32, 64>}, {pipeline_mode = #tpu.pipeline_mode<synchronous>, transform_indices = @transform_5, window_bounds = array<i64: 1, 64>}, {pipeline_mode = #tpu.pipeline_mode<synchronous>, transform_indices = @transform_6, window_bounds = array<i64: 1, 32>}, {pipeline_mode = #tpu.pipeline_mode<synchronous>, transform_indices = @transform_7, window_bounds = array<i64: 1, 32>}, {pipeline_mode = #tpu.pipeline_mode<synchronous>, transform_indices = @transform_8, window_bounds = array<i64: 3, 32, 128>}, {pipeline_mode = #tpu.pipeline_mode<synchronous>, transform_indices = @transform_9, window_bounds = array<i64: 1, 128>}, {pipeline_mode = #tpu.pipeline_mode<synchronous>, transform_indices = @transform_10, window_bounds = array<i64: 1, 64>}, {pipeline_mode = #tpu.pipeline_mode<synchronous>, transform_indices = @transform_11, window_bounds = array<i64: 1, 64>}, {pipeline_mode = #tpu.pipeline_mode<synchronous>, transform_indices = @transform_12, window_bounds = array<i64: 9, 64>}, {pipeline_mode = #tpu.pipeline_mode<synchronous>, transform_indices = @transform_13, window_bounds = array<i64: 1, 64>}, {pipeline_mode = #tpu.pipeline_mode<synchronous>, transform_indices = @transform_14, window_bounds = array<i64: 64, 32>}, {pipeline_mode = #tpu.pipeline_mode<synchronous>, transform_indices = @transform_15, window_bounds = array<i64: 1, 32>}, {pipeline_mode = #tpu.pipeline_mode<synchronous>, transform_indices = @transform_16, window_bounds = array<i64: 1, 32>}, {pipeline_mode = #tpu.pipeline_mode<synchronous>, transform_indices = @transform_17, window_bounds = array<i64: 1, 32>}, {pipeline_mode = #tpu.pipeline_mode<synchronous>, transform_indices = @transform_18, window_bounds = array<i64: 32, 96>}, {pipeline_mode = #tpu.pipeline_mode<synchronous>, transform_indices = @transform_19, window_bounds = array<i64: 1, 96>}, {pipeline_mode = #tpu.pipeline_mode<synchronous>, transform_indices = @transform_20, window_bounds = array<i64: 32, 32>}, {pipeline_mode = #tpu.pipeline_mode<synchronous>, transform_indices = @transform_21, window_bounds = array<i64: 1, 32>}, {pipeline_mode = #tpu.pipeline_mode<synchronous>, transform_indices = @transform_22, window_bounds = array<i64: 1, 32>}, {pipeline_mode = #tpu.pipeline_mode<synchronous>, transform_indices = @transform_23, window_bounds = array<i64: 1, 32>}, {pipeline_mode = #tpu.pipeline_mode<synchronous>, transform_indices = @transform_24, window_bounds = array<i64: 32, 64>}, {pipeline_mode = #tpu.pipeline_mode<synchronous>, transform_indices = @transform_25, window_bounds = array<i64: 1, 64>}, {pipeline_mode = #tpu.pipeline_mode<synchronous>, transform_indices = @transform_26, window_bounds = array<i64: 64, 32>}, {pipeline_mode = #tpu.pipeline_mode<synchronous>, transform_indices = @transform_27, window_bounds = array<i64: 1, 32>}, {transform_indices = @transform_28, window_bounds = array<i64: 1, 8, 32>}]} {
    %cst = arith.constant 0.000000e+00 : f32
    %0 = vector.broadcast %cst : f32 to vector<16x64xf32>
    %c0 = arith.constant 0 : index
    %c0_0 = arith.constant 0 : index
    %1 = vector.load %arg30[%c0, %c0_0] : memref<16x64xf32, #tpu.memory_space<vmem>>, vector<16x64xf32>
    tpu.vector_store %arg30[%c0, %c0_0], %0 {strides = array<i32>} : memref<16x64xf32, #tpu.memory_space<vmem>>, vector<16x64xf32>,
    %c0_1 = arith.constant 0 : index
    %c0_2 = arith.constant 0 : index
    %c0_3 = arith.constant 0 : index
    %2 = vector.load %arg1[%c0_1, %c0_2, %c0_3] : memref<1x8x32xf32, #tpu.memory_space<vmem>>, vector<1x8x32xf32>
    %3 = vector.shape_cast %2 : vector<1x8x32xf32> to vector<8x32xf32>
    %cst_4 = arith.constant dense<0.000000e+00> : vector<8xf32>
    %4 = vector.multi_reduction <add>, %3, %cst_4 [1] : vector<8x32xf32> to vector<8xf32>
    %5 = vector.shape_cast %4 : vector<8xf32> to vector<8x1xf32>
    %cst_5 = arith.constant 3.200000e+01 : f32
    %6 = vector.broadcast %cst_5 : f32 to vector<8x1xf32>
    %7 = arith.divf %5, %6 : vector<8x1xf32>
    %8 = vector.broadcast %7 : vector<8x1xf32> to vector<8x32xf32>
    %9 = arith.subf %3, %8 : vector<8x32xf32>
    %10 = arith.mulf %9, %9 : vector<8x32xf32>
    %cst_6 = arith.constant dense<0.000000e+00> : vector<8xf32>
    %11 = vector.multi_reduction <add>, %10, %cst_6 [1] : vector<8x32xf32> to vector<8xf32>
    %12 = vector.shape_cast %11 : vector<8xf32> to vector<8x1xf32>
    %cst_7 = arith.constant 3.200000e+01 : f32
    %13 = vector.broadcast %cst_7 : f32 to vector<8x1xf32>
    %14 = arith.divf %12, %13 : vector<8x1xf32>
    %cst_8 = arith.constant 9.99999974E-6 : f32
    %15 = vector.broadcast %cst_8 : f32 to vector<8x1xf32>
    %16 = arith.addf %14, %15 : vector<8x1xf32>
    %17 = math.rsqrt %16 : vector<8x1xf32>
    %18 = vector.broadcast %17 : vector<8x1xf32> to vector<8x32xf32>
    %19 = arith.mulf %9, %18 : vector<8x32xf32>
    %c0_9 = arith.constant 0 : index
    %c0_10 = arith.constant 0 : index
    %20 = vector.load %arg3[%c0_9, %c0_10] : memref<1x32xf32, #tpu.memory_space<vmem>>, vector<1x32xf32>
    %21 = vector.broadcast %20 : vector<1x32xf32> to vector<8x32xf32>
    %22 = arith.mulf %19, %21 : vector<8x32xf32>
    %c0_11 = arith.constant 0 : index
    %c0_12 = arith.constant 0 : index
    %23 = vector.load %arg4[%c0_11, %c0_12] : memref<1x32xf32, #tpu.memory_space<vmem>>, vector<1x32xf32>
    %24 = vector.broadcast %23 : vector<1x32xf32> to vector<8x32xf32>
    %25 = arith.addf %22, %24 : vector<8x32xf32>
    %c4 = arith.constant 4 : index
    %c0_13 = arith.constant 0 : index
    %26 = vector.load %arg30[%c4, %c0_13] : memref<16x64xf32, #tpu.memory_space<vmem>>, vector<8x32xf32>
    tpu.vector_store %arg30[%c4, %c0_13], %25 {strides = array<i32>} : memref<16x64xf32, #tpu.memory_space<vmem>>, vector<8x32xf32>,
    %c3 = arith.constant 3 : index
    %c0_14 = arith.constant 0 : index
    %27 = vector.load %arg30[%c3, %c0_14] : memref<16x64xf32, #tpu.memory_space<vmem>>, vector<8x32xf32>
    %c0_15 = arith.constant 0 : index
    %c0_16 = arith.constant 0 : index
    %c0_17 = arith.constant 0 : index
    %28 = vector.load %arg5[%c0_15, %c0_16, %c0_17] : memref<3x32x64xf32, #tpu.memory_space<vmem>>, vector<1x32x64xf32>
    %29 = vector.shape_cast %28 : vector<1x32x64xf32> to vector<32x64xf32>
    %cst_18 = arith.constant dense<0.000000e+00> : vector<8x64xf32>
    %30 = tpu.matmul %27, %29, %cst_18 {dimension_numbers = #tpu.dot_dimension_numbers<[1], [0], [0], [1], [0, 0, 1, 1], [], []>} : vector<8x32xf32>, vector<32x64xf32>, vector<8x64xf32> -> vector<8x64xf32>
    %c1 = arith.constant 1 : index
    %c0_19 = arith.constant 0 : index
    %c0_20 = arith.constant 0 : index
    %31 = vector.load %arg5[%c1, %c0_19, %c0_20] : memref<3x32x64xf32, #tpu.memory_space<vmem>>, vector<1x32x64xf32>
    %32 = vector.shape_cast %31 : vector<1x32x64xf32> to vector<32x64xf32>
    %cst_21 = arith.constant dense<0.000000e+00> : vector<8x64xf32>
    %33 = tpu.matmul %25, %32, %cst_21 {dimension_numbers = #tpu.dot_dimension_numbers<[1], [0], [0], [1], [0, 0, 1, 1], [], []>} : vector<8x32xf32>, vector<32x64xf32>, vector<8x64xf32> -> vector<8x64xf32>
    %34 = arith.addf %30, %33 : vector<8x64xf32>
    %c5 = arith.constant 5 : index
    %c0_22 = arith.constant 0 : index
    %35 = vector.load %arg30[%c5, %c0_22] : memref<16x64xf32, #tpu.memory_space<vmem>>, vector<8x32xf32>
    %c2 = arith.constant 2 : index
    %c0_23 = arith.constant 0 : index
    %c0_24 = arith.constant 0 : index
    %36 = vector.load %arg5[%c2, %c0_23, %c0_24] : memref<3x32x64xf32, #tpu.memory_space<vmem>>, vector<1x32x64xf32>
    %37 = vector.shape_cast %36 : vector<1x32x64xf32> to vector<32x64xf32>
    %cst_25 = arith.constant dense<0.000000e+00> : vector<8x64xf32>
    %38 = tpu.matmul %35, %37, %cst_25 {dimension_numbers = #tpu.dot_dimension_numbers<[1], [0], [0], [1], [0, 0, 1, 1], [], []>} : vector<8x32xf32>, vector<32x64xf32>, vector<8x64xf32> -> vector<8x64xf32>
    %39 = arith.addf %34, %38 : vector<8x64xf32>
    %c0_26 = arith.constant 0 : index
    %c0_27 = arith.constant 0 : index
    %40 = vector.load %arg6[%c0_26, %c0_27] : memref<1x64xf32, #tpu.memory_space<vmem>>, vector<1x64xf32>
    %41 = vector.broadcast %40 : vector<1x64xf32> to vector<8x64xf32>
    %42 = arith.addf %39, %41 : vector<8x64xf32>
    %43 = vector.extract_strided_slice %42 {offsets = [0, 0], sizes = [8, 32], strides = [1, 1]} : vector<8x64xf32> to vector<8x32xf32>
    %44 = vector.extract_strided_slice %42 {offsets = [0, 32], sizes = [8, 32], strides = [1, 1]} : vector<8x64xf32> to vector<8x32xf32>
    %45 = arith.negf %44 : vector<8x32xf32>
    %46 = math.exp %45 : vector<8x32xf32>
    %cst_28 = arith.constant 1.000000e+00 : f32
    %47 = vector.broadcast %cst_28 : f32 to vector<8x32xf32>
    %48 = arith.addf %47, %46 : vector<8x32xf32>
    %49 = arith.divf %47, %48 : vector<8x32xf32>
    %50 = arith.mulf %43, %49 : vector<8x32xf32>
    %cst_29 = arith.constant dense<0.000000e+00> : vector<8xf32>
    %51 = vector.multi_reduction <add>, %50, %cst_29 [1] : vector<8x32xf32> to vector<8xf32>
    %52 = vector.shape_cast %51 : vector<8xf32> to vector<8x1xf32>
    %cst_30 = arith.constant 3.200000e+01 : f32
    %53 = vector.broadcast %cst_30 : f32 to vector<8x1xf32>
    %54 = arith.divf %52, %53 : vector<8x1xf32>
    %55 = vector.broadcast %54 : vector<8x1xf32> to vector<8x32xf32>
    %56 = arith.subf %50, %55 : vector<8x32xf32>
    %57 = arith.mulf %56, %56 : vector<8x32xf32>
    %cst_31 = arith.constant dense<0.000000e+00> : vector<8xf32>
    %58 = vector.multi_reduction <add>, %57, %cst_31 [1] : vector<8x32xf32> to vector<8xf32>
    %59 = vector.shape_cast %58 : vector<8xf32> to vector<8x1xf32>
    %cst_32 = arith.constant 3.200000e+01 : f32
    %60 = vector.broadcast %cst_32 : f32 to vector<8x1xf32>
    %61 = arith.divf %59, %60 : vector<8x1xf32>
    %cst_33 = arith.constant 9.99999974E-6 : f32
    %62 = vector.broadcast %cst_33 : f32 to vector<8x1xf32>
    %63 = arith.addf %61, %62 : vector<8x1xf32>
    %64 = math.rsqrt %63 : vector<8x1xf32>
    %65 = vector.broadcast %64 : vector<8x1xf32> to vector<8x32xf32>
    %66 = arith.mulf %56, %65 : vector<8x32xf32>
    %c0_34 = arith.constant 0 : index
    %c0_35 = arith.constant 0 : index
    %67 = vector.load %arg7[%c0_34, %c0_35] : memref<1x32xf32, #tpu.memory_space<vmem>>, vector<1x32xf32>
    %68 = vector.broadcast %67 : vector<1x32xf32> to vector<8x32xf32>
    %69 = arith.mulf %66, %68 : vector<8x32xf32>
    %c0_36 = arith.constant 0 : index
    %c0_37 = arith.constant 0 : index
    %70 = vector.load %arg8[%c0_36, %c0_37] : memref<1x32xf32, #tpu.memory_space<vmem>>, vector<1x32xf32>
    %71 = vector.broadcast %70 : vector<1x32xf32> to vector<8x32xf32>
    %72 = arith.addf %69, %71 : vector<8x32xf32>
    %c4_38 = arith.constant 4 : index
    %c0_39 = arith.constant 0 : index
    %73 = vector.load %arg30[%c4_38, %c0_39] : memref<16x64xf32, #tpu.memory_space<vmem>>, vector<8x32xf32>
    tpu.vector_store %arg30[%c4_38, %c0_39], %72 {strides = array<i32>} : memref<16x64xf32, #tpu.memory_space<vmem>>, vector<8x32xf32>,
    %c3_40 = arith.constant 3 : index
    %c0_41 = arith.constant 0 : index
    %74 = vector.load %arg30[%c3_40, %c0_41] : memref<16x64xf32, #tpu.memory_space<vmem>>, vector<8x32xf32>
    %c0_42 = arith.constant 0 : index
    %c0_43 = arith.constant 0 : index
    %c0_44 = arith.constant 0 : index
    %75 = vector.load %arg9[%c0_42, %c0_43, %c0_44] : memref<3x32x128xf32, #tpu.memory_space<vmem>>, vector<1x32x128xf32>
    %76 = vector.shape_cast %75 : vector<1x32x128xf32> to vector<32x128xf32>
    %cst_45 = arith.constant dense<0.000000e+00> : vector<8x128xf32>
    %77 = tpu.matmul %74, %76, %cst_45 {dimension_numbers = #tpu.dot_dimension_numbers<[1], [0], [0], [1], [0, 0, 1, 1], [], []>} : vector<8x32xf32>, vector<32x128xf32>, vector<8x128xf32> -> vector<8x128xf32>
    %c1_46 = arith.constant 1 : index
    %c0_47 = arith.constant 0 : index
    %c0_48 = arith.constant 0 : index
    %78 = vector.load %arg9[%c1_46, %c0_47, %c0_48] : memref<3x32x128xf32, #tpu.memory_space<vmem>>, vector<1x32x128xf32>
    %79 = vector.shape_cast %78 : vector<1x32x128xf32> to vector<32x128xf32>
    %cst_49 = arith.constant dense<0.000000e+00> : vector<8x128xf32>
    %80 = tpu.matmul %72, %79, %cst_49 {dimension_numbers = #tpu.dot_dimension_numbers<[1], [0], [0], [1], [0, 0, 1, 1], [], []>} : vector<8x32xf32>, vector<32x128xf32>, vector<8x128xf32> -> vector<8x128xf32>
    %81 = arith.addf %77, %80 : vector<8x128xf32>
    %c5_50 = arith.constant 5 : index
    %c0_51 = arith.constant 0 : index
    %82 = vector.load %arg30[%c5_50, %c0_51] : memref<16x64xf32, #tpu.memory_space<vmem>>, vector<8x32xf32>
    %c2_52 = arith.constant 2 : index
    %c0_53 = arith.constant 0 : index
    %c0_54 = arith.constant 0 : index
    %83 = vector.load %arg9[%c2_52, %c0_53, %c0_54] : memref<3x32x128xf32, #tpu.memory_space<vmem>>, vector<1x32x128xf32>
    %84 = vector.shape_cast %83 : vector<1x32x128xf32> to vector<32x128xf32>
    %cst_55 = arith.constant dense<0.000000e+00> : vector<8x128xf32>
    %85 = tpu.matmul %82, %84, %cst_55 {dimension_numbers = #tpu.dot_dimension_numbers<[1], [0], [0], [1], [0, 0, 1, 1], [], []>} : vector<8x32xf32>, vector<32x128xf32>, vector<8x128xf32> -> vector<8x128xf32>
    %86 = arith.addf %81, %85 : vector<8x128xf32>
    %c0_56 = arith.constant 0 : index
    %c0_57 = arith.constant 0 : index
    %87 = vector.load %arg10[%c0_56, %c0_57] : memref<1x128xf32, #tpu.memory_space<vmem>>, vector<1x128xf32>
    %88 = vector.broadcast %87 : vector<1x128xf32> to vector<8x128xf32>
    %89 = arith.addf %86, %88 : vector<8x128xf32>
    %cst_58 = arith.constant 0.000000e+00 : f32
    %90 = vector.broadcast %cst_58 : f32 to vector<8x128xf32>
    %91 = arith.maximumf %89, %90 : vector<8x128xf32>
    %92 = tpu.iota {dimensions = array<i32: 1>} : vector<1x64xi32>
    %c16_i32 = arith.constant 16 : i32
    %93 = vector.broadcast %c16_i32 : i32 to vector<1x64xi32>
    %94 = arith.cmpi slt, %92, %93 : vector<1x64xi32>
    %cst_59 = arith.constant 0.000000e+00 : f32
    %cst_60 = arith.constant 0.000000e+00 : f32
    %95 = vector.broadcast %cst_59 : f32 to vector<1x64xf32>
    %96 = vector.broadcast %cst_60 : f32 to vector<1x64xf32>
    %97 = arith.select %94, %95, %96 : vector<1x64xi1>, vector<1x64xf32>
    %98 = vector.extract_strided_slice %91 {offsets = [0, 0], sizes = [8, 64], strides = [1, 1]} : vector<8x128xf32> to vector<8x64xf32>
    %99 = vector.extract_strided_slice %91 {offsets = [0, 64], sizes = [8, 64], strides = [1, 1]} : vector<8x128xf32> to vector<8x64xf32>
    %100 = arith.addf %98, %99 : vector<8x64xf32>
    %101 = vector.broadcast %97 : vector<1x64xf32> to vector<8x64xf32>
    %102 = arith.addf %100, %101 : vector<8x64xf32>
    %cst_61 = arith.constant dense<0.000000e+00> : vector<8xf32>
    %103 = vector.multi_reduction <add>, %102, %cst_61 [1] : vector<8x64xf32> to vector<8xf32>
    %104 = vector.shape_cast %103 : vector<8xf32> to vector<8x1xf32>
    %cst_62 = arith.constant 6.400000e+01 : f32
    %105 = vector.broadcast %cst_62 : f32 to vector<8x1xf32>
    %106 = arith.divf %104, %105 : vector<8x1xf32>
    %107 = vector.broadcast %106 : vector<8x1xf32> to vector<8x64xf32>
    %108 = arith.subf %102, %107 : vector<8x64xf32>
    %109 = arith.mulf %108, %108 : vector<8x64xf32>
    %cst_63 = arith.constant dense<0.000000e+00> : vector<8xf32>
    %110 = vector.multi_reduction <add>, %109, %cst_63 [1] : vector<8x64xf32> to vector<8xf32>
    %111 = vector.shape_cast %110 : vector<8xf32> to vector<8x1xf32>
    %cst_64 = arith.constant 6.400000e+01 : f32
    %112 = vector.broadcast %cst_64 : f32 to vector<8x1xf32>
    %113 = arith.divf %111, %112 : vector<8x1xf32>
    %cst_65 = arith.constant 9.99999974E-6 : f32
    %114 = vector.broadcast %cst_65 : f32 to vector<8x1xf32>
    %115 = arith.addf %113, %114 : vector<8x1xf32>
    %116 = math.rsqrt %115 : vector<8x1xf32>
    %117 = vector.broadcast %116 : vector<8x1xf32> to vector<8x64xf32>
    %118 = arith.mulf %108, %117 : vector<8x64xf32>
    %c0_66 = arith.constant 0 : index
    %c0_67 = arith.constant 0 : index
    %119 = vector.load %arg11[%c0_66, %c0_67] : memref<1x64xf32, #tpu.memory_space<vmem>>, vector<1x64xf32>
    %120 = vector.broadcast %119 : vector<1x64xf32> to vector<8x64xf32>
    %121 = arith.mulf %118, %120 : vector<8x64xf32>
    %c0_68 = arith.constant 0 : index
    %c0_69 = arith.constant 0 : index
    %122 = vector.load %arg12[%c0_68, %c0_69] : memref<1x64xf32, #tpu.memory_space<vmem>>, vector<1x64xf32>
    %123 = vector.broadcast %122 : vector<1x64xf32> to vector<8x64xf32>
    %124 = arith.addf %121, %123 : vector<8x64xf32>
    %c4_70 = arith.constant 4 : index
    %c0_71 = arith.constant 0 : index
    %125 = vector.load %arg30[%c4_70, %c0_71] : memref<16x64xf32, #tpu.memory_space<vmem>>, vector<8x64xf32>
    tpu.vector_store %arg30[%c4_70, %c0_71], %124 {strides = array<i32>} : memref<16x64xf32, #tpu.memory_space<vmem>>, vector<8x64xf32>,
    %c0_72 = arith.constant 0 : index
    %c0_73 = arith.constant 0 : index
    %126 = vector.load %arg14[%c0_72, %c0_73] : memref<1x64xf32, #tpu.memory_space<vmem>>, vector<1x64xf32>
    %c4_74 = arith.constant 4 : index
    %c0_75 = arith.constant 0 : index
    %127 = vector.load %arg13[%c4_74, %c0_75] : memref<9x64xf32, #tpu.memory_space<vmem>>, vector<1x64xf32>
    %128 = vector.broadcast %127 : vector<1x64xf32> to vector<8x64xf32>
    %129 = arith.mulf %124, %128 : vector<8x64xf32>
    %130 = vector.broadcast %126 : vector<1x64xf32> to vector<8x64xf32>
    %131 = arith.addf %130, %129 : vector<8x64xf32>
    %c0_76 = arith.constant 0 : index
    %c0_77 = arith.constant 0 : index
    %132 = vector.load %arg30[%c0_76, %c0_77] : memref<16x64xf32, #tpu.memory_space<vmem>>, vector<8x64xf32>
    %c0_78 = arith.constant 0 : index
    %c0_79 = arith.constant 0 : index
    %133 = vector.load %arg13[%c0_78, %c0_79] : memref<9x64xf32, #tpu.memory_space<vmem>>, vector<1x64xf32>
    %134 = vector.broadcast %133 : vector<1x64xf32> to vector<8x64xf32>
    %135 = arith.mulf %132, %134 : vector<8x64xf32>
    %136 = arith.addf %131, %135 : vector<8x64xf32>
    %c1_80 = arith.constant 1 : index
    %c0_81 = arith.constant 0 : index
    %137 = vector.load %arg30[%c1_80, %c0_81] : memref<16x64xf32, #tpu.memory_space<vmem>>, vector<8x64xf32>
    %c1_82 = arith.constant 1 : index
    %c0_83 = arith.constant 0 : index
    %138 = vector.load %arg13[%c1_82, %c0_83] : memref<9x64xf32, #tpu.memory_space<vmem>>, vector<1x64xf32>
    %139 = vector.broadcast %138 : vector<1x64xf32> to vector<8x64xf32>
    %140 = arith.mulf %137, %139 : vector<8x64xf32>
    %141 = arith.addf %136, %140 : vector<8x64xf32>
    %c2_84 = arith.constant 2 : index
    %c0_85 = arith.constant 0 : index
    %142 = vector.load %arg30[%c2_84, %c0_85] : memref<16x64xf32, #tpu.memory_space<vmem>>, vector<8x64xf32>
    %c2_86 = arith.constant 2 : index
    %c0_87 = arith.constant 0 : index
    %143 = vector.load %arg13[%c2_86, %c0_87] : memref<9x64xf32, #tpu.memory_space<vmem>>, vector<1x64xf32>
    %144 = vector.broadcast %143 : vector<1x64xf32> to vector<8x64xf32>
    %145 = arith.mulf %142, %144 : vector<8x64xf32>
    %146 = arith.addf %141, %145 : vector<8x64xf32>
    %c3_88 = arith.constant 3 : index
    %c0_89 = arith.constant 0 : index
    %147 = vector.load %arg30[%c3_88, %c0_89] : memref<16x64xf32, #tpu.memory_space<vmem>>, vector<8x64xf32>
    %c3_90 = arith.constant 3 : index
    %c0_91 = arith.constant 0 : index
    %148 = vector.load %arg13[%c3_90, %c0_91] : memref<9x64xf32, #tpu.memory_space<vmem>>, vector<1x64xf32>
    %149 = vector.broadcast %148 : vector<1x64xf32> to vector<8x64xf32>
    %150 = arith.mulf %147, %149 : vector<8x64xf32>
    %151 = arith.addf %146, %150 : vector<8x64xf32>
    %c5_92 = arith.constant 5 : index
    %c0_93 = arith.constant 0 : index
    %152 = vector.load %arg30[%c5_92, %c0_93] : memref<16x64xf32, #tpu.memory_space<vmem>>, vector<8x64xf32>
    %c5_94 = arith.constant 5 : index
    %c0_95 = arith.constant 0 : index
    %153 = vector.load %arg13[%c5_94, %c0_95] : memref<9x64xf32, #tpu.memory_space<vmem>>, vector<1x64xf32>
    %154 = vector.broadcast %153 : vector<1x64xf32> to vector<8x64xf32>
    %155 = arith.mulf %152, %154 : vector<8x64xf32>
    %156 = arith.addf %151, %155 : vector<8x64xf32>
    %c6 = arith.constant 6 : index
    %c0_96 = arith.constant 0 : index
    %157 = vector.load %arg30[%c6, %c0_96] : memref<16x64xf32, #tpu.memory_space<vmem>>, vector<8x64xf32>
    %c6_97 = arith.constant 6 : index
    %c0_98 = arith.constant 0 : index
    %158 = vector.load %arg13[%c6_97, %c0_98] : memref<9x64xf32, #tpu.memory_space<vmem>>, vector<1x64xf32>
    %159 = vector.broadcast %158 : vector<1x64xf32> to vector<8x64xf32>
    %160 = arith.mulf %157, %159 : vector<8x64xf32>
    %161 = arith.addf %156, %160 : vector<8x64xf32>
    %c7 = arith.constant 7 : index
    %c0_99 = arith.constant 0 : index
    %162 = vector.load %arg30[%c7, %c0_99] : memref<16x64xf32, #tpu.memory_space<vmem>>, vector<8x64xf32>
    %c7_100 = arith.constant 7 : index
    %c0_101 = arith.constant 0 : index
    %163 = vector.load %arg13[%c7_100, %c0_101] : memref<9x64xf32, #tpu.memory_space<vmem>>, vector<1x64xf32>
    %164 = vector.broadcast %163 : vector<1x64xf32> to vector<8x64xf32>
    %165 = arith.mulf %162, %164 : vector<8x64xf32>
    %166 = arith.addf %161, %165 : vector<8x64xf32>
    %c8 = arith.constant 8 : index
    %c0_102 = arith.constant 0 : index
    %167 = vector.load %arg30[%c8, %c0_102] : memref<16x64xf32, #tpu.memory_space<vmem>>, vector<8x64xf32>
    %c8_103 = arith.constant 8 : index
    %c0_104 = arith.constant 0 : index
    %168 = vector.load %arg13[%c8_103, %c0_104] : memref<9x64xf32, #tpu.memory_space<vmem>>, vector<1x64xf32>
    %169 = vector.broadcast %168 : vector<1x64xf32> to vector<8x64xf32>
    %170 = arith.mulf %167, %169 : vector<8x64xf32>
    %171 = arith.addf %166, %170 : vector<8x64xf32>
    %c0_105 = arith.constant 0 : index
    %c0_106 = arith.constant 0 : index
    %172 = vector.load %arg15[%c0_105, %c0_106] : memref<64x32xf32, #tpu.memory_space<vmem>>, vector<64x32xf32>
    %cst_107 = arith.constant dense<0.000000e+00> : vector<8x32xf32>
    %173 = tpu.matmul %171, %172, %cst_107 {dimension_numbers = #tpu.dot_dimension_numbers<[1], [0], [0], [1], [0, 0, 1, 1], [], []>} : vector<8x64xf32>, vector<64x32xf32>, vector<8x32xf32> -> vector<8x32xf32>
    %c0_108 = arith.constant 0 : index
    %c0_109 = arith.constant 0 : index
    %174 = vector.load %arg16[%c0_108, %c0_109] : memref<1x32xf32, #tpu.memory_space<vmem>>, vector<1x32xf32>
    %175 = vector.broadcast %174 : vector<1x32xf32> to vector<8x32xf32>
    %176 = arith.addf %173, %175 : vector<8x32xf32>
    %177 = arith.addf %176, %50 : vector<8x32xf32>
    %cst_110 = arith.constant dense<0.000000e+00> : vector<8xf32>
    %178 = vector.multi_reduction <add>, %177, %cst_110 [1] : vector<8x32xf32> to vector<8xf32>
    %179 = vector.shape_cast %178 : vector<8xf32> to vector<8x1xf32>
    %cst_111 = arith.constant 3.200000e+01 : f32
    %180 = vector.broadcast %cst_111 : f32 to vector<8x1xf32>
    %181 = arith.divf %179, %180 : vector<8x1xf32>
    %182 = vector.broadcast %181 : vector<8x1xf32> to vector<8x32xf32>
    %183 = arith.subf %177, %182 : vector<8x32xf32>
    %184 = arith.mulf %183, %183 : vector<8x32xf32>
    %cst_112 = arith.constant dense<0.000000e+00> : vector<8xf32>
    %185 = vector.multi_reduction <add>, %184, %cst_112 [1] : vector<8x32xf32> to vector<8xf32>
    %186 = vector.shape_cast %185 : vector<8xf32> to vector<8x1xf32>
    %cst_113 = arith.constant 3.200000e+01 : f32
    %187 = vector.broadcast %cst_113 : f32 to vector<8x1xf32>
    %188 = arith.divf %186, %187 : vector<8x1xf32>
    %cst_114 = arith.constant 9.99999974E-6 : f32
    %189 = vector.broadcast %cst_114 : f32 to vector<8x1xf32>
    %190 = arith.addf %188, %189 : vector<8x1xf32>
    %191 = math.rsqrt %190 : vector<8x1xf32>
    %192 = vector.broadcast %191 : vector<8x1xf32> to vector<8x32xf32>
    %193 = arith.mulf %183, %192 : vector<8x32xf32>
    %c0_115 = arith.constant 0 : index
    %c0_116 = arith.constant 0 : index
    %194 = vector.load %arg17[%c0_115, %c0_116] : memref<1x32xf32, #tpu.memory_space<vmem>>, vector<1x32xf32>
    %195 = vector.broadcast %194 : vector<1x32xf32> to vector<8x32xf32>
    %196 = arith.mulf %193, %195 : vector<8x32xf32>
    %c0_117 = arith.constant 0 : index
    %c0_118 = arith.constant 0 : index
    %197 = vector.load %arg18[%c0_117, %c0_118] : memref<1x32xf32, #tpu.memory_space<vmem>>, vector<1x32xf32>
    %198 = vector.broadcast %197 : vector<1x32xf32> to vector<8x32xf32>
    %199 = arith.addf %196, %198 : vector<8x32xf32>
    %c0_119 = arith.constant 0 : index
    %c0_120 = arith.constant 0 : index
    %200 = vector.load %arg19[%c0_119, %c0_120] : memref<32x96xf32, #tpu.memory_space<vmem>>, vector<32x96xf32>
    %cst_121 = arith.constant dense<0.000000e+00> : vector<8x96xf32>
    %201 = tpu.matmul %199, %200, %cst_121 {dimension_numbers = #tpu.dot_dimension_numbers<[1], [0], [0], [1], [0, 0, 1, 1], [], []>} : vector<8x32xf32>, vector<32x96xf32>, vector<8x96xf32> -> vector<8x96xf32>
    %c0_122 = arith.constant 0 : index
    %c0_123 = arith.constant 0 : index
    %202 = vector.load %arg20[%c0_122, %c0_123] : memref<1x96xf32, #tpu.memory_space<vmem>>, vector<1x96xf32>
    %203 = vector.broadcast %202 : vector<1x96xf32> to vector<8x96xf32>
    %204 = arith.addf %201, %203 : vector<8x96xf32>
    %205 = vector.extract_strided_slice %204 {offsets = [0, 64], sizes = [8, 32], strides = [1, 1]} : vector<8x96xf32> to vector<8x32xf32>
    %c0_124 = arith.constant 0 : index
    %c0_125 = arith.constant 0 : index
    %c0_126 = arith.constant 0 : index
    %206 = vector.load %arg2[%c0_124, %c0_125, %c0_126] : memref<1x1x8xi32, #tpu.memory_space<vmem>>, vector<1x1x8xi32>
    %207 = vector.shape_cast %206 : vector<1x1x8xi32> to vector<1x8xi32>
    %c0_i32 = arith.constant 0 : i32
    %208 = vector.broadcast %c0_i32 : i32 to vector<1x8xi32>
    %209 = arith.cmpi ne, %207, %208 : vector<1x8xi32>
    %cst_127 = arith.constant 0.000000e+00 : f32
    %cst_128 = arith.constant -1.000000e+09 : f32
    %210 = vector.broadcast %cst_127 : f32 to vector<1x8xf32>
    %211 = vector.broadcast %cst_128 : f32 to vector<1x8xf32>
    %212 = arith.select %209, %210, %211 : vector<1x8xi1>, vector<1x8xf32>
    %213 = tpu.iota {dimensions = array<i32: 1>} : vector<8x32xi32>
    %cst_129 = arith.constant 0.000000e+00 : f32
    %214 = vector.broadcast %cst_129 : f32 to vector<8x32xf32>
    %215 = vector.extract_strided_slice %204 {offsets = [0, 0], sizes = [8, 8], strides = [1, 1]} : vector<8x96xf32> to vector<8x8xf32>
    %216 = vector.extract_strided_slice %204 {offsets = [0, 32], sizes = [8, 8], strides = [1, 1]} : vector<8x96xf32> to vector<8x8xf32>
    %cst_130 = arith.constant dense<0.000000e+00> : vector<8x8xf32>
    %217 = tpu.matmul %215, %216, %cst_130 {dimension_numbers = #tpu.dot_dimension_numbers<[1], [1], [0], [0], [0, 0, 1, 0], [], []>} : vector<8x8xf32>, vector<8x8xf32>, vector<8x8xf32> -> vector<8x8xf32>
    %cst_131 = arith.constant 0.353553385 : f32
    %218 = vector.broadcast %cst_131 : f32 to vector<8x8xf32>
    %219 = arith.mulf %217, %218 : vector<8x8xf32>
    %220 = vector.broadcast %212 : vector<1x8xf32> to vector<8x8xf32>
    %221 = arith.addf %219, %220 : vector<8x8xf32>
    %cst_132 = arith.constant dense<0xFF800000> : vector<8xf32>
    %222 = vector.multi_reduction <maximumf>, %221, %cst_132 [1] : vector<8x8xf32> to vector<8xf32>
    %223 = vector.shape_cast %222 : vector<8xf32> to vector<8x1xf32>
    %224 = vector.broadcast %223 : vector<8x1xf32> to vector<8x8xf32>
    %225 = arith.subf %221, %224 : vector<8x8xf32>
    %226 = math.exp %225 : vector<8x8xf32>
    %cst_133 = arith.constant dense<0.000000e+00> : vector<8xf32>
    %227 = vector.multi_reduction <add>, %226, %cst_133 [1] : vector<8x8xf32> to vector<8xf32>
    %228 = vector.shape_cast %227 : vector<8xf32> to vector<8x1xf32>
    %229 = tpu.reciprocal %228 {approx = true} : vector<8x1xf32> -> vector<8x1xf32>
    %230 = vector.broadcast %229 : vector<8x1xf32> to vector<8x8xf32>
    %231 = arith.mulf %226, %230 : vector<8x8xf32>
    %c0_i32_134 = arith.constant 0 : i32
    %232 = vector.broadcast %c0_i32_134 : i32 to vector<8x32xi32>
    %233 = arith.cmpi sge, %213, %232 : vector<8x32xi32>
    %c8_i32 = arith.constant 8 : i32
    %234 = vector.broadcast %c8_i32 : i32 to vector<8x32xi32>
    %235 = arith.cmpi slt, %213, %234 : vector<8x32xi32>
    %236 = arith.andi %233, %235 : vector<8x32xi1>
    %cst_135 = arith.constant 0.000000e+00 : f32
    %237 = vector.broadcast %cst_135 : f32 to vector<8x32xf32>
    %238 = arith.select %236, %205, %237 : vector<8x32xi1>, vector<8x32xf32>
    %cst_136 = arith.constant dense<0.000000e+00> : vector<8x32xf32>
    %239 = tpu.matmul %231, %238, %cst_136 {dimension_numbers = #tpu.dot_dimension_numbers<[1], [0], [0], [1], [0, 0, 1, 1], [], []>} : vector<8x8xf32>, vector<8x32xf32>, vector<8x32xf32> -> vector<8x32xf32>
    %240 = arith.addf %214, %239 : vector<8x32xf32>
    %241 = vector.extract_strided_slice %204 {offsets = [0, 8], sizes = [8, 8], strides = [1, 1]} : vector<8x96xf32> to vector<8x8xf32>
    %242 = vector.extract_strided_slice %204 {offsets = [0, 40], sizes = [8, 8], strides = [1, 1]} : vector<8x96xf32> to vector<8x8xf32>
    %cst_137 = arith.constant dense<0.000000e+00> : vector<8x8xf32>
    %243 = tpu.matmul %241, %242, %cst_137 {dimension_numbers = #tpu.dot_dimension_numbers<[1], [1], [0], [0], [0, 0, 1, 0], [], []>} : vector<8x8xf32>, vector<8x8xf32>, vector<8x8xf32> -> vector<8x8xf32>
    %cst_138 = arith.constant 0.353553385 : f32
    %244 = vector.broadcast %cst_138 : f32 to vector<8x8xf32>
    %245 = arith.mulf %243, %244 : vector<8x8xf32>
    %246 = vector.broadcast %212 : vector<1x8xf32> to vector<8x8xf32>
    %247 = arith.addf %245, %246 : vector<8x8xf32>
    %cst_139 = arith.constant dense<0xFF800000> : vector<8xf32>
    %248 = vector.multi_reduction <maximumf>, %247, %cst_139 [1] : vector<8x8xf32> to vector<8xf32>
    %249 = vector.shape_cast %248 : vector<8xf32> to vector<8x1xf32>
    %250 = vector.broadcast %249 : vector<8x1xf32> to vector<8x8xf32>
    %251 = arith.subf %247, %250 : vector<8x8xf32>
    %252 = math.exp %251 : vector<8x8xf32>
    %cst_140 = arith.constant dense<0.000000e+00> : vector<8xf32>
    %253 = vector.multi_reduction <add>, %252, %cst_140 [1] : vector<8x8xf32> to vector<8xf32>
    %254 = vector.shape_cast %253 : vector<8xf32> to vector<8x1xf32>
    %255 = tpu.reciprocal %254 {approx = true} : vector<8x1xf32> -> vector<8x1xf32>
    %256 = vector.broadcast %255 : vector<8x1xf32> to vector<8x8xf32>
    %257 = arith.mulf %252, %256 : vector<8x8xf32>
    %c8_i32_141 = arith.constant 8 : i32
    %258 = vector.broadcast %c8_i32_141 : i32 to vector<8x32xi32>
    %259 = arith.cmpi sge, %213, %258 : vector<8x32xi32>
    %c16_i32_142 = arith.constant 16 : i32
    %260 = vector.broadcast %c16_i32_142 : i32 to vector<8x32xi32>
    %261 = arith.cmpi slt, %213, %260 : vector<8x32xi32>
    %262 = arith.andi %259, %261 : vector<8x32xi1>
    %cst_143 = arith.constant 0.000000e+00 : f32
    %263 = vector.broadcast %cst_143 : f32 to vector<8x32xf32>
    %264 = arith.select %262, %205, %263 : vector<8x32xi1>, vector<8x32xf32>
    %cst_144 = arith.constant dense<0.000000e+00> : vector<8x32xf32>
    %265 = tpu.matmul %257, %264, %cst_144 {dimension_numbers = #tpu.dot_dimension_numbers<[1], [0], [0], [1], [0, 0, 1, 1], [], []>} : vector<8x8xf32>, vector<8x32xf32>, vector<8x32xf32> -> vector<8x32xf32>
    %266 = arith.addf %240, %265 : vector<8x32xf32>
    %267 = vector.extract_strided_slice %204 {offsets = [0, 16], sizes = [8, 8], strides = [1, 1]} : vector<8x96xf32> to vector<8x8xf32>
    %268 = vector.extract_strided_slice %204 {offsets = [0, 48], sizes = [8, 8], strides = [1, 1]} : vector<8x96xf32> to vector<8x8xf32>
    %cst_145 = arith.constant dense<0.000000e+00> : vector<8x8xf32>
    %269 = tpu.matmul %267, %268, %cst_145 {dimension_numbers = #tpu.dot_dimension_numbers<[1], [1], [0], [0], [0, 0, 1, 0], [], []>} : vector<8x8xf32>, vector<8x8xf32>, vector<8x8xf32> -> vector<8x8xf32>
    %cst_146 = arith.constant 0.353553385 : f32
    %270 = vector.broadcast %cst_146 : f32 to vector<8x8xf32>
    %271 = arith.mulf %269, %270 : vector<8x8xf32>
    %272 = vector.broadcast %212 : vector<1x8xf32> to vector<8x8xf32>
    %273 = arith.addf %271, %272 : vector<8x8xf32>
    %cst_147 = arith.constant dense<0xFF800000> : vector<8xf32>
    %274 = vector.multi_reduction <maximumf>, %273, %cst_147 [1] : vector<8x8xf32> to vector<8xf32>
    %275 = vector.shape_cast %274 : vector<8xf32> to vector<8x1xf32>
    %276 = vector.broadcast %275 : vector<8x1xf32> to vector<8x8xf32>
    %277 = arith.subf %273, %276 : vector<8x8xf32>
    %278 = math.exp %277 : vector<8x8xf32>
    %cst_148 = arith.constant dense<0.000000e+00> : vector<8xf32>
    %279 = vector.multi_reduction <add>, %278, %cst_148 [1] : vector<8x8xf32> to vector<8xf32>
    %280 = vector.shape_cast %279 : vector<8xf32> to vector<8x1xf32>
    %281 = tpu.reciprocal %280 {approx = true} : vector<8x1xf32> -> vector<8x1xf32>
    %282 = vector.broadcast %281 : vector<8x1xf32> to vector<8x8xf32>
    %283 = arith.mulf %278, %282 : vector<8x8xf32>
    %c16_i32_149 = arith.constant 16 : i32
    %284 = vector.broadcast %c16_i32_149 : i32 to vector<8x32xi32>
    %285 = arith.cmpi sge, %213, %284 : vector<8x32xi32>
    %c24_i32 = arith.constant 24 : i32
    %286 = vector.broadcast %c24_i32 : i32 to vector<8x32xi32>
    %287 = arith.cmpi slt, %213, %286 : vector<8x32xi32>
    %288 = arith.andi %285, %287 : vector<8x32xi1>
    %cst_150 = arith.constant 0.000000e+00 : f32
    %289 = vector.broadcast %cst_150 : f32 to vector<8x32xf32>
    %290 = arith.select %288, %205, %289 : vector<8x32xi1>, vector<8x32xf32>
    %cst_151 = arith.constant dense<0.000000e+00> : vector<8x32xf32>
    %291 = tpu.matmul %283, %290, %cst_151 {dimension_numbers = #tpu.dot_dimension_numbers<[1], [0], [0], [1], [0, 0, 1, 1], [], []>} : vector<8x8xf32>, vector<8x32xf32>, vector<8x32xf32> -> vector<8x32xf32>
    %292 = arith.addf %266, %291 : vector<8x32xf32>
    %293 = vector.extract_strided_slice %204 {offsets = [0, 24], sizes = [8, 8], strides = [1, 1]} : vector<8x96xf32> to vector<8x8xf32>
    %294 = vector.extract_strided_slice %204 {offsets = [0, 56], sizes = [8, 8], strides = [1, 1]} : vector<8x96xf32> to vector<8x8xf32>
    %cst_152 = arith.constant dense<0.000000e+00> : vector<8x8xf32>
    %295 = tpu.matmul %293, %294, %cst_152 {dimension_numbers = #tpu.dot_dimension_numbers<[1], [1], [0], [0], [0, 0, 1, 0], [], []>} : vector<8x8xf32>, vector<8x8xf32>, vector<8x8xf32> -> vector<8x8xf32>
    %cst_153 = arith.constant 0.353553385 : f32
    %296 = vector.broadcast %cst_153 : f32 to vector<8x8xf32>
    %297 = arith.mulf %295, %296 : vector<8x8xf32>
    %298 = vector.broadcast %212 : vector<1x8xf32> to vector<8x8xf32>
    %299 = arith.addf %297, %298 : vector<8x8xf32>
    %cst_154 = arith.constant dense<0xFF800000> : vector<8xf32>
    %300 = vector.multi_reduction <maximumf>, %299, %cst_154 [1] : vector<8x8xf32> to vector<8xf32>
    %301 = vector.shape_cast %300 : vector<8xf32> to vector<8x1xf32>
    %302 = vector.broadcast %301 : vector<8x1xf32> to vector<8x8xf32>
    %303 = arith.subf %299, %302 : vector<8x8xf32>
    %304 = math.exp %303 : vector<8x8xf32>
    %cst_155 = arith.constant dense<0.000000e+00> : vector<8xf32>
    %305 = vector.multi_reduction <add>, %304, %cst_155 [1] : vector<8x8xf32> to vector<8xf32>
    %306 = vector.shape_cast %305 : vector<8xf32> to vector<8x1xf32>
    %307 = tpu.reciprocal %306 {approx = true} : vector<8x1xf32> -> vector<8x1xf32>
    %308 = vector.broadcast %307 : vector<8x1xf32> to vector<8x8xf32>
    %309 = arith.mulf %304, %308 : vector<8x8xf32>
    %c24_i32_156 = arith.constant 24 : i32
    %310 = vector.broadcast %c24_i32_156 : i32 to vector<8x32xi32>
    %311 = arith.cmpi sge, %213, %310 : vector<8x32xi32>
    %c32_i32 = arith.constant 32 : i32
    %312 = vector.broadcast %c32_i32 : i32 to vector<8x32xi32>
    %313 = arith.cmpi slt, %213, %312 : vector<8x32xi32>
    %314 = arith.andi %311, %313 : vector<8x32xi1>
    %cst_157 = arith.constant 0.000000e+00 : f32
    %315 = vector.broadcast %cst_157 : f32 to vector<8x32xf32>
    %316 = arith.select %314, %205, %315 : vector<8x32xi1>, vector<8x32xf32>
    %cst_158 = arith.constant dense<0.000000e+00> : vector<8x32xf32>
    %317 = tpu.matmul %309, %316, %cst_158 {dimension_numbers = #tpu.dot_dimension_numbers<[1], [0], [0], [1], [0, 0, 1, 1], [], []>} : vector<8x8xf32>, vector<8x32xf32>, vector<8x32xf32> -> vector<8x32xf32>
    %318 = arith.addf %292, %317 : vector<8x32xf32>
    %319 = arith.addf %199, %318 : vector<8x32xf32>
    %cst_159 = arith.constant dense<0.000000e+00> : vector<8xf32>
    %320 = vector.multi_reduction <add>, %319, %cst_159 [1] : vector<8x32xf32> to vector<8xf32>
    %321 = vector.shape_cast %320 : vector<8xf32> to vector<8x1xf32>
    %cst_160 = arith.constant 3.200000e+01 : f32
    %322 = vector.broadcast %cst_160 : f32 to vector<8x1xf32>
    %323 = arith.divf %321, %322 : vector<8x1xf32>
    %324 = vector.broadcast %323 : vector<8x1xf32> to vector<8x32xf32>
    %325 = arith.subf %319, %324 : vector<8x32xf32>
    %326 = arith.mulf %325, %325 : vector<8x32xf32>
    %cst_161 = arith.constant dense<0.000000e+00> : vector<8xf32>
    %327 = vector.multi_reduction <add>, %326, %cst_161 [1] : vector<8x32xf32> to vector<8xf32>
    %328 = vector.shape_cast %327 : vector<8xf32> to vector<8x1xf32>
    %cst_162 = arith.constant 3.200000e+01 : f32
    %329 = vector.broadcast %cst_162 : f32 to vector<8x1xf32>
    %330 = arith.divf %328, %329 : vector<8x1xf32>
    %cst_163 = arith.constant 9.99999974E-6 : f32
    %331 = vector.broadcast %cst_163 : f32 to vector<8x1xf32>
    %332 = arith.addf %330, %331 : vector<8x1xf32>
    %333 = math.rsqrt %332 : vector<8x1xf32>
    %334 = vector.broadcast %333 : vector<8x1xf32> to vector<8x32xf32>
    %335 = arith.mulf %325, %334 : vector<8x32xf32>
    %c0_164 = arith.constant 0 : index
    %c0_165 = arith.constant 0 : index
    %336 = vector.load %arg23[%c0_164, %c0_165] : memref<1x32xf32, #tpu.memory_space<vmem>>, vector<1x32xf32>
    %337 = vector.broadcast %336 : vector<1x32xf32> to vector<8x32xf32>
    %338 = arith.mulf %335, %337 : vector<8x32xf32>
    %c0_166 = arith.constant 0 : index
    %c0_167 = arith.constant 0 : index
    %339 = vector.load %arg24[%c0_166, %c0_167] : memref<1x32xf32, #tpu.memory_space<vmem>>, vector<1x32xf32>
    %340 = vector.broadcast %339 : vector<1x32xf32> to vector<8x32xf32>
    %341 = arith.addf %338, %340 : vector<8x32xf32>
    %c0_168 = arith.constant 0 : index
    %c0_169 = arith.constant 0 : index
    %342 = vector.load %arg25[%c0_168, %c0_169] : memref<32x64xf32, #tpu.memory_space<vmem>>, vector<32x64xf32>
    %cst_170 = arith.constant dense<0.000000e+00> : vector<8x64xf32>
    %343 = tpu.matmul %341, %342, %cst_170 {dimension_numbers = #tpu.dot_dimension_numbers<[1], [0], [0], [1], [0, 0, 1, 1], [], []>} : vector<8x32xf32>, vector<32x64xf32>, vector<8x64xf32> -> vector<8x64xf32>
    %c0_171 = arith.constant 0 : index
    %c0_172 = arith.constant 0 : index
    %344 = vector.load %arg26[%c0_171, %c0_172] : memref<1x64xf32, #tpu.memory_space<vmem>>, vector<1x64xf32>
    %345 = vector.broadcast %344 : vector<1x64xf32> to vector<8x64xf32>
    %346 = arith.addf %343, %345 : vector<8x64xf32>
    %347 = arith.negf %346 : vector<8x64xf32>
    %348 = math.exp %347 : vector<8x64xf32>
    %cst_173 = arith.constant 1.000000e+00 : f32
    %349 = vector.broadcast %cst_173 : f32 to vector<8x64xf32>
    %350 = arith.addf %349, %348 : vector<8x64xf32>
    %351 = arith.divf %349, %350 : vector<8x64xf32>
    %352 = arith.mulf %346, %351 : vector<8x64xf32>
    %c0_174 = arith.constant 0 : index
    %c0_175 = arith.constant 0 : index
    %353 = vector.load %arg27[%c0_174, %c0_175] : memref<64x32xf32, #tpu.memory_space<vmem>>, vector<64x32xf32>
    %cst_176 = arith.constant dense<0.000000e+00> : vector<8x32xf32>
    %354 = tpu.matmul %352, %353, %cst_176 {dimension_numbers = #tpu.dot_dimension_numbers<[1], [0], [0], [1], [0, 0, 1, 1], [], []>} : vector<8x64xf32>, vector<64x32xf32>, vector<8x32xf32> -> vector<8x32xf32>
    %c0_177 = arith.constant 0 : index
    %c0_178 = arith.constant 0 : index
    %355 = vector.load %arg28[%c0_177, %c0_178] : memref<1x32xf32, #tpu.memory_space<vmem>>, vector<1x32xf32>
    %356 = vector.broadcast %355 : vector<1x32xf32> to vector<8x32xf32>
    %357 = arith.addf %354, %356 : vector<8x32xf32>
    %358 = arith.addf %357, %319 : vector<8x32xf32>
    %c0_179 = arith.constant 0 : index
    %c0_180 = arith.constant 0 : index
    %c0_181 = arith.constant 0 : index
    %359 = vector.load %arg29[%c0_179, %c0_180, %c0_181] : memref<1x8x32xf32, #tpu.memory_space<vmem>>, vector<1x8x32xf32>
    %360 = vector.shape_cast %359 : vector<1x8x32xf32> to vector<8x32xf32>
    %361 = vector.shape_cast %358 : vector<8x32xf32> to vector<1x8x32xf32>
    tpu.vector_store %arg29[%c0_179, %c0_180, %c0_181], %361 {strides = array<i32>} : memref<1x8x32xf32, #tpu.memory_space<vmem>>, vector<1x8x32xf32>,
    return
  }
  func.func @transform_0(%arg0: i32) -> (i32, i32, i32) {
    %c0_i32 = arith.constant 0 : i32
    %c0_i32_0 = arith.constant 0 : i32
    %c0_i32_1 = arith.constant 0 : i32
    return %arg0, %c0_i32, %c0_i32_0 : i32, i32, i32
  }
  func.func @transform_1(%arg0: i32) -> (i32, i32, i32) {
    %c0_i32 = arith.constant 0 : i32
    %c0_i32_0 = arith.constant 0 : i32
    %c0_i32_1 = arith.constant 0 : i32
    return %arg0, %c0_i32, %c0_i32_0 : i32, i32, i32
  }
  func.func @transform_2(%arg0: i32) -> (i32, i32) {
    %c0_i32 = arith.constant 0 : i32
    %c0_i32_0 = arith.constant 0 : i32
    %c0_i32_1 = arith.constant 0 : i32
    return %c0_i32, %c0_i32_0 : i32, i32
  }
  func.func @transform_3(%arg0: i32) -> (i32, i32) {
    %c0_i32 = arith.constant 0 : i32
    %c0_i32_0 = arith.constant 0 : i32
    %c0_i32_1 = arith.constant 0 : i32
    return %c0_i32, %c0_i32_0 : i32, i32
  }
  func.func @transform_4(%arg0: i32) -> (i32, i32, i32) {
    %c0_i32 = arith.constant 0 : i32
    %c0_i32_0 = arith.constant 0 : i32
    %c0_i32_1 = arith.constant 0 : i32
    %c0_i32_2 = arith.constant 0 : i32
    return %c0_i32, %c0_i32_0, %c0_i32_1 : i32, i32, i32
  }
  func.func @transform_5(%arg0: i32) -> (i32, i32) {
    %c0_i32 = arith.constant 0 : i32
    %c0_i32_0 = arith.constant 0 : i32
    %c0_i32_1 = arith.constant 0 : i32
    return %c0_i32, %c0_i32_0 : i32, i32
  }
  func.func @transform_6(%arg0: i32) -> (i32, i32) {
    %c0_i32 = arith.constant 0 : i32
    %c0_i32_0 = arith.constant 0 : i32
    %c0_i32_1 = arith.constant 0 : i32
    return %c0_i32, %c0_i32_0 : i32, i32
  }
  func.func @transform_7(%arg0: i32) -> (i32, i32) {
    %c0_i32 = arith.constant 0 : i32
    %c0_i32_0 = arith.constant 0 : i32
    %c0_i32_1 = arith.constant 0 : i32
    return %c0_i32, %c0_i32_0 : i32, i32
  }
  func.func @transform_8(%arg0: i32) -> (i32, i32, i32) {
    %c0_i32 = arith.constant 0 : i32
    %c0_i32_0 = arith.constant 0 : i32
    %c0_i32_1 = arith.constant 0 : i32
    %c0_i32_2 = arith.constant 0 : i32
    return %c0_i32, %c0_i32_0, %c0_i32_1 : i32, i32, i32
  }
  func.func @transform_9(%arg0: i32) -> (i32, i32) {
    %c0_i32 = arith.constant 0 : i32
    %c0_i32_0 = arith.constant 0 : i32
    %c0_i32_1 = arith.constant 0 : i32
    return %c0_i32, %c0_i32_0 : i32, i32
  }
  func.func @transform_10(%arg0: i32) -> (i32, i32) {
    %c0_i32 = arith.constant 0 : i32
    %c0_i32_0 = arith.constant 0 : i32
    %c0_i32_1 = arith.constant 0 : i32
    return %c0_i32, %c0_i32_0 : i32, i32
  }
  func.func @transform_11(%arg0: i32) -> (i32, i32) {
    %c0_i32 = arith.constant 0 : i32
    %c0_i32_0 = arith.constant 0 : i32
    %c0_i32_1 = arith.constant 0 : i32
    return %c0_i32, %c0_i32_0 : i32, i32
  }
  func.func @transform_12(%arg0: i32) -> (i32, i32) {
    %c0_i32 = arith.constant 0 : i32
    %c0_i32_0 = arith.constant 0 : i32
    %c0_i32_1 = arith.constant 0 : i32
    return %c0_i32, %c0_i32_0 : i32, i32
  }
  func.func @transform_13(%arg0: i32) -> (i32, i32) {
    %c0_i32 = arith.constant 0 : i32
    %c0_i32_0 = arith.constant 0 : i32
    %c0_i32_1 = arith.constant 0 : i32
    return %c0_i32, %c0_i32_0 : i32, i32
  }
  func.func @transform_14(%arg0: i32) -> (i32, i32) {
    %c0_i32 = arith.constant 0 : i32
    %c0_i32_0 = arith.constant 0 : i32
    %c0_i32_1 = arith.constant 0 : i32
    return %c0_i32, %c0_i32_0 : i32, i32
  }
  func.func @transform_15(%arg0: i32) -> (i32, i32) {
    %c0_i32 = arith.constant 0 : i32
    %c0_i32_0 = arith.constant 0 : i32
    %c0_i32_1 = arith.constant 0 : i32
    return %c0_i32, %c0_i32_0 : i32, i32
  }
  func.func @transform_16(%arg0: i32) -> (i32, i32) {
    %c0_i32 = arith.constant 0 : i32
    %c0_i32_0 = arith.constant 0 : i32
    %c0_i32_1 = arith.constant 0 : i32
    return %c0_i32, %c0_i32_0 : i32, i32
  }
  func.func @transform_17(%arg0: i32) -> (i32, i32) {
    %c0_i32 = arith.constant 0 : i32
    %c0_i32_0 = arith.constant 0 : i32
    %c0_i32_1 = arith.constant 0 : i32
    return %c0_i32, %c0_i32_0 : i32, i32
  }
  func.func @transform_18(%arg0: i32) -> (i32, i32) {
    %c0_i32 = arith.constant 0 : i32
    %c0_i32_0 = arith.constant 0 : i32
    %c0_i32_1 = arith.constant 0 : i32
    return %c0_i32, %c0_i32_0 : i32, i32
  }
  func.func @transform_19(%arg0: i32) -> (i32, i32) {
    %c0_i32 = arith.constant 0 : i32
    %c0_i32_0 = arith.constant 0 : i32
    %c0_i32_1 = arith.constant 0 : i32
    return %c0_i32, %c0_i32_0 : i32, i32
  }
  func.func @transform_20(%arg0: i32) -> (i32, i32) {
    %c0_i32 = arith.constant 0 : i32
    %c0_i32_0 = arith.constant 0 : i32
    %c0_i32_1 = arith.constant 0 : i32
    return %c0_i32, %c0_i32_0 : i32, i32
  }
  func.func @transform_21(%arg0: i32) -> (i32, i32) {
    %c0_i32 = arith.constant 0 : i32
    %c0_i32_0 = arith.constant 0 : i32
    %c0_i32_1 = arith.constant 0 : i32
    return %c0_i32, %c0_i32_0 : i32, i32
  }
  func.func @transform_22(%arg0: i32) -> (i32, i32) {
    %c0_i32 = arith.constant 0 : i32
    %c0_i32_0 = arith.constant 0 : i32
    %c0_i32_1 = arith.constant 0 : i32
    return %c0_i32, %c0_i32_0 : i32, i32
  }
  func.func @transform_23(%arg0: i32) -> (i32, i32) {
    %c0_i32 = arith.constant 0 : i32
    %c0_i32_0 = arith.constant 0 : i32
    %c0_i32_1 = arith.constant 0 : i32
    return %c0_i32, %c0_i32_0 : i32, i32
  }
  func.func @transform_24(%arg0: i32) -> (i32, i32) {
    %c0_i32 = arith.constant 0 : i32
    %c0_i32_0 = arith.constant 0 : i32
    %c0_i32_1 = arith.constant 0 : i32
    return %c0_i32, %c0_i32_0 : i32, i32
  }
  func.func @transform_25(%arg0: i32) -> (i32, i32) {
    %c0_i32 = arith.constant 0 : i32
    %c0_i32_0 = arith.constant 0 : i32
    %c0_i32_1 = arith.constant 0 : i32
    return %c0_i32, %c0_i32_0 : i32, i32
  }
  func.func @transform_26(%arg0: i32) -> (i32, i32) {
    %c0_i32 = arith.constant 0 : i32
    %c0_i32_0 = arith.constant 0 : i32
    %c0_i32_1 = arith.constant 0 : i32
    return %c0_i32, %c0_i32_0 : i32, i32
  }
  func.func @transform_27(%arg0: i32) -> (i32, i32) {
    %c0_i32 = arith.constant 0 : i32
    %c0_i32_0 = arith.constant 0 : i32
    %c0_i32_1 = arith.constant 0 : i32
    return %c0_i32, %c0_i32_0 : i32, i32
  }
  func.func @transform_28(%arg0: i32) -> (i32, i32, i32) {
    %c0_i32 = arith.constant 0 : i32
    %c0_i32_0 = arith.constant 0 : i32
    %c0_i32_1 = arith.constant 0 : i32
    return %arg0, %c0_i32, %c0_i32_0 : i32, i32, i32
  }
}

</mosaic_0001>

<bundles_post_ra>
// kernel: evolved_encoder_forward.2
= control target key start
LH: loop header
LB: loop body
LE: loop exit
PB: predicated region body
PF: predicated region fallthrough
CT: control target
= control target key end

     0   :  { %s3714_s0 = inlined_call_operand.vmem [shape: f32[2,8,32], index: 0, kind: input, shape index: {}]   ;;  %s3715_s1 = inlined_call_operand.vmem [shape: s32[2,1,8], index: 1, kind: input, shape index: {}]   ;;  %s3716_s2 = inlined_call_operand.vmem [shape: f32[1,32], index: 2, kind: input, shape index: {}]   ;;  %s3717_s3 = inlined_call_operand.vmem [shape: f32[1,32], index: 3, kind: input, shape index: {}]   ;;  %s3718_s4 = inlined_call_operand.vmem [shape: f32[3,32,64], index: 4, kind: input, shape index: {}]   ;;  %s3719_s5 = inlined_call_operand.vmem [shape: f32[1,64], index: 5, kind: input, shape index: {}]   ;;  %s3720_s6 = inlined_call_operand.vmem [shape: f32[1,32], index: 6, kind: input, shape index: {}]   ;;  %s3721_s7 = inlined_call_operand.vmem [shape: f32[1,32], index: 7, kind: input, shape index: {}]   ;;  %s3722_s8 = inlined_call_operand.vmem [shape: f32[3,32,128], index: 8, kind: input, shape index: {}]   ;;  %s3723_s9 = inlined_call_operand.vmem [shape: f32[1,128], index: 9, kind: input, shape index: {}]   ;;  %s3724_s10 = inlined_call_operand.vmem [shape: f32[1,64], index: 10, kind: input, shape index: {}]   ;;  %s3725_s11 = inlined_call_operand.vmem [shape: f32[1,64], index: 11, kind: input, shape index: {}]   ;;  %s3726_s12 = inlined_call_operand.vmem [shape: f32[9,64], index: 12, kind: input, shape index: {}]   ;;  %s3727_s13 = inlined_call_operand.vmem [shape: f32[1,64], index: 13, kind: input, shape index: {}]   ;;  %s3728_s14 = inlined_call_operand.vmem [shape: f32[64,32], index: 14, kind: input, shape index: {}]   ;;  %s3729_s15 = inlined_call_operand.vmem [shape: f32[1,32], index: 15, kind: input, shape index: {}]   ;;  %s3730_s16 = inlined_call_operand.vmem [shape: f32[1,32], index: 16, kind: input, shape index: {}]   ;;  %s3731_s17 = inlined_call_operand.vmem [shape: f32[1,32], index: 17, kind: input, shape index: {}]   ;;  %s3732_s18 = inlined_call_operand.vmem [shape: f32[32,96], index: 18, kind: input, shape index: {}]   ;;  %s3733_s19 = inlined_call_operand.vmem [shape: f32[1,96], index: 19, kind: input, shape index: {}]   ;;  %s3734_s20 = inlined_call_operand.vmem [shape: f32[32,32], index: 20, kind: input, shape index: {}]   ;;  %s3735_s21 = inlined_call_operand.vmem [shape: f32[1,32], index: 21, kind: input, shape index: {}]   ;;  %s3736_s22 = inlined_call_operand.vmem [shape: f32[1,32], index: 22, kind: input, shape index: {}]   ;;  %s3737_s23 = inlined_call_operand.vmem [shape: f32[1,32], index: 23, kind: input, shape index: {}]   ;;  %s3738_s24 = inlined_call_operand.vmem [shape: f32[32,64], index: 24, kind: input, shape index: {}]   ;;  %s3739_s25 = inlined_call_operand.vmem [shape: f32[1,64], index: 25, kind: input, shape index: {}]   ;;  %s3740_s26 = inlined_call_operand.vmem [shape: f32[64,32], index: 26, kind: input, shape index: {}]   ;;  %s3741_s27 = inlined_call_operand.vmem [shape: f32[1,32], index: 27, kind: input, shape index: {}]   ;;  %s3742_s28 = inlined_call_operand.vmem [shape: f32[2,8,32], index: 28, kind: output, shape index: {}]  }
   0x1   :  { %3747 = sst [smem:[#allocation3_spill]] %s3714_s0 }
   0x2   :  { %3748 = sst [smem:[#allocation4_spill]] %s3715_s1  ;;  %s3309_s1 = smov 0  }
   0x3   :  { %3749 = sst [smem:[#allocation5_spill]] %s3716_s2 }
   0x4   :  { %3750 = sst [smem:[#allocation6_spill]] %s3717_s3 }
   0x5   :  { %3751 = sst [smem:[#allocation7_spill]] %s3718_s4 }
   0x6   :  { %3752 = sst [smem:[#allocation8_spill]] %s3719_s5 }
   0x7   :  { %3753 = sst [smem:[#allocation9_spill]] %s3720_s6 }
   0x8   :  { %3754 = sst [smem:[#allocation10_spill]] %s3721_s7 }
   0x9   :  { %3755 = sst [smem:[#allocation11_spill]] %s3722_s8 }
   0xa   :  { %3756 = sst [smem:[#allocation12_spill]] %s3723_s9 }
   0xb   :  { %3757 = sst [smem:[#allocation13_spill]] %s3724_s10 }
   0xc   :  { %3758 = sst [smem:[#allocation14_spill]] %s3725_s11 }
   0xd   :  { %3759 = sst [smem:[#allocation15_spill]] %s3726_s12 }
   0xe LB: > { %s2699_s4 = sadd.s32 4294967295, %s3150_s1   ;;  %p2703_p0 = scmp.ge.s32.totalorder %s3150_s1, 1  ;;  %s3150_s1 = sphi %s3309_s1, %s38_s1  }
   0xf   : > { %p769_p1 = scmp.lt.s32.totalorder %s3150_s1, 3 }
  0x11   : > { %p770_p2 = pnand %p2703_p0, %p769_p1 }
  0x12   : > { %p844_p3 = scmp.lt.s32.totalorder (!%p770_p2), %s2699_s4, 1  ;;  %vm859_vm0 = vcmask (!%p770_p2), 261120   ;;  %s3760_s30 = sld [smem:[#allocation3_spill]] (!%p770_p2)  ;;  %v3152_v10 = vmov (!%p770_p2), 0.0|0.0   ;;  %vm3153_vm1 = vmmov (!%p770_p2), 0   ;;  %v3154_v13 = vmov (!%p770_p2), 0.0  }
  0x13   : > { %773 = sbr.rel (%p770_p2) target bundleno = 4626 (0x1212), region = 132  ;;  %s3761_s0 = sld [smem:[#allocation7_spill]] (!%p770_p2)  ;;  %3018 = vmatprep.subr.bf16.mxu0 (!%p770_p2), %v3152_v10  ;;  %2860 = vmatprep.mubr.msk.f32.mxu0 (!%p770_p2), %vm3153_vm1, %v3154_v13  ;;  %vm855_vm2 = vcmask (!%p770_p2), 523264   ;;  %vm1746_vm3 = vcmask (!%p770_p2), 64512  }
  0x14   : > { %856 = vst.msk [vmem:[#allocation2] sm:$0xff] (!%p770_p2), %vm855_vm2, %v3154_v13  ;;  %857 = vst.msk [vmem:[#allocation2 + $0x8] sm:$0xff] (!%p770_p2), %vm855_vm2, %v3154_v13  ;;  %3024 = vmatprep.subr.bf16.mxu1 (!%p770_p2), %v3152_v10  ;;  %2871 = vmatprep.mubr.msk.f32.mxu1 (!%p770_p2), %vm3153_vm1, %v3154_v13  ;;  %s3762_s7 = sld [smem:[#allocation5_spill]] (!%p770_p2)  ;;  %s3764_s12 = sld [smem:[#allocation8_spill]] (!%p770_p2) }
  0x15   : > { %s3155_s20 = smov (!%p770_p2), 96   ;;  %s3765_s9 = sld [smem:[#allocation11_spill]] (!%p770_p2) }
  0x16   : > { %s3766_s29 = sld [smem:[#allocation9_spill]] (!%p770_p2)  ;;  %s3768_s2 = sld [smem:[#allocation12_spill]] (!%p770_p2) }
  0x17   : > { %s3769_s11 = sld [smem:[#allocation13_spill]] (!%p770_p2)  ;;  %s3771_s5 = sld [smem:[#allocation15_spill]] (!%p770_p2) }
  0x18   : > { %s3162_s6 = smov (!%p770_p2), 72   ;;  %s3163_s10 = smov (!%p770_p2), 104  }
  0x19   : > { %v2708_v7 = vld [vmem:[%s3761_s0 + $0x20] sm:$0xff] (!%p770_p2)  ;;  %v2709_v8 = vld [vmem:[%s3761_s0 + $0x28] sm:$0xff] (!%p770_p2)  ;;  %v2710_v9 = vld [vmem:[%s3761_s0 + $0x30] sm:$0xff] (!%p770_p2) }
  0x1a   : > { %s3775_s4 = smov (!%p844_p3, %s2699_s4), 1  ;;  %v3019_v11 = vpack.c.bf16 %v2709_v8, %v2708_v7  ;;  %v2711_v12 = vld [vmem:[%s3761_s0 + $0x38] sm:$0xff]  ;;  %v892_v15 = vld [vmem:[%s3761_s0] sm:$0xff]  ;;  %v893_v16 = vld [vmem:[%s3761_s0 + $0x8] sm:$0xff] }
  0x1b   : > { %s3746_s8 = sshll.u32 %s3775_s4, 3  ;;  %v3022_v14 = vpack.c.bf16 %v2711_v12, %v2710_v9  ;;  %v3025_v17 = vpack.c.bf16 %v893_v16, %v892_v15  ;;  %v894_v18 = vld [vmem:[%s3761_s0 + $0x10] sm:$0xff]  ;;  %v895_v19 = vld [vmem:[%s3761_s0 + $0x18] sm:$0xff]  ;;  %v2706_v25 = vld [vmem:[%s3762_s7] ss:$0 sm:$0xff]  ;;  %s3156_s7 = smov 64  }
  0x1c   : > { %s847_s3 = scalar_lea.vmem %s3760_s30, %s3746_s8  ;;  %3020 = vmatpush3.bf16.msra.mxu0 %v3019_v11  ;;  %v3028_v20 = vpack.c.bf16 %v895_v19, %v894_v18  ;;  %v2714_v27 = vld [vmem:[%s3761_s0 + $0x40] sm:$0xff]  ;;  %v2715_v28 = vld [vmem:[%s3761_s0 + $0x48] sm:$0xff]  ;;  %v2716_v33 = vld [vmem:[%s3761_s0 + $0x50] sm:$0xff]  ;;  %s3158_s8 = smov 88  }
  0x1d   : > { %v858_v0 = vld [vmem:[%s847_s3] sm:$0xff]  ;;  %3021 = vmatprep.subr.bf16.mxu0 %v3152_v10  ;;  %3026 = vmatpush3.bf16.msra.mxu1 %v3025_v17  ;;  %s3763_s3 = sld [smem:[#allocation6_spill]]  ;;  %v3031_v31 = vpack.c.bf16 %v2715_v28, %v2714_v27  ;;  %v2717_v34 = vld [vmem:[%s3761_s0 + $0x58] sm:$0xff]  ;;  %v2724_v61 = vld [vmem:[%s3765_s9 + $0x28] sm:$0xff]  ;;  %s3160_s30 = smov 80  }
  0x1e   : > { %v860_v1 = vsel %vm859_vm0, %v858_v0, 0.0  ;;  %3027 = vmatprep.subr.bf16.mxu1 %v3152_v10  ;;  %v3034_v35 = vpack.c.bf16 %v2717_v34, %v2716_v33  ;;  %v2719_v45 = vld [vmem:[%s3764_s12] ss:$0 sm:$0xff]  ;;  %v2725_v63 = vld [vmem:[%s3765_s9 + $0x30] sm:$0xff]  ;;  %v2730_v17 = vld [vmem:[%s3765_s9 + $0x48] sm:$0xff]  ;;  %s3772_s12 = sld [smem:[#allocation4_spill]] }
  0x1f   : > { %861 = vadd.xlane.f32.xlu0 %v860_v1  ;;  %v2723_v60 = vld [vmem:[%s3765_s9 + $0x20] sm:$0xff] }
  0x20   : > { %3023 = vmatpush3.bf16.msra.mxu0 %v3022_v14  ;;  %v3037_v62 = vpack.c.bf16 %v2724_v61, %v2723_v60  ;;  %v2721_v14 = vld [vmem:[%s3766_s29] ss:$0 sm:$0xff] }
  0x21   : > { %3030 = vmatprep.subr.bf16.mxu0 %v3152_v10  ;;  %3029 = vmatpush3.bf16.msra.mxu1 %v3028_v20  ;;  %v2729_v16 = vld [vmem:[%s3765_s9 + $0x40] sm:$0xff] }
  0x22   : > { %3036 = vmatprep.subr.bf16.mxu1 %v3152_v10  ;;  %v3049_v20 = vpack.c.bf16 %v2730_v17, %v2729_v16  ;;  %v2734_v34 = vld [vmem:[%s3768_s2] ss:$0 sm:$0xff]  ;;  %s3770_s2 = sld [smem:[#allocation14_spill]]  ;;  %v2741_v16 = vld [vmem:[%s3771_s5 + $0x2] ss:$0 sm:$0xff] }
  0x23   : > { %v2707_v29 = vld [vmem:[%s3763_s3] ss:$0 sm:$0xff]  ;;  %s3767_s3 = sld [smem:[#allocation10_spill]] }
  0x24   : > { %s850_s21 = scalar_lea.vmem %s3772_s12, %s3775_s4 }
  0x29   : > { %v2722_v18 = vld [vmem:[%s3767_s3] ss:$0 sm:$0xff]  ;;  %s3161_s3 = smov 112  }
  0xac   : > { %v862_v2 = vpop.xlane.xlu0 %861 }
  0xad   : > { %v864_v3 = vmul.f32 0.03125, %v862_v2  ;;  %v1177_v2 = vld [vmem:[%s3765_s9] sm:$0xff] }
  0xaf   : > { %v865_v4 = vsub.f32 %v858_v0, %v864_v3  ;;  %v2726_v0 = vld [vmem:[%s3765_s9 + $0x38] sm:$0xff]  ;;  %v1178_v3 = vld [vmem:[%s3765_s9 + $0x8] sm:$0xff] }
  0xb0   : > { %v3040_v1 = vpack.c.bf16 %v2726_v0, %v2725_v63  ;;  %v2735_v63 = vld [vmem:[%s3769_s11] ss:$0 sm:$0xff]  ;;  %s3157_s11 = smov 120  }
  0xb1   : > { %v866_v5 = vmul.f32 %v865_v4, %v865_v4 }
  0xb3   : > { %v867_v6 = vsel %vm859_vm0, %v866_v5, 0.0  ;;  %v1179_v5 = vld [vmem:[%s3765_s9 + $0x10] sm:$0xff] }
  0xb4   : > { %868 = vadd.xlane.f32.xlu0 %v867_v6  ;;  %v1180_v6 = vld [vmem:[%s3765_s9 + $0x18] sm:$0xff] }
  0xb5   : > { %v3046_v7 = vpack.c.bf16 %v1180_v6, %v1179_v5  ;;  %v2738_v6 = vld [vmem:[%s3727_s13] ss:$0 sm:$0xff] }
 0x141   : > { %v869_v21 = vpop.xlane.xlu0 %868 }
 0x142   : > { %v870_v22 = vmul.f32 0.03125, %v869_v21 }
 0x144   : > { %v871_v23 = vadd.f32 1e-05, %v870_v22  ;;  %v2731_v22 = vld [vmem:[%s3765_s9 + $0x50] sm:$0xff] }
 0x146   : > { %3110 = vrsqrt.f32 %v871_v23  ;;  %v2732_v23 = vld [vmem:[%s3765_s9 + $0x58] sm:$0xff] }
 0x150   : > { %v3111_v24 = vpop.eup %3110 }
 0x151   : > { %v873_v26 = vmul.f32 %v3111_v24, %v865_v4  ;;  %v3043_v4 = vpack.c.bf16 %v1178_v3, %v1177_v2  ;;  %v3052_v24 = vpack.c.bf16 %v2732_v23, %v2731_v22 }
 0x153   : > { %v881_v30 = vmul.f32 %v2706_v25, %v873_v26 }
 0x155   : > { %v889_v32 = vadd.f32 %v2707_v29, %v881_v30 }
 0x157   : > { %890 = vst.msk [vmem:[#allocation2 + $0x4] sm:$0xff] %vm859_vm0, %v889_v32  ;;  %2861 = vmatmul.mubr.msk.f32.vlgmr.msra.gmra.mrb[0].mxu0 %vm859_vm0, %v889_v32 }
 0x158   : > { %3032 = vmatpush3.bf16.msra.mxu0 %v3031_v31  ;;  %2882 = vmatprep.mubr.msk.f32.mxu0 %vm3153_vm1, %v3154_v13 }
 0x159   : > { %3033 = vmatprep.subr.bf16.mxu0 %v3152_v10 }
 0x15c   : > { %3035 = vmatpush3.bf16.msra.mxu0 %v3034_v35 }
 0x15d   : > { %3042 = vmatprep.subr.bf16.mxu0 %v3152_v10 }
 0x15e   : > { %v891_v36 = vld [vmem:[#allocation2 + $0x3] sm:$0xff] }
 0x15f   : > { %v1047_v37 = vld [vmem:[#allocation2 + $0x5] sm:$0xff]  ;;  %2872 = vmatmul.mubr.msk.f32.vlgmr.msra.gmra.mrb[0].mxu1 %vm859_vm0, %v891_v36 }
 0x160   : > { %2883 = vmatmul.mubr.msk.f32.vlgmr.msra.gmra.mrb[2].mxu0 %vm859_vm0, %v1047_v37  ;;  %2893 = vmatprep.mubr.msk.f32.mxu1 %vm3153_vm1, %v3154_v13 }
 0x161   : > { %2904 = vmatprep.mubr.msk.f32.mxu0 %vm3153_vm1, %v3154_v13  ;;  %3038 = vmatpush3.bf16.msra.mxu1 %v3037_v62 }
 0x162   : > { %3039 = vmatprep.subr.bf16.mxu1 %v3152_v10  ;;  %3044 = vmatpush3.bf16.msra.mxu0 %v3043_v4  ;;  %v2737_v4 = vld [vmem:[%s3771_s5 + $0x4] ss:$0 sm:$0xff] }
 0x163   : > { %3045 = vmatprep.subr.bf16.mxu0 %v3152_v10 }
 0x165   : > { %3041 = vmatpush3.bf16.msra.mxu1 %v3040_v1  ;;  %v2736_v1 = vld [vmem:[%s3770_s2] ss:$0 sm:$0xff] }
 0x166   : > { %3048 = vmatprep.subr.bf16.mxu1 %v3152_v10  ;;  %3047 = vmatpush3.bf16.msra.mxu0 %v3046_v7  ;;  %v2739_v7 = vld [vmem:[%s3771_s5] ss:$0 sm:$0xff] }
 0x167   : > { %3054 = vmatprep.subr.bf16.mxu0 %v3152_v10 }
 0x22a   : > { %v970_v38 = vpop.f32.mrb[0].mxu0 }
 0x22b   : > { %v2862_v39 = vpop.f32.mrb[1].mxu0 }
 0x232   : > { %v1043_v40 = vpop.f32.mrb[0].mxu1 }
 0x233   : > { %v1122_v41 = vpop.f32.mrb[2].mxu0  ;;  %v1044_v42 = vadd.f32 %v1043_v40, %v970_v38  ;;  %v2873_v43 = vpop.f32.mrb[1].mxu1 }
 0x234   : > { %v2884_v44 = vpop.f32.mrb[3].mxu0 }
 0x235   : > { %v1126_v46 = vadd.f32 %v1122_v41, %v1044_v42 }
 0x237   : > { %v1134_v47 = vadd.f32 %v2719_v45, %v1126_v46  ;;  %v1536_v46 = vld [vmem:[%s3728_s14] sm:$0xff] }
 0x239   : > { %v2720_v48 = vmul.f32 -1.442695, %v1134_v47 }
 0x23b   : > { %3112 = vpow2.f32 %v2720_v48 }
 0x245   : > { %v3113_v49 = vpop.eup %3112 }
 0x246   : > { %v1138_v50 = vadd.f32 1.0, %v3113_v49  ;;  %v1538_v49 = vld [vmem:[%s3728_s14 + $0x10] sm:$0xff] }
 0x248   : > { %3114 = vrcp.f32 %v1138_v50  ;;  %v1539_v50 = vld [vmem:[%s3728_s14 + $0x18] sm:$0xff] }
 0x252   : > { %v3115_v51 = vpop.eup %3114 }
 0x253   : > { %1142 = vrot.lane.b32.xlu1 %v3115_v51, %s3155_s20  ;;  %v3058_v51 = vpack.c.bf16 %v1539_v50, %v1538_v49 }
 0x2c5   : > { %v1143_v52 = vpop.permute.xlu1 %1142 }
 0x2c6   : > { %v3399_v53 = vmul.f32 %v1143_v52, %v1134_v47  ;;  %v1537_v47 = vld [vmem:[%s3728_s14 + $0x8] sm:$0xff]  ;;  %v1540_v52 = vld [vmem:[%s3728_s14 + $0x20] sm:$0xff] }
 0x2c7   : > { %v3055_v48 = vpack.c.bf16 %v1537_v47, %v1536_v46 }
 0x2c8   : > { %v1146_v54 = vsel %vm859_vm0, %v3399_v53, 0.0 }
 0x2c9   : > { %1147 = vadd.xlane.f32.xlu1 %v1146_v54  ;;  %v1541_v54 = vld [vmem:[%s3728_s14 + $0x28] sm:$0xff] }
 0x356   : > { %v1148_v55 = vpop.xlane.xlu1 %1147 }
 0x357   : > { %v1149_v56 = vmul.f32 0.03125, %v1148_v55  ;;  %v3061_v55 = vpack.c.bf16 %v1541_v54, %v1540_v52  ;;  %v1654_v54 = vld [vmem:[%s3732_s18] sm:$0xff] }
 0x359   : > { %v1150_v57 = vsub.f32 %v3399_v53, %v1149_v56  ;;  %v1542_v56 = vld [vmem:[%s3728_s14 + $0x30] sm:$0xff] }
 0x35b   : > { %v1151_v58 = vmul.f32 %v1150_v57, %v1150_v57 }
 0x35d   : > { %v1152_v59 = vsel %vm859_vm0, %v1151_v58, 0.0 }
 0x35e   : > { %1153 = vadd.xlane.f32.xlu0 %v1152_v59 }
 0x3eb   : > { %v1154_v8 = vpop.xlane.xlu0 %1153 }
 0x3ec   : > { %v1155_v9 = vmul.f32 0.03125, %v1154_v8 }
 0x3ee   : > { %v1156_v11 = vadd.f32 1e-05, %v1155_v9 }
 0x3f0   : > { %3116 = vrsqrt.f32 %v1156_v11  ;;  %v2740_v11 = vld [vmem:[%s3771_s5 + $0x1] ss:$0 sm:$0xff] }
 0x3fa   : > { %v3117_v12 = vpop.eup %3116 }
 0x3fb   : > { %v1158_v15 = vmul.f32 %v3117_v12, %v1150_v57  ;;  %v1543_v57 = vld [vmem:[%s3728_s14 + $0x38] sm:$0xff] }
 0x3fc   : > { %v3064_v58 = vpack.c.bf16 %v1543_v57, %v1542_v56  ;;  %v1657_v57 = vld [vmem:[%s3732_s18 + $0x18] sm:$0xff] }
 0x3fd   : > { %v1166_v19 = vmul.f32 %v2721_v14, %v1158_v15 }
 0x3ff   : > { %v1174_v21 = vadd.f32 %v2722_v18, %v1166_v19 }
 0x401   : > { %1175 = vst.msk [vmem:[#allocation2 + $0x4] sm:$0xff] %vm859_vm0, %v1174_v21  ;;  %2894 = vmatmul.mubr.msk.f32.vlgmr.msra.gmra.mrb[2].mxu1 %vm859_vm0, %v1174_v21 }
 0x402   : > { %3050 = vmatpush3.bf16.msra.mxu1 %v3049_v20  ;;  %2915 = vmatprep.mubr.msk.f32.mxu1 %vm3153_vm1, %v3154_v13  ;;  %v2742_v20 = vld [vmem:[%s3771_s5 + $0x3] ss:$0 sm:$0xff] }
 0x403   : > { %3051 = vmatprep.subr.bf16.mxu1 %v3152_v10 }
 0x406   : > { %3053 = vmatpush3.bf16.msra.mxu1 %v3052_v24  ;;  %v2743_v24 = vld [vmem:[%s3771_s5 + $0x5] ss:$0 sm:$0xff] }
 0x407   : > { %3066 = vmatprep.subr.bf16.mxu1 %v3152_v10 }
 0x408   : > { %v1176_v25 = vld [vmem:[#allocation2 + $0x3] sm:$0xff] }
 0x409   : > { %v1332_v26 = vld [vmem:[#allocation2 + $0x5] sm:$0xff]  ;;  %2905 = vmatmul.mubr.msk.f32.vlgmr.msra.gmra.mrb[4].mxu0 %vm859_vm0, %v1176_v25 }
 0x40a   : > { %2916 = vmatmul.mubr.msk.f32.vlgmr.msra.gmra.mrb[4].mxu1 %vm859_vm0, %v1332_v26  ;;  %2934 = vmatprep.mubr.msk.f32.mxu0 %vm3153_vm1, %v3154_v13 }
 0x40b   : > { %2945 = vmatprep.mubr.msk.f32.mxu1 %vm3153_vm1, %v3154_v13  ;;  %3056 = vmatpush3.bf16.msra.mxu0 %v3055_v48 }
 0x40c   : > { %3057 = vmatprep.subr.bf16.mxu0 %v3152_v10 }
 0x40f   : > { %3059 = vmatpush3.bf16.msra.mxu0 %v3058_v51 }
 0x410   : > { %3060 = vmatprep.subr.bf16.mxu0 %v3152_v10 }
 0x413   : > { %3062 = vmatpush3.bf16.msra.mxu0 %v3061_v55  ;;  %v1655_v55 = vld [vmem:[%s3732_s18 + $0x8] sm:$0xff] }
 0x414   : > { %3063 = vmatprep.subr.bf16.mxu0 %v3152_v10  ;;  %v3067_v56 = vpack.c.bf16 %v1655_v55, %v1654_v54 }
 0x416   : > { %3068 = vmatpush3.bf16.msra.mxu1 %v3067_v56 }
 0x417   : > { %3065 = vmatpush3.bf16.msra.mxu0 %v3064_v58  ;;  %3069 = vmatprep.subr.bf16.mxu1 %v3152_v10 }
 0x418   : > { %2948 = vmatprep.subr.mxu0 %v3154_v13 }
 0x4d4   : > { %v1255_v27 = vpop.f32.mrb[2].mxu1 }
 0x4d5   : > { %v2895_v28 = vpop.f32.mrb[3].mxu1 }
 0x4d6   : > { %v2744_v28 = vld [vmem:[%s3771_s5 + $0x6] ss:$0 sm:$0xff] }
 0x4dc   : > { %v1328_v29 = vpop.f32.mrb[4].mxu0 }
 0x4dd   : > { %v1407_v30 = vpop.f32.mrb[4].mxu1  ;;  %v1329_v31 = vadd.f32 %v1328_v29, %v1255_v27  ;;  %v2906_v32 = vpop.f32.mrb[5].mxu0 }
 0x4de   : > { %v2917_v33 = vpop.f32.mrb[5].mxu1  ;;  %v2745_v32 = vld [vmem:[%s3771_s5 + $0x7] ss:$0 sm:$0xff] }
 0x4df   : > { %v1411_v35 = vadd.f32 %v1407_v30, %v1329_v31 }
 0x4e1   : > { %v1419_v36 = vadd.f32 %v2734_v34, %v1411_v35 }
 0x4e3   : > { %v1420_v37 = vmax.f32 %v1419_v36, 0.0  ;;  %v2746_v36 = vld [vmem:[%s3771_s5 + $0x8] ss:$0 sm:$0xff] }
 0x4e5   : > { %1422 = vrot.lane.b32.xlu0 %v1420_v37, %s3156_s7 }
 0x557   : > { %v1423_v38 = vpop.permute.xlu0 %1422 }
 0x558   : > { %v1425_v39 = vadd.f32 %v1423_v38, %v1420_v37 }
 0x55a   : > { %v1427_v40 = vsel %vm855_vm2, %v1425_v39, 0.0 }
 0x55b   : > { %1428 = vadd.xlane.f32.xlu0 %v1427_v40 }
 0x5e8   : > { %v1429_v41 = vpop.xlane.xlu0 %1428 }
 0x5e9   : > { %v1431_v42 = vmul.f32 0.015625, %v1429_v41 }
 0x5eb   : > { %v1432_v43 = vsub.f32 %v1425_v39, %v1431_v42  ;;  %v2747_v42 = vld [vmem:[%s3729_s15] ss:$0 sm:$0xff] }
 0x5ed   : > { %v1433_v44 = vmul.f32 %v1432_v43, %v1432_v43 }
 0x5ef   : > { %v1434_v45 = vsel %vm855_vm2, %v1433_v44, 0.0 }
 0x5f0   : > { %1435 = vadd.xlane.f32.xlu1 %v1434_v45 }
 0x67d   : > { %v1436_v59 = vpop.xlane.xlu1 %1435 }
 0x67e   : > { %v1437_v60 = vmul.f32 0.015625, %v1436_v59 }
 0x680   : > { %v1438_v61 = vadd.f32 1e-05, %v1437_v60 }
 0x682   : > { %3118 = vrsqrt.f32 %v1438_v61 }
 0x68c   : > { %v3119_v62 = vpop.eup %3118 }
 0x68d   : > { %v1440_v0 = vmul.f32 %v3119_v62, %v1432_v43 }
 0x68f   : > { %v1448_v2 = vmul.f32 %v2735_v63, %v1440_v0  ;;  %v2749_v63 = vld [vmem:[%s3730_s16] ss:$0 sm:$0xff] }
 0x691   : > { %v1456_v3 = vadd.f32 %v2736_v1, %v1448_v2  ;;  %v2750_v1 = vld [vmem:[%s3731_s17] ss:$0 sm:$0xff] }
 0x693   : > { %1457 = vst.msk [vmem:[#allocation2 + $0x4] sm:$0xff] %vm855_vm2, %v1456_v3  ;;  %v1464_v5 = vmul.f32 %v2737_v4, %v1456_v3  ;;  %v2751_v4 = vld [vmem:[%s3733_s19] ss:$0 sm:$0xff] }
 0x695   : > { %v1471_v12 = vadd.f32 %v2738_v6, %v1464_v5 }
 0x69a   : > { %v1472_v8 = vld [vmem:[#allocation2] sm:$0xff]  ;;  %v1528_v35 = vld [vmem:[#allocation2 + $0x8] sm:$0xff] }
 0x69b   : > { %v1480_v9 = vld [vmem:[#allocation2 + $0x1] sm:$0xff]  ;;  %v1478_v14 = vmul.f32 %v2739_v7, %v1472_v8  ;;  %v1534_v40 = vmul.f32 %v2746_v36, %v1528_v35 }
 0x69c   : > { %v1488_v15 = vld [vmem:[#allocation2 + $0x2] sm:$0xff]  ;;  %v1486_v18 = vmul.f32 %v2740_v11, %v1480_v9  ;;  %v1741_v11 = vlaneseq }
 0x69d   : > { %v1479_v17 = vadd.f32 %v1478_v14, %v1471_v12  ;;  %v1496_v19 = vld [vmem:[#allocation2 + $0x3] sm:$0xff]  ;;  %v1494_v22 = vmul.f32 %v2741_v16, %v1488_v15  ;;  %v1738_v12 = vld [vmem:[%s850_s21] sm:$0x1]  ;;  %v3159_v16 = vmov -1e+09  }
 0x69e   : > { %v1504_v23 = vld [vmem:[#allocation2 + $0x5] sm:$0xff]  ;;  %v1502_v26 = vmul.f32 %v2742_v20, %v1496_v19  ;;  %v1824_v14 = vshrl.u32 %v1741_v11, 7  ;;  %vm1739_vm4 = vcmp.ne.s32.totalorder %v1738_v12, 0 }
 0x69f   : > { %v1487_v21 = vadd.f32 %v1486_v18, %v1479_v17  ;;  %v1512_v27 = vld [vmem:[#allocation2 + $0x6] sm:$0xff]  ;;  %v1510_v30 = vmul.f32 %v2743_v24, %v1504_v23  ;;  %v1740_v17 = vsel %vm1739_vm4, 0.0, %v3159_v16 }
 0x6a0   : > { %v1520_v31 = vld [vmem:[#allocation2 + $0x7] sm:$0xff]  ;;  %v1518_v34 = vmul.f32 %v2744_v28, %v1512_v27  ;;  %v1825_v15 = vsub.s32 0, %v1824_v14 }
 0x6a1   : > { %v1495_v25 = vadd.f32 %v1494_v22, %v1487_v21  ;;  %v1526_v38 = vmul.f32 %v2745_v32, %v1520_v31 }
 0x6a2   : > { %v3581_v18 = vrot.slane %v1740_v17, %v1825_v15 }
 0x6a3   : > { %v1503_v29 = vadd.f32 %v1502_v26, %v1495_v25 }
 0x6a5   : > { %v1511_v33 = vadd.f32 %v1510_v30, %v1503_v29  ;;  %v3593_v30 = vand.u32 127, %v1741_v11 }
 0x6a7   : > { %v1519_v37 = vadd.f32 %v1518_v34, %v1511_v33  ;;  %vm1938_vm5 = vcmp.ge.s32.totalorder %v3593_v30, 8  ;;  %vm1939_vm6 = vcmp.lt.s32.totalorder %v3593_v30, 16  ;;  %vm1841_vm8 = vcmp.lt.s32.totalorder %v3593_v30, 8 }
 0x6a8   : > { %vm1940_vm7 = vmand %vm1938_vm5, %vm1939_vm6  ;;  %vm2179_vm9 = vcmp.ge.s32.totalorder %v3593_v30, 16  ;;  %vm2180_vm10 = vcmp.lt.s32.totalorder %v3593_v30, 24  ;;  %vm2348_vm12 = vcmp.ge.s32.totalorder %v3593_v30, 24  ;;  %vm2349_vm13 = vcmp.lt.s32.totalorder %v3593_v30, 32 }
 0x6a9   : > { %v1527_v39 = vadd.f32 %v1526_v38, %v1519_v37  ;;  %vm2181_vm11 = vmand %vm2179_vm9, %vm2180_vm10 }
 0x6aa   : > { %vm2350_vm14 = vmand %vm2348_vm12, %vm2349_vm13 }
 0x6ab   : > { %v1535_v41 = vadd.f32 %v1534_v40, %v1527_v39 }
 0x6ad   : > { %2935 = vmatmul.mubr.msk.f32.vlgmr.msra.gmra.mrb[6].mxu0 %vm855_vm2, %v1535_v41 }
 0x6ae   : > { %2950 = vmatprep.mubr.msk.f32.mxu0 %vm3153_vm1, %v3154_v13 }
 0x780   : > { %v1620_v43 = vpop.f32.mrb[6].mxu0 }
 0x781   : > { %v1621_v44 = vadd.f32 %v2747_v42, %v1620_v43  ;;  %v2936_v45 = vpop.f32.mrb[7].mxu0 }
 0x783   : > { %v1624_v46 = vadd.f32 %v1621_v44, %v3399_v53  ;;  %v1656_v53 = vld [vmem:[%s3732_s18 + $0x10] sm:$0xff] }
 0x784   : > { %v3070_v58 = vpack.c.bf16 %v1657_v57, %v1656_v53 }
 0x785   : > { %v1625_v47 = vsel %vm859_vm0, %v1624_v46, 0.0 }
 0x786   : > { %1626 = vadd.xlane.f32.xlu1 %v1625_v47  ;;  %3071 = vmatpush3.bf16.msra.mxu1 %v3070_v58 }
 0x787   : > { %2953 = vmatprep.subr.mxu1 %v3154_v13 }
 0x813   : > { %v1627_v48 = vpop.xlane.xlu1 %1626 }
 0x814   : > { %v1628_v49 = vmul.f32 0.03125, %v1627_v48 }
 0x816   : > { %v1629_v50 = vsub.f32 %v1624_v46, %v1628_v49 }
 0x818   : > { %v1630_v51 = vmul.f32 %v1629_v50, %v1629_v50 }
 0x81a   : > { %v1631_v52 = vsel %vm859_vm0, %v1630_v51, 0.0 }
 0x81b   : > { %1632 = vadd.xlane.f32.xlu1 %v1631_v52 }
 0x8a8   : > { %v1633_v59 = vpop.xlane.xlu1 %1632 }
 0x8a9   : > { %v1634_v60 = vmul.f32 0.03125, %v1633_v59 }
 0x8ab   : > { %v1635_v61 = vadd.f32 1e-05, %v1634_v60 }
 0x8ad   : > { %3120 = vrsqrt.f32 %v1635_v61 }
 0x8b7   : > { %v3121_v62 = vpop.eup %3120 }
 0x8b8   : > { %v1637_v0 = vmul.f32 %v3121_v62, %v1629_v50 }
 0x8ba   : > { %v1645_v2 = vmul.f32 %v2749_v63, %v1637_v0 }
 0x8bc   : > { %v3563_v3 = vadd.f32 %v2750_v1, %v1645_v2 }
 0x8be   : > { %2946 = vmatmul.mubr.msk.f32.vlgmr.msra.gmra.mrb[6].mxu1 %vm859_vm0, %v3563_v3 }
 0x8bf   : > { %2955 = vmatprep.mubr.msk.f32.mxu1 %vm3153_vm1, %v3154_v13 }
 0x991   : > { %v1734_v5 = vpop.f32.mrb[6].mxu1 }
 0x992   : > { %v1735_v6 = vadd.f32 %v2751_v4, %v1734_v5  ;;  %v2947_v7 = vpop.f32.mrb[7].mxu1 }
 0x994   : > { %1847 = vrot.lane.b32.xlu0 %v1735_v6, %s3157_s11  ;;  %1849 = vrot.lane.b32.xlu1 %v1735_v6, %s3158_s8 }
 0xa06   : > { %v1850_v8 = vpop.permute.xlu1 %1849  ;;  %v1848_v9 = vpop.permute.xlu0 %1847 }
 0xa07   : > { %2954 = vmatpush3.xpose.msk.msra.mxu1 %vm1746_vm3, %v1850_v8 }
 0xa08   : > { %2963 = vmatprep.subr.mxu1 %v3154_v13 }
 0xa0a   : > { %2956 = vmatmul.mubr.msk.f32.vlgmr.msra.gmra.mrb[8].mxu1 %vm1746_vm3, %v1848_v9 }
 0xa0b   : > { %2965 = vmatprep.mubr.msk.f32.mxu1 %vm3153_vm1, %v3154_v13 }
 0xadd   : > { %v1921_v19 = vpop.f32.mrb[8].mxu1 }
 0xade   : > { %v1925_v20 = vmul.f32 0.35355338, %v1921_v19  ;;  %v2957_v21 = vpop.f32.mrb[9].mxu1 }
 0xae0   : > { %v1926_v22 = vadd.f32 %v1925_v20, %v3581_v18 }
 0xae2   : > { %v1927_v23 = vsel %vm1746_vm3, %v1926_v22, -inf }
 0xae3   : > { %1928 = vmax.xlane.f32.xlu1 %v1927_v23 }
 0xaf4   : > { %1744 = vrot.lane.b32.xlu1 %v1735_v6, %s3155_s20 }
 0xaf8   : > { %2090 = vrot.lane.b32.xlu1 %v1735_v6, %s3160_s30  ;;  %s3773_s30 = sshll.u32 %s3775_s4, 3 }
 0xafc   : > { %2088 = vrot.lane.b32.xlu1 %v1735_v6, %s3161_s3 }
 0xb00   : > { %2259 = vrot.lane.b32.xlu1 %v1735_v6, %s3162_s6 }
 0xb04   : > { %2257 = vrot.lane.b32.xlu1 %v1735_v6, %s3163_s10  ;;  %s854_s10 = scalar_lea.vmem %s3742_s28, %s3773_s30 }
 0xb70   : > { %v1929_v24 = vpop.xlane.xlu1 %1928 }
 0xb71   : > { %v1930_v25 = vsub.f32 %v1926_v22, %v1929_v24 }
 0xb73   : > { %v1931_v26 = vmul.f32 1.442695, %v1930_v25 }
 0xb74   : > { %v1745_v27 = vpop.permute.xlu1 %1744 }
 0xb75   : > { %3122 = vpow2.f32 %v1931_v26  ;;  %2949 = vmatpush3.xpose.msk.msra.mxu0 %vm1746_vm3, %v1745_v27 }
 0xb76   : > { %2958 = vmatprep.subr.mxu0 %v3154_v13 }
 0xb78   : > { %2951 = vmatmul.mubr.msk.f32.vlgmr.msra.gmra.mrb[8].mxu0 %vm1746_vm3, %v1735_v6  ;;  %v2091_v32 = vpop.permute.xlu1 %2090 }
 0xb79   : > { %2960 = vmatprep.mubr.msk.f32.mxu0 %vm3153_vm1, %v3154_v13 }
 0xb7c   : > { %v2089_v34 = vpop.permute.xlu1 %2088 }
 0xb7f   : > { %v3123_v28 = vpop.eup %3122 }
 0xb80   : > { %v1933_v29 = vsel %vm1746_vm3, %v3123_v28, 0.0  ;;  %v2260_v37 = vpop.permute.xlu1 %2259 }
 0xb81   : > { %1934 = vadd.xlane.f32.xlu0 %v1933_v29 }
 0xb84   : > { %v2258_v38 = vpop.permute.xlu1 %2257 }
 0xb97   : > { %1843 = vrot.lane.b32.xlu0 %v1735_v6, %s3156_s7 }
 0xc0e   : > { %v1935_v31 = vpop.xlane.xlu0 %1934 }
 0xc0f   : > { %3124 = vrcp.f32 %v1935_v31 }
 0xc12   : > { %v3598_v33 = vpop.permute.xlu0 %1843 }
 0xc13   : > { %2959 = vmatpush3.msk.msra.mxu0 %vm1940_vm7, %v3598_v33  ;;  %2964 = vmatpush3.msk.msra.mxu1 %vm1841_vm8, %v3598_v33 }
 0xc14   : > { %2968 = vmatprep.subr.mxu0 %v3154_v13  ;;  %2973 = vmatprep.subr.mxu1 %v3154_v13 }
 0xc19   : > { %v3125_v35 = vpop.eup %3124 }
 0xc1a   : > { %v1937_v36 = vmul.f32 %v3125_v35, %v3123_v28 }
 0xc1c   : > { %2961 = vmatmul.mubr.msk.f32.vlgmr.msra.gmra.mrb[10].mxu0 %vm1746_vm3, %v1937_v36  ;;  %v2458_v36 = vld [vmem:[%s3738_s24 + $0x10] sm:$0xff] }
 0xc1d   : > { %2969 = vmatpush3.xpose.msk.msra.mxu0 %vm1746_vm3, %v2091_v32  ;;  %2970 = vmatprep.mubr.msk.f32.mxu0 %vm3153_vm1, %v3154_v13 }
 0xc1e   : > { %2978 = vmatprep.subr.mxu0 %v3154_v13 }
 0xc20   : > { %2971 = vmatmul.mubr.msk.f32.vlgmr.msra.gmra.mrb[12].mxu0 %vm1746_vm3, %v2089_v34  ;;  %v2456_v34 = vld [vmem:[%s3738_s24] sm:$0xff] }
 0xc21   : > { %2979 = vmatpush3.xpose.msk.msra.mxu0 %vm1746_vm3, %v2260_v37  ;;  %2980 = vmatprep.mubr.msk.f32.mxu0 %vm3153_vm1, %v3154_v13  ;;  %v2459_v37 = vld [vmem:[%s3738_s24 + $0x18] sm:$0xff] }
 0xc22   : > { %3072 = vmatprep.subr.bf16.mxu0 %v3152_v10 }
 0xc24   : > { %2981 = vmatmul.mubr.msk.f32.vlgmr.msra.gmra.mrb[14].mxu0 %vm1746_vm3, %v2258_v38  ;;  %v3076_v38 = vpack.c.bf16 %v2459_v37, %v2458_v36 }
 0xc25   : > { %2996 = vmatprep.mubr.msk.f32.mxu0 %vm3153_vm1, %v3154_v13 }
 0xc4b   : > { %v1817_v39 = vpop.f32.mrb[8].mxu0 }
 0xc4c   : > { %v1821_v40 = vmul.f32 0.35355338, %v1817_v39  ;;  %v2952_v41 = vpop.f32.mrb[9].mxu0 }
 0xc4e   : > { %v1828_v42 = vadd.f32 %v3581_v18, %v1821_v40 }
 0xc50   : > { %v1829_v43 = vsel %vm1746_vm3, %v1828_v42, -inf }
 0xc51   : > { %1830 = vmax.xlane.f32.xlu1 %v1829_v43  ;;  %v2769_v43 = vld [vmem:[%s3736_s22] ss:$0 sm:$0xff] }
 0xcde   : > { %v1831_v44 = vpop.xlane.xlu1 %1830 }
 0xcdf   : > { %v1832_v45 = vsub.f32 %v1828_v42, %v1831_v44 }
 0xce1   : > { %v1833_v46 = vmul.f32 1.442695, %v1832_v45  ;;  %v2770_v45 = vld [vmem:[%s3737_s23] ss:$0 sm:$0xff] }
 0xce3   : > { %3126 = vpow2.f32 %v1833_v46 }
 0xced   : > { %v3127_v47 = vpop.eup %3126 }
 0xcee   : > { %v1835_v48 = vsel %vm1746_vm3, %v3127_v47, 0.0 }
 0xcef   : > { %v2011_v49 = vpop.f32.mrb[10].mxu0  ;;  %1836 = vadd.xlane.f32.xlu1 %v1835_v48  ;;  %v2547_v48 = vld [vmem:[%s3740_s26] sm:$0xff] }
 0xcf0   : > { %v2962_v50 = vpop.f32.mrb[11].mxu0 }
 0xcf3   : > { %v2162_v51 = vpop.f32.mrb[12].mxu0 }
 0xcf4   : > { %v2166_v52 = vmul.f32 0.35355338, %v2162_v51  ;;  %v2972_v54 = vpop.f32.mrb[13].mxu0  ;;  %v2549_v51 = vld [vmem:[%s3740_s26 + $0x10] sm:$0xff] }
 0xcf6   : > { %v2167_v55 = vadd.f32 %v2166_v52, %v3581_v18  ;;  %v2550_v52 = vld [vmem:[%s3740_s26 + $0x18] sm:$0xff] }
 0xcf7   : > { %v2331_v56 = vpop.f32.mrb[14].mxu0  ;;  %v3082_v54 = vpack.c.bf16 %v2550_v52, %v2549_v51 }
 0xcf8   : > { %v2335_v53 = vmul.f32 0.35355338, %v2331_v56  ;;  %v2982_v57 = vpop.f32.mrb[15].mxu0  ;;  %v2168_v58 = vsel %vm1746_vm3, %v2167_v55, -inf  ;;  %v2552_v56 = vld [vmem:[%s3740_s26 + $0x28] sm:$0xff] }
 0xcf9   : > { %2169 = vmax.xlane.f32.xlu0 %v2168_v58  ;;  %v2553_v57 = vld [vmem:[%s3740_s26 + $0x30] sm:$0xff]  ;;  %v2554_v58 = vld [vmem:[%s3740_s26 + $0x38] sm:$0xff] }
 0xcfa   : > { %v2336_v59 = vadd.f32 %v2335_v53, %v3581_v18 }
 0xcfc   : > { %v2337_v60 = vsel %vm1746_vm3, %v2336_v59, -inf }
 0xcfd   : > { %2338 = vmax.xlane.f32.xlu0 %v2337_v60  ;;  %v2771_v60 = vld [vmem:[%s3739_s25] ss:$0 sm:$0xff] }
 0xd7c   : > { %v1837_v61 = vpop.xlane.xlu1 %1836 }
 0xd7d   : > { %3128 = vrcp.f32 %v1837_v61 }
 0xd86   : > { %v2170_v62 = vpop.xlane.xlu0 %2169 }
 0xd87   : > { %v3129_v63 = vpop.eup %3128  ;;  %v2171_v0 = vsub.f32 %v2167_v55, %v2170_v62  ;;  %v2551_v55 = vld [vmem:[%s3740_s26 + $0x20] sm:$0xff] }
 0xd88   : > { %v1839_v1 = vmul.f32 %v3129_v63, %v3127_v47  ;;  %v3085_v53 = vpack.c.bf16 %v2552_v56, %v2551_v55 }
 0xd89   : > { %v2172_v2 = vmul.f32 1.442695, %v2171_v0 }
 0xd8a   : > { %v2339_v4 = vpop.xlane.xlu0 %2338  ;;  %2966 = vmatmul.mubr.msk.f32.vlgmr.msra.gmra.mrb[10].mxu1 %vm1746_vm3, %v1839_v1 }
 0xd8b   : > { %3130 = vpow2.f32 %v2172_v2  ;;  %v2340_v5 = vsub.f32 %v2336_v59, %v2339_v4  ;;  %2974 = vmatpush3.msk.msra.mxu1 %vm2181_vm11, %v3598_v33  ;;  %2975 = vmatprep.mubr.msk.f32.mxu1 %vm3153_vm1, %v3154_v13  ;;  %v3088_v59 = vpack.c.bf16 %v2554_v58, %v2553_v57 }
 0xd8c   : > { %2983 = vmatprep.subr.mxu1 %v3154_v13 }
 0xd8d   : > { %v2341_v6 = vmul.f32 1.442695, %v2340_v5  ;;  %v2774_v5 = vld [vmem:[%s3741_s27] ss:$0 sm:$0xff] }
 0xd8f   : > { %3132 = vpow2.f32 %v2341_v6 }
 0xd95   : > { %v3131_v7 = vpop.eup %3130 }
 0xd96   : > { %v2174_v8 = vsel %vm1746_vm3, %v3131_v7, 0.0 }
 0xd97   : > { %2175 = vadd.xlane.f32.xlu0 %v2174_v8 }
 0xd99   : > { %v3133_v9 = vpop.eup %3132 }
 0xd9a   : > { %v2343_v11 = vsel %vm1746_vm3, %v3133_v9, 0.0 }
 0xd9b   : > { %2344 = vadd.xlane.f32.xlu1 %v2343_v11 }
 0xe24   : > { %v2176_v12 = vpop.xlane.xlu0 %2175 }
 0xe25   : > { %3134 = vrcp.f32 %v2176_v12 }
 0xe28   : > { %v2345_v14 = vpop.xlane.xlu1 %2344 }
 0xe29   : > { %3136 = vrcp.f32 %v2345_v14 }
 0xe2f   : > { %v3135_v15 = vpop.eup %3134 }
 0xe30   : > { %v2178_v16 = vmul.f32 %v3135_v15, %v3131_v7 }
 0xe32   : > { %2976 = vmatmul.mubr.msk.f32.vlgmr.msra.gmra.mrb[12].mxu1 %vm1746_vm3, %v2178_v16 }
 0xe33   : > { %v3137_v17 = vpop.eup %3136  ;;  %2984 = vmatpush3.msk.msra.mxu1 %vm2350_vm14, %v3598_v33  ;;  %2985 = vmatprep.mubr.msk.f32.mxu1 %vm3153_vm1, %v3154_v13 }
 0xe34   : > { %v2347_v18 = vmul.f32 %v3137_v17, %v3133_v9  ;;  %3078 = vmatprep.subr.bf16.mxu1 %v3152_v10 }
 0xe36   : > { %2986 = vmatmul.mubr.msk.f32.vlgmr.msra.gmra.mrb[14].mxu1 %vm1746_vm3, %v2347_v18 }
 0xe37   : > { %3015 = vmatprep.mubr.msk.f32.mxu1 %vm3153_vm1, %v3154_v13 }
 0xe5d   : > { %v2084_v19 = vpop.f32.mrb[10].mxu1 }
 0xe5e   : > { %v2085_v20 = vadd.f32 %v2084_v19, %v2011_v49  ;;  %v2967_v21 = vpop.f32.mrb[11].mxu1  ;;  %v2548_v49 = vld [vmem:[%s3740_s26 + $0x8] sm:$0xff] }
 0xe5f   : > { %v3079_v50 = vpack.c.bf16 %v2548_v49, %v2547_v48 }
 0xe61   : > { %3080 = vmatpush3.bf16.msra.mxu1 %v3079_v50 }
 0xe62   : > { %3081 = vmatprep.subr.bf16.mxu1 %v3152_v10 }
 0xe65   : > { %3083 = vmatpush3.bf16.msra.mxu1 %v3082_v54 }
 0xe66   : > { %3084 = vmatprep.subr.bf16.mxu1 %v3152_v10 }
 0xe69   : > { %3086 = vmatpush3.bf16.msra.mxu1 %v3085_v53 }
 0xe6a   : > { %3087 = vmatprep.subr.bf16.mxu1 %v3152_v10 }
 0xe6d   : > { %3089 = vmatpush3.bf16.msra.mxu1 %v3088_v59 }
 0xf05   : > { %v2252_v22 = vpop.f32.mrb[12].mxu1 }
 0xf06   : > { %v2256_v23 = vadd.f32 %v2252_v22, %v2085_v20  ;;  %v2977_v24 = vpop.f32.mrb[13].mxu1 }
 0xf09   : > { %v2421_v25 = vpop.f32.mrb[14].mxu1 }
 0xf0a   : > { %v2425_v26 = vadd.f32 %v2421_v25, %v2256_v23  ;;  %v2987_v27 = vpop.f32.mrb[15].mxu1 }
 0xf0c   : > { %v3644_v28 = vadd.f32 %v2425_v26, %v3563_v3  ;;  %v2457_v3 = vld [vmem:[%s3738_s24 + $0x8] sm:$0xff] }
 0xf0d   : > { %v3073_v35 = vpack.c.bf16 %v2457_v3, %v2456_v34 }
 0xf0e   : > { %v2427_v29 = vsel %vm859_vm0, %v3644_v28, 0.0 }
 0xf0f   : > { %2428 = vadd.xlane.f32.xlu0 %v2427_v29  ;;  %3074 = vmatpush3.bf16.msra.mxu0 %v3073_v35 }
 0xf10   : > { %3075 = vmatprep.subr.bf16.mxu0 %v3152_v10 }
 0xf13   : > { %3077 = vmatpush3.bf16.msra.mxu0 %v3076_v38 }
 0xf9c   : > { %v2429_v30 = vpop.xlane.xlu0 %2428 }
 0xf9d   : > { %v2430_v31 = vmul.f32 0.03125, %v2429_v30 }
 0xf9f   : > { %v2431_v13 = vsub.f32 %v3644_v28, %v2430_v31 }
 0xfa1   : > { %v2432_v32 = vmul.f32 %v2431_v13, %v2431_v13 }
 0xfa3   : > { %v2433_v33 = vsel %vm859_vm0, %v2432_v32, 0.0 }
 0xfa4   : > { %2434 = vadd.xlane.f32.xlu1 %v2433_v33 }
0x1031   : > { %v2435_v39 = vpop.xlane.xlu1 %2434 }
0x1032   : > { %v2436_v40 = vmul.f32 0.03125, %v2435_v39 }
0x1034   : > { %v2437_v41 = vadd.f32 1e-05, %v2436_v40 }
0x1036   : > { %3138 = vrsqrt.f32 %v2437_v41 }
0x1040   : > { %v3139_v42 = vpop.eup %3138 }
0x1041   : > { %v2439_v44 = vmul.f32 %v3139_v42, %v2431_v13 }
0x1043   : > { %v2447_v46 = vmul.f32 %v2769_v43, %v2439_v44 }
0x1045   : > { %v2455_v47 = vadd.f32 %v2770_v45, %v2447_v46 }
0x1047   : > { %2997 = vmatmul.mubr.msk.f32.vlgmr.msra.gmra.mrb[16].mxu0 %vm859_vm0, %v2455_v47 }
0x111a   : > { %v2536_v61 = vpop.f32.mrb[16].mxu0 }
0x111b   : > { %v2537_v62 = vadd.f32 %v2771_v60, %v2536_v61  ;;  %v2998_v63 = vpop.f32.mrb[17].mxu0 }
0x111d   : > { %v2773_v0 = vmul.f32 -1.442695, %v2537_v62 }
0x111f   : > { %3140 = vpow2.f32 %v2773_v0 }
0x1129   : > { %v3141_v10 = vpop.eup %3140 }
0x112a   : > { %v2543_v1 = vadd.f32 1.0, %v3141_v10 }
0x112c   : > { %3142 = vrcp.f32 %v2543_v1 }
0x1136   : > { %v3143_v2 = vpop.eup %3142 }
0x1137   : > { %v2546_v4 = vmul.f32 %v3143_v2, %v2537_v62 }
0x1139   : > { %3016 = vmatmul.mubr.msk.f32.vlgmr.msra.gmra.mrb[16].mxu1 %vm855_vm2, %v2546_v4 }
0x120c   : > { %v2631_v6 = vpop.f32.mrb[16].mxu1 }
0x120d   : > { %v2632_v7 = vadd.f32 %v2774_v5, %v2631_v6  ;;  %v3017_v8 = vpop.f32.mrb[17].mxu1 }
0x120f   : > { %v2635_v9 = vadd.f32 %v2632_v7, %v3644_v28 }
0x1211   : > { %2636 = vst.msk [vmem:[%s854_s10] sm:$0xff] %vm859_vm0, %v2635_v9 }
0x1212 PF: > { %s38_s1 = sadd.s32 1, %s3150_s1  }
0x1213   : > { %p35_p4 = scmp.ge.s32.totalorder %s38_s1, 4  }
0x1215   :  { %37 = sbr.rel (!%p35_p4) target bundleno = 14 (0xe), region = 169 }

// kernel: evolved_encoder_forward.3
= control target key start
LH: loop header
LB: loop body
LE: loop exit
PB: predicated region body
PF: predicated region fallthrough
CT: control target
= control target key end

     0   :  { %s4852_s0 = inlined_call_operand.vmem [shape: f32[2,8,32], index: 0, kind: input, shape index: {}]   ;;  %s4853_s1 = inlined_call_operand.vmem [shape: s32[2,1,8], index: 1, kind: input, shape index: {}]   ;;  %s4854_s2 = inlined_call_operand.vmem [shape: f32[1,32], index: 2, kind: input, shape index: {}]   ;;  %s4855_s3 = inlined_call_operand.vmem [shape: f32[1,32], index: 3, kind: input, shape index: {}]   ;;  %s4856_s4 = inlined_call_operand.vmem [shape: f32[3,32,64], index: 4, kind: input, shape index: {}]   ;;  %s4857_s5 = inlined_call_operand.vmem [shape: f32[1,64], index: 5, kind: input, shape index: {}]   ;;  %s4858_s6 = inlined_call_operand.vmem [shape: f32[1,32], index: 6, kind: input, shape index: {}]   ;;  %s4859_s7 = inlined_call_operand.vmem [shape: f32[1,32], index: 7, kind: input, shape index: {}]   ;;  %s4860_s8 = inlined_call_operand.vmem [shape: f32[3,32,128], index: 8, kind: input, shape index: {}]   ;;  %s4861_s9 = inlined_call_operand.vmem [shape: f32[1,128], index: 9, kind: input, shape index: {}]   ;;  %s4862_s10 = inlined_call_operand.vmem [shape: f32[1,64], index: 10, kind: input, shape index: {}]   ;;  %s4863_s11 = inlined_call_operand.hbm [shape: f32[1,64], index: 11, kind: input, shape index: {}]   ;;  %s4864_s12 = inlined_call_operand.vmem [shape: f32[9,64], index: 12, kind: input, shape index: {}]   ;;  %s4865_s13 = inlined_call_operand.hbm [shape: f32[1,64], index: 13, kind: input, shape index: {}]   ;;  %s4866_s14 = inlined_call_operand.vmem [shape: f32[64,32], index: 14, kind: input, shape index: {}]   ;;  %s4867_s15 = inlined_call_operand.hbm [shape: f32[1,32], index: 15, kind: input, shape index: {}]   ;;  %s4868_s16 = inlined_call_operand.hbm [shape: f32[1,32], index: 16, kind: input, shape index: {}]   ;;  %s4869_s17 = inlined_call_operand.hbm [shape: f32[1,32], index: 17, kind: input, shape index: {}]   ;;  %s4870_s18 = inlined_call_operand.vmem [shape: f32[32,96], index: 18, kind: input, shape index: {}]   ;;  %s4871_s19 = inlined_call_operand.hbm [shape: f32[1,96], index: 19, kind: input, shape index: {}]   ;;  %s4872_s20 = inlined_call_operand.vmem [shape: f32[32,32], index: 20, kind: input, shape index: {}]   ;;  %s4873_s21 = inlined_call_operand.hbm [shape: f32[1,32], index: 21, kind: input, shape index: {}]   ;;  %s4874_s22 = inlined_call_operand.hbm [shape: f32[1,32], index: 22, kind: input, shape index: {}]   ;;  %s4875_s23 = inlined_call_operand.hbm [shape: f32[1,32], index: 23, kind: input, shape index: {}]   ;;  %s4876_s24 = inlined_call_operand.vmem [shape: f32[32,64], index: 24, kind: input, shape index: {}]   ;;  %s4877_s25 = inlined_call_operand.hbm [shape: f32[1,64], index: 25, kind: input, shape index: {}]   ;;  %s4878_s26 = inlined_call_operand.vmem [shape: f32[64,32], index: 26, kind: input, shape index: {}]   ;;  %s4879_s27 = inlined_call_operand.hbm [shape: f32[1,32], index: 27, kind: input, shape index: {}]   ;;  %s4880_s28 = inlined_call_operand.hbm [shape: f32[2,8,32], index: 28, kind: output, shape index: {}]  }
   0x1   :  { %4897 = sst [smem:[#allocation36_spill]] %s4852_s0 }
   0x2   :  { %4898 = sst [smem:[#allocation37_spill]] %s4853_s1 }
   0x3   :  { %4899 = sst [smem:[#allocation38_spill]] %s4854_s2 }
   0x4   :  { %4900 = sst [smem:[#allocation39_spill]] %s4855_s3 }
   0x5   :  { %4901 = sst [smem:[#allocation40_spill]] %s4856_s4 }
   0x6   :  { %4902 = sst [smem:[#allocation41_spill]] %s4857_s5 }
   0x7   :  { %4903 = sst [smem:[#allocation42_spill]] %s4858_s6 }
   0x8   :  { %4904 = sst [smem:[#allocation43_spill]] %s4859_s7 }
   0x9   :  { %4905 = sst [smem:[#allocation44_spill]] %s4860_s8 }
   0xa   :  { %4906 = sst [smem:[#allocation45_spill]] %s4861_s9 }
   0xb   :  { %4907 = sst [smem:[#allocation46_spill]] %s4862_s10 }
   0xc   :  { %4908 = sst [smem:[#allocation47_spill]] %s4863_s11 }
   0xd   :  { %4909 = sst [smem:[#allocation48_spill]] %s4864_s12 }
   0xe   :  { %4910 = sst [smem:[#allocation49_spill]] %s4865_s13 }
   0xf   :  { %4911 = sst [smem:[#allocation50_spill]] %s4868_s16 }
  0x10   :  { %4912 = sst [smem:[#allocation51_spill]] %s4880_s28 }
  0x11   :  { %33 = vsyncpa [#allocation4], 0 }
  0x12   :  { %34 = vsyncpa [#allocation7], 0 }
  0x13   :  { %35 = vsyncpa [#allocation10], 0 }
  0x14   :  { %36 = vsyncpa [#allocation13], 0 }
  0x15   :  { %37 = vsyncpa [#allocation16], 0 }
  0x16   :  { %38 = vsyncpa [#allocation19], 0 }
  0x17   :  { %39 = vsyncpa [#allocation5], 0 }
  0x18   :  { %41 = vsyncpa [#allocation5 + $0x1], 0  ;;  %s4139_s4 = smov 0   ;;  %s4141_s8 = smov 0  }
  0x19   :  { %s4143_s5 = smov 0   ;;  %s4145_s9 = smov 0  }
  0x1a LB: > { %4913 = sst [smem:[#allocation29_spill]] %s3956_s4  ;;  %s4160_s30 = sadd.s32 4294967295, %s3968_s9   ;;  %s3968_s9 = sphi %s4145_s9, %s4960_s9   ;;  %s3964_s5 = sphi %s4143_s5, %s4962_s5   ;;  %s3960_s8 = sphi %s4141_s8, %s4964_s8   ;;  %s3956_s4 = sphi %s4139_s4, %s4963_s4  }
  0x1b   : > { %4914 = sst [smem:[#allocation30_spill]] %s3964_s5  ;;  %s2964_s3 = sadd.s32 4294967294, %s3968_s9  }
  0x1c   : > { %4915 = sst [smem:[#allocation31_spill]] %s3968_s9  ;;  %s4164_s6 = sadd.s32 1, %s3968_s9  }
  0x1d   : > { %4916 = sst [smem:[#allocation32_spill]] %s4164_s6  ;;  %s652_s10 = sadd.s32 1, %s3964_s5 }
  0x1e   : > { %s649_s0 = ssub.s32 %s3968_s9, %s4164_s6  ;;  %p662_p0 = scmp.ne.s32.totalorder %s3964_s5, %s3960_s8 }
  0x1f   : > { %p650_p1 = scmp.eq.s32.totalorder %s649_s0, 0  ;;  %p663_p2 = scmp.eq.s32.totalorder %s4160_s30, 1 }
  0x20   : > { %p668_p3 = scmp.ne.s32.totalorder %s3960_s8, %s3956_s4  ;;  %p669_p4 = scmp.eq.s32.totalorder %s2964_s3, 1 }
  0x21   : > { %s4175_s11 = scalar_select %p650_p1, %s3964_s5, %s652_s10  }
  0x22   : > { %p4177_p5 = por %p663_p2, %p662_p0  ;;  %p4181_p6 = por %p669_p4, %p668_p3 }
  0x23   : > { %4917 = sst [smem:[#allocation33_spill]] %s4175_s11  ;;  %p2965_p7 = scmp.ge.s32.totalorder %s3968_s9, 1 }
  0x24   : > { %s4918_s29 = scalar_select %p4177_p5, 1, 0 }
  0x25   : > { %s4920_s2 = scalar_select %p4181_p6, 1, 0 }
  0x26   : > { %4919 = sst [smem:[#allocation34_spill]] %s4918_s29  ;;  %p676_p8 = scmp.lt.s32.totalorder %s3968_s9, 3 }
  0x27   : > { %4921 = sst [smem:[#allocation35_spill]] %s4920_s2  ;;  %p4891_p9 = scmp.eq.s32.totalorder %s4160_s30, 0 }
  0x28   : > { %p4188_p10 = pnand %p2965_p7, %p676_p8  ;;  %s3970_s12 = smov [#allocation6]  }
  0x29   : > { %s730_s20 = sshll.u32 %s3970_s12, 4  ;;  %s3971_s1 = smov [#allocation9]   ;;  %s731_s20 = int_to_ptr.vmem [resolvable:$true] %s730_s20 }
  0x2a   : > { %s4922_s7 = scalar_select %p4188_p10, 1, 0 }
  0x2b   : > { %p3424_p11 = pneg %p4188_p10  ;;  %s755_s3 = sshll.u32 %s3971_s1, 4  ;;  %s4200_s3 = int_to_ptr.vmem [resolvable:$true] %s755_s3 }
  0x2c   : > { %s3972_s0 = smov [#allocation12]   ;;  %s4924_s13 = sld [smem:[#allocation49_spill]] }
  0x2d   : > { %p4196_p12 = pnand %p4891_p9, %p3424_p11  ;;  %s780_s11 = sshll.u32 %s3972_s0, 4  ;;  %s4202_s11 = int_to_ptr.vmem [resolvable:$true] %s780_s11 }
  0x2f   : > { %p4212_p0 = pneg %p4196_p12 }
  0x32   : > { %s3574_s12 = scalar_lea.hbm %s4924_s13, 16 }
  0x33   : > { %p3575_p13 = scmp.ne.s32.totalorder %s4924_s13, %s3574_s12  ;;  %p3581_p3 = scmp.lt.u32.totalorder %s3574_s12, %s4924_s13 }
  0x35   : > { %p3577_p1 = pnand %p4212_p0, %p3575_p13 }
  0x37   : > { %p3578_p2 = pneg %p3577_p1 }
  0x39   : > { %p3583_p4 = pnand %p3581_p3, %p3578_p2 }
  0x3b   : > { %3586 = shalt.err (!%p3583_p4)
}
  0x3c   : > { %s3587_s5 = scalar_lea.vmem %s731_s20, 16  ;;  %s3594_s4 = scalar_lea.vmem %s731_s20, 32 }
  0x3d   : > { %p3588_p7 = scmp.ne.s32.totalorder %s731_s20, %s3587_s5  ;;  %p3595_p9 = scmp.lt.s32.totalorder %s731_s20, %s731_s20 }
  0x3e   : > { %p3596_p6 = scmp.lt.s32.totalorder %s3594_s4, %s3587_s5 }
  0x3f   : > { %p3590_p8 = pnand %p3588_p7, %p4212_p0 }
  0x40   : > { %p3597_p5 = por %p3596_p6, %p3595_p9 }
  0x41   : > { %p3591_p11 = pneg %p3590_p8 }
  0x43   : > { %p3598_p10 = pnand %p3597_p5, %p3591_p11 }
  0x45   : > { %3601 = shalt.err (!%p3598_p10)
}
  0x46   : > { %3430 = dma.hbm_to_vmem [thread:$0]  (!%p4196_p12), %s4924_s13, 16, %s731_s20, [#allocation7]  }
  0x47   : > { %s4926_s16 = sld [smem:[#allocation50_spill]] }
  0x4d   : > { %s3602_s0 = scalar_lea.hbm %s4926_s16, 16 }
  0x4e   : > { %p3603_p13 = scmp.ne.s32.totalorder %s4926_s16, %s3602_s0  ;;  %p3609_p5 = scmp.lt.u32.totalorder %s3602_s0, %s4926_s16 }
  0x50   : > { %p3605_p1 = pnand %p3603_p13, %p4212_p0 }
  0x52   : > { %p3606_p6 = pneg %p3605_p1 }
  0x54   : > { %p3611_p9 = pnand %p3609_p5, %p3606_p6 }
  0x56   : > { %3614 = shalt.err (!%p3611_p9)
}
  0x57   : > { %s3615_s20 = scalar_lea.vmem %s4200_s3, 16  ;;  %s3622_s28 = scalar_lea.vmem %s4200_s3, 32 }
  0x58   : > { %p3616_p10 = scmp.ne.s32.totalorder %s4200_s3, %s3615_s20  ;;  %p3623_p4 = scmp.lt.s32.totalorder %s4200_s3, %s4200_s3 }
  0x59   : > { %p3624_p7 = scmp.lt.s32.totalorder %s3622_s28, %s3615_s20 }
  0x5a   : > { %p3618_p2 = pnand %p3616_p10, %p4212_p0 }
  0x5b   : > { %p3625_p8 = por %p3624_p7, %p3623_p4 }
  0x5c   : > { %p3619_p3 = pneg %p3618_p2 }
  0x5e   : > { %p3626_p11 = pnand %p3625_p8, %p3619_p3 }
  0x60   : > { %3629 = shalt.err (!%p3626_p11)
}
  0x61   : > { %3436 = dma.hbm_to_vmem [thread:$0]  (!%p4196_p12), %s4926_s16, 16, %s4200_s3, [#allocation10]  }
  0x62   : > { %s3630_s12 = scalar_lea.hbm %s4871_s19, 16 }
  0x63   : > { %p3631_p13 = scmp.ne.s32.totalorder %s4871_s19, %s3630_s12  ;;  %p3637_p5 = scmp.lt.u32.totalorder %s3630_s12, %s4871_s19 }
  0x65   : > { %p3633_p1 = pnand %p3631_p13, %p4212_p0 }
  0x67   : > { %p3634_p6 = pneg %p3633_p1 }
  0x69   : > { %p3639_p9 = pnand %p3637_p5, %p3634_p6 }
  0x6b   : > { %3642 = shalt.err (!%p3639_p9)
}
  0x6c   : > { %s3643_s3 = scalar_lea.vmem %s4202_s11, 16  ;;  %s3650_s28 = scalar_lea.vmem %s4202_s11, 32 }
  0x6d   : > { %p3644_p10 = scmp.ne.s32.totalorder %s4202_s11, %s3643_s3  ;;  %p3651_p4 = scmp.lt.s32.totalorder %s4202_s11, %s4202_s11 }
  0x6e   : > { %p3652_p7 = scmp.lt.s32.totalorder %s3650_s28, %s3643_s3 }
  0x6f   : > { %p3646_p2 = pnand %p3644_p10, %p4212_p0 }
  0x70   : > { %p3653_p8 = por %p3652_p7, %p3651_p4 }
  0x71   : > { %p3647_p3 = pneg %p3646_p2 }
  0x73   : > { %p3654_p11 = pnand %p3653_p8, %p3647_p3 }
  0x75   : > { %3657 = shalt.err (!%p3654_p11)
}
  0x76   : > { %3442 = dma.hbm_to_vmem [thread:$0]  (!%p4196_p12), %s4871_s19, 16, %s4202_s11, [#allocation13]  }
  0x77   : > { %s3973_s2 = smov [#allocation15]   ;;  %s3974_s12 = smov [#allocation18]  }
  0x78   : > { %s805_s9 = sshll.u32 %s3973_s2, 4  ;;  %s830_s0 = sshll.u32 %s3974_s12, 4  ;;  %s806_s9 = int_to_ptr.vmem [resolvable:$true] %s805_s9  ;;  %s831_s0 = int_to_ptr.vmem [resolvable:$true] %s830_s0 }
  0x79   : > { %s3658_s20 = scalar_lea.hbm %s4874_s22, 16 }
  0x7a   : > { %p3659_p13 = scmp.ne.s32.totalorder %s4874_s22, %s3658_s20  ;;  %p3665_p5 = scmp.lt.u32.totalorder %s3658_s20, %s4874_s22 }
  0x7c   : > { %p3661_p1 = pnand %p3659_p13, %p4212_p0 }
  0x7e   : > { %p3662_p6 = pneg %p3661_p1 }
  0x80   : > { %p3667_p9 = pnand %p3665_p5, %p3662_p6 }
  0x82   : > { %3670 = shalt.err (!%p3667_p9)
}
  0x83   : > { %s3671_s11 = scalar_lea.vmem %s806_s9, 16  ;;  %s3678_s6 = scalar_lea.vmem %s806_s9, 32 }
  0x84   : > { %p3672_p10 = scmp.ne.s32.totalorder %s806_s9, %s3671_s11  ;;  %p3679_p4 = scmp.lt.s32.totalorder %s806_s9, %s806_s9 }
  0x85   : > { %p3680_p7 = scmp.lt.s32.totalorder %s3678_s6, %s3671_s11 }
  0x86   : > { %p3674_p2 = pnand %p3672_p10, %p4212_p0 }
  0x87   : > { %p3681_p8 = por %p3680_p7, %p3679_p4 }
  0x88   : > { %p3675_p3 = pneg %p3674_p2 }
  0x8a   : > { %p3682_p11 = pnand %p3681_p8, %p3675_p3 }
  0x8c   : > { %3685 = shalt.err (!%p3682_p11)
}
  0x8d   : > { %3448 = dma.hbm_to_vmem [thread:$0]  (!%p4196_p12), %s4874_s22, 16, %s806_s9, [#allocation16]  }
  0x8e   : > { %s3686_s4 = scalar_lea.hbm %s4877_s25, 16 }
  0x8f   : > { %p3687_p13 = scmp.ne.s32.totalorder %s4877_s25, %s3686_s4  ;;  %p3693_p5 = scmp.lt.u32.totalorder %s3686_s4, %s4877_s25 }
  0x91   : > { %p3689_p1 = pnand %p3687_p13, %p4212_p0 }
  0x93   : > { %p3690_p6 = pneg %p3689_p1 }
  0x95   : > { %p3695_p9 = pnand %p3693_p5, %p3690_p6 }
  0x97   : > { %3698 = shalt.err (!%p3695_p9)
}
  0x98   : > { %s3699_s11 = scalar_lea.vmem %s831_s0, 16  ;;  %s3706_s9 = scalar_lea.vmem %s831_s0, 32 }
  0x99   : > { %p3700_p10 = scmp.ne.s32.totalorder %s831_s0, %s3699_s11  ;;  %p3707_p4 = scmp.lt.s32.totalorder %s831_s0, %s831_s0 }
  0x9a   : > { %p3708_p7 = scmp.lt.s32.totalorder %s3706_s9, %s3699_s11 }
  0x9b   : > { %p3702_p2 = pnand %p3700_p10, %p4212_p0 }
  0x9c   : > { %p3709_p8 = por %p3708_p7, %p3707_p4 }
  0x9d   : > { %p3703_p3 = pneg %p3702_p2 }
  0x9f   : > { %p3710_p11 = pnand %p3709_p8, %p3703_p3 }
  0xa1   : > { %3713 = shalt.err (!%p3710_p11)
}
  0xa2   : > { %3454 = dma.hbm_to_vmem [thread:$0]  (!%p4196_p12), %s4877_s25, 16, %s831_s0, [#allocation19]  }
  0xa3   : > { %s3975_s12 = smov [#allocation3]   ;;  %s3976_s5 = smov [#allocation8]  }
  0xa4   : > { %s716_s13 = sshll.u32 %s3975_s12, 4  ;;  %s744_s4 = sshll.u32 %s3976_s5, 4  ;;  %s717_s13 = int_to_ptr.vmem [resolvable:$true] %s716_s13  ;;  %s745_s4 = int_to_ptr.vmem [resolvable:$true] %s744_s4 }
  0xa5   : > { %s4927_s28 = sld [smem:[#allocation47_spill]] }
  0xab   : > { %s3714_s29 = scalar_lea.hbm %s4927_s28, 16 }
  0xac   : > { %p3715_p13 = scmp.ne.s32.totalorder %s4927_s28, %s3714_s29  ;;  %p3721_p5 = scmp.lt.u32.totalorder %s3714_s29, %s4927_s28 }
  0xae   : > { %p3717_p1 = pnand %p3715_p13, %p4212_p0 }
  0xb0   : > { %p3718_p6 = pneg %p3717_p1 }
  0xb2   : > { %p3723_p9 = pnand %p3721_p5, %p3718_p6 }
  0xb4   : > { %3726 = shalt.err (!%p3723_p9)
}
  0xb5   : > { %s3727_s0 = scalar_lea.vmem %s717_s13, 16  ;;  %s3734_s2 = scalar_lea.vmem %s717_s13, 32 }
  0xb6   : > { %p3728_p10 = scmp.ne.s32.totalorder %s717_s13, %s3727_s0  ;;  %p3735_p4 = scmp.lt.s32.totalorder %s717_s13, %s717_s13 }
  0xb7   : > { %p3736_p7 = scmp.lt.s32.totalorder %s3734_s2, %s3727_s0 }
  0xb8   : > { %p3730_p2 = pnand %p3728_p10, %p4212_p0 }
  0xb9   : > { %p3737_p8 = por %p3736_p7, %p3735_p4 }
  0xba   : > { %p3731_p3 = pneg %p3730_p2 }
  0xbc   : > { %p3738_p11 = pnand %p3737_p8, %p3731_p3 }
  0xbe   : > { %3741 = shalt.err (!%p3738_p11)
}
  0xbf   : > { %3427 = dma.hbm_to_vmem [thread:$0]  (!%p4196_p12), %s4927_s28, 16, %s717_s13, [#allocation4]  }
  0xc0   : > { %s3742_s3 = scalar_lea.hbm %s4867_s15, 16 }
  0xc1   : > { %p3743_p13 = scmp.ne.s32.totalorder %s4867_s15, %s3742_s3  ;;  %p3749_p5 = scmp.lt.u32.totalorder %s3742_s3, %s4867_s15 }
  0xc3   : > { %p3745_p1 = pnand %p3743_p13, %p4212_p0 }
  0xc5   : > { %p3746_p6 = pneg %p3745_p1 }
  0xc7   : > { %p3751_p9 = pnand %p3749_p5, %p3746_p6 }
  0xc9   : > { %3754 = shalt.err (!%p3751_p9)
}
  0xca   : > { %s3755_s0 = scalar_lea.vmem %s745_s4, 16  ;;  %s3762_s13 = scalar_lea.vmem %s745_s4, 32 }
  0xcb   : > { %p3756_p10 = scmp.ne.s32.totalorder %s745_s4, %s3755_s0  ;;  %p3763_p4 = scmp.lt.s32.totalorder %s745_s4, %s745_s4 }
  0xcc   : > { %p3764_p7 = scmp.lt.s32.totalorder %s3762_s13, %s3755_s0 }
  0xcd   : > { %p3758_p2 = pnand %p3756_p10, %p4212_p0 }
  0xce   : > { %p3765_p8 = por %p3764_p7, %p3763_p4 }
  0xcf   : > { %p3759_p3 = pneg %p3758_p2 }
  0xd1   : > { %p3766_p11 = pnand %p3765_p8, %p3759_p3 }
  0xd3   : > { %3769 = shalt.err (!%p3766_p11)
}
  0xd4   : > { %3433 = dma.hbm_to_vmem [thread:$0]  (!%p4196_p12), %s4867_s15, 16, %s745_s4, [#allocation7]  }
  0xd5   : > { %s3977_s5 = smov [#allocation11]   ;;  %s3978_s20 = smov [#allocation14]  }
  0xd6   : > { %s766_s16 = sshll.u32 %s3977_s5, 4  ;;  %s794_s3 = sshll.u32 %s3978_s20, 4  ;;  %s767_s16 = int_to_ptr.vmem [resolvable:$true] %s766_s16  ;;  %s795_s3 = int_to_ptr.vmem [resolvable:$true] %s794_s3 }
  0xd7   : > { %s3770_s9 = scalar_lea.hbm %s4869_s17, 16 }
  0xd8   : > { %p3771_p13 = scmp.ne.s32.totalorder %s4869_s17, %s3770_s9  ;;  %p3777_p5 = scmp.lt.u32.totalorder %s3770_s9, %s4869_s17 }
  0xda   : > { %p3773_p1 = pnand %p3771_p13, %p4212_p0 }
  0xdc   : > { %p3774_p6 = pneg %p3773_p1 }
  0xde   : > { %p3779_p9 = pnand %p3777_p5, %p3774_p6 }
  0xe0   : > { %3782 = shalt.err (!%p3779_p9)
}
  0xe1   : > { %s3783_s4 = scalar_lea.vmem %s767_s16, 16  ;;  %s3790_s12 = scalar_lea.vmem %s767_s16, 32 }
  0xe2   : > { %p3784_p10 = scmp.ne.s32.totalorder %s767_s16, %s3783_s4  ;;  %p3791_p4 = scmp.lt.s32.totalorder %s767_s16, %s767_s16 }
  0xe3   : > { %p3792_p7 = scmp.lt.s32.totalorder %s3790_s12, %s3783_s4 }
  0xe4   : > { %p3786_p2 = pnand %p3784_p10, %p4212_p0 }
  0xe5   : > { %p3793_p8 = por %p3792_p7, %p3791_p4 }
  0xe6   : > { %p3787_p3 = pneg %p3786_p2 }
  0xe8   : > { %p3794_p11 = pnand %p3793_p8, %p3787_p3 }
  0xea   : > { %3797 = shalt.err (!%p3794_p11)
}
  0xeb   : > { %3439 = dma.hbm_to_vmem [thread:$0]  (!%p4196_p12), %s4869_s17, 16, %s767_s16, [#allocation10]  }
  0xec   : > { %s3798_s9 = scalar_lea.hbm %s4873_s21, 16 }
  0xed   : > { %p3799_p13 = scmp.ne.s32.totalorder %s4873_s21, %s3798_s9  ;;  %p3805_p5 = scmp.lt.u32.totalorder %s3798_s9, %s4873_s21 }
  0xef   : > { %p3801_p1 = pnand %p3799_p13, %p4212_p0 }
  0xf1   : > { %p3802_p6 = pneg %p3801_p1 }
  0xf3   : > { %p3807_p9 = pnand %p3805_p5, %p3802_p6 }
  0xf5   : > { %3810 = shalt.err (!%p3807_p9)
}
  0xf6   : > { %s3811_s4 = scalar_lea.vmem %s795_s3, 16  ;;  %s3818_s16 = scalar_lea.vmem %s795_s3, 32 }
  0xf7   : > { %p3812_p10 = scmp.ne.s32.totalorder %s795_s3, %s3811_s4  ;;  %p3819_p4 = scmp.lt.s32.totalorder %s795_s3, %s795_s3 }
  0xf8   : > { %p3820_p7 = scmp.lt.s32.totalorder %s3818_s16, %s3811_s4 }
  0xf9   : > { %p3814_p2 = pnand %p3812_p10, %p4212_p0 }
  0xfa   : > { %p3821_p8 = por %p3820_p7, %p3819_p4 }
  0xfb   : > { %p3815_p3 = pneg %p3814_p2 }
  0xfd   : > { %p3822_p11 = pnand %p3821_p8, %p3815_p3 }
  0xff   : > { %3825 = shalt.err (!%p3822_p11)
}
 0x100   : > { %3445 = dma.hbm_to_vmem [thread:$0]  (!%p4196_p12), %s4873_s21, 16, %s795_s3, [#allocation13]  }
 0x101   : > { %s3979_s20 = smov [#allocation17]   ;;  %s3980_s11 = smov [#allocation20]  }
 0x102   : > { %s816_s29 = sshll.u32 %s3979_s20, 4  ;;  %s844_s9 = sshll.u32 %s3980_s11, 4  ;;  %s817_s29 = int_to_ptr.vmem [resolvable:$true] %s816_s29  ;;  %s845_s9 = int_to_ptr.vmem [resolvable:$true] %s844_s9 }
 0x103   : > { %s3826_s13 = scalar_lea.hbm %s4875_s23, 16 }
 0x104   : > { %p3827_p13 = scmp.ne.s32.totalorder %s4875_s23, %s3826_s13  ;;  %p3833_p5 = scmp.lt.u32.totalorder %s3826_s13, %s4875_s23 }
 0x106   : > { %p3829_p1 = pnand %p3827_p13, %p4212_p0 }
 0x108   : > { %p3830_p6 = pneg %p3829_p1 }
 0x10a   : > { %p3835_p9 = pnand %p3833_p5, %p3830_p6 }
 0x10c   : > { %3838 = shalt.err (!%p3835_p9)
}
 0x10d   : > { %s3839_s3 = scalar_lea.vmem %s817_s29, 16  ;;  %s3846_s5 = scalar_lea.vmem %s817_s29, 32 }
 0x10e   : > { %p3840_p10 = scmp.ne.s32.totalorder %s817_s29, %s3839_s3  ;;  %p3847_p4 = scmp.lt.s32.totalorder %s817_s29, %s817_s29 }
 0x10f   : > { %p3848_p7 = scmp.lt.s32.totalorder %s3846_s5, %s3839_s3 }
 0x110   : > { %p3842_p2 = pnand %p3840_p10, %p4212_p0 }
 0x111   : > { %p3849_p8 = por %p3848_p7, %p3847_p4 }
 0x112   : > { %p3843_p3 = pneg %p3842_p2 }
 0x114   : > { %p3850_p11 = pnand %p3849_p8, %p3843_p3 }
 0x116   : > { %3853 = shalt.err (!%p3850_p11)
}
 0x117   : > { %3451 = dma.hbm_to_vmem [thread:$0]  (!%p4196_p12), %s4875_s23, 16, %s817_s29, [#allocation16]  }
 0x118   : > { %s3854_s13 = scalar_lea.hbm %s4879_s27, 16 }
 0x119   : > { %p3855_p13 = scmp.ne.s32.totalorder %s4879_s27, %s3854_s13  ;;  %p3861_p5 = scmp.lt.u32.totalorder %s3854_s13, %s4879_s27 }
 0x11b   : > { %p3857_p1 = pnand %p3855_p13, %p4212_p0 }
 0x11d   : > { %p3858_p6 = pneg %p3857_p1 }
 0x11f   : > { %p3863_p9 = pnand %p3861_p5, %p3858_p6 }
 0x121   : > { %3866 = shalt.err (!%p3863_p9)
}
 0x122   : > { %s3867_s3 = scalar_lea.vmem %s845_s9, 16  ;;  %s3874_s29 = scalar_lea.vmem %s845_s9, 32 }
 0x123   : > { %p3868_p10 = scmp.ne.s32.totalorder %s845_s9, %s3867_s3  ;;  %p3875_p4 = scmp.lt.s32.totalorder %s845_s9, %s845_s9 }
 0x124   : > { %p3876_p7 = scmp.lt.s32.totalorder %s3874_s29, %s3867_s3 }
 0x125   : > { %p3870_p2 = pnand %p3868_p10, %p4212_p0 }
 0x126   : > { %p3877_p8 = por %p3876_p7, %p3875_p4 }
 0x127   : > { %p3871_p3 = pneg %p3870_p2 }
 0x129   : > { %p3878_p11 = pnand %p3877_p8, %p3871_p3 }
 0x12b   : > { %3881 = shalt.err (!%p3878_p11)
}
 0x12c   : > { %3457 = dma.hbm_to_vmem [thread:$0]  (!%p4196_p12), %s4879_s27, 16, %s845_s9, [#allocation19]  }
 0x12d   : > { %p4928_p13 = scmp.ne.s32.totalorder %s4922_s7, 0 }
 0x12e   : > { %p4929_p1 = scmp.eq.s32.totalorder (!%p4928_p13), %s4160_s30, 0 }
 0x12f   : > { %870 = sbr.rel (%p4928_p13) target bundleno = 4944 (0x1350), region = 132 }
 0x136   : > { %3927 = dma.done.wait (%p4929_p1), [#allocation4], 16   ;;  %p4930_p0 = pmov %p4929_p1 }
 0x138   : > { %3929 = vsyncadd (%p4930_p0), [#allocation4], 4294967280  ;;  %p4931_p6 = pmov %p4930_p0 }
 0x139   : > { %p4932_p5 = pmov %p4930_p0 }
 0x13a   : > { %3931 = dma.done.wait (%p4931_p6), [#allocation7], 32  }
 0x13b   : > { %3933 = vsyncadd (%p4932_p5), [#allocation7], 4294967264  ;;  %p4933_p9 = pmov %p4930_p0 }
 0x13c   : > { %p4934_p12 = pmov %p4930_p0 }
 0x13d   : > { %3935 = dma.done.wait (%p4933_p9), [#allocation10], 32  }
 0x13e   : > { %3937 = vsyncadd (%p4934_p12), [#allocation10], 4294967264  ;;  %p4935_p10 = pmov %p4930_p0 }
 0x13f   : > { %p4936_p2 = pmov %p4930_p0 }
 0x140   : > { %3939 = dma.done.wait (%p4935_p10), [#allocation13], 32  }
 0x141   : > { %3941 = vsyncadd (%p4936_p2), [#allocation13], 4294967264  ;;  %p4937_p3 = pmov %p4930_p0 }
 0x142   : > { %p4938_p4 = pmov %p4930_p0 }
 0x143   : > { %3943 = dma.done.wait (%p4937_p3), [#allocation16], 32  }
 0x144   : > { %3945 = vsyncadd (%p4938_p4), [#allocation16], 4294967264  ;;  %p4939_p7 = pmov %p4930_p0 }
 0x145   : > { %p4940_p8 = pmov %p4930_p0 }
 0x146   : > { %3947 = dma.done.wait (%p4939_p7), [#allocation19], 32  }
 0x147   : > { %3949 = vsyncadd (%p4940_p8), [#allocation19], 4294967264  ;;  %p986_p11 = scmp.lt.s32.totalorder %s4160_s30, 1  ;;  %s4941_s11 = sld [smem:[#allocation36_spill]]  ;;  %vm997_vm0 = vcmask 261120   ;;  %v3981_v10 = vmov 0.0|0.0  }
 0x148   : > { %s4942_s2 = sld [smem:[#allocation40_spill]]  ;;  %3306 = vmatprep.subr.bf16.mxu0 %v3981_v10  ;;  %vm3982_vm1 = vmmov 0   ;;  %v3983_v13 = vmov 0.0   ;;  %vm993_vm2 = vcmask 523264   ;;  %3312 = vmatprep.subr.bf16.mxu1 %v3981_v10  ;;  %s4943_s12 = sld [smem:[#allocation38_spill]]  ;;  %vm1884_vm3 = vcmask 64512  }
 0x149   : > { %s4448_s7 = scalar_select %p986_p11, %s4160_s30, 1  ;;  %3148 = vmatprep.mubr.msk.f32.mxu0 %vm3982_vm1, %v3983_v13  ;;  %994 = vst.msk [vmem:[#allocation2] sm:$0xff] %vm993_vm2, %v3983_v13  ;;  %995 = vst.msk [vmem:[#allocation2 + $0x8] sm:$0xff] %vm993_vm2, %v3983_v13  ;;  %3159 = vmatprep.mubr.msk.f32.mxu1 %vm3982_vm1, %v3983_v13 }
 0x14a   : > { %s4944_s9 = sld [smem:[#allocation39_spill]]  ;;  %s3984_s3 = smov 96  }
 0x14b   : > { %s2991_s10 = sshll.u32 %s4448_s7, 3  ;;  %s4946_s20 = sld [smem:[#allocation44_spill]] }
 0x14c   : > { %s4948_s5 = sld [smem:[#allocation43_spill]]  ;;  %s4949_s13 = sld [smem:[#allocation45_spill]] }
 0x14d   : > { %s989_s6 = scalar_lea.vmem %s4941_s11, %s2991_s10  ;;  %s3985_s4 = smov 64  }
 0x14e   : > { %v996_v0 = vld [vmem:[%s989_s6] sm:$0xff]  ;;  %v2995_v8 = vld [vmem:[%s4942_s2 + $0x28] sm:$0xff]  ;;  %v2996_v9 = vld [vmem:[%s4942_s2 + $0x30] sm:$0xff]  ;;  %s4947_s6 = sld [smem:[#allocation42_spill]]  ;;  %s4950_s11 = sld [smem:[#allocation46_spill]] }
 0x14f   : > { %v998_v1 = vsel %vm997_vm0, %v996_v0, 0.0  ;;  %v2994_v7 = vld [vmem:[%s4942_s2 + $0x20] sm:$0xff]  ;;  %v2997_v12 = vld [vmem:[%s4942_s2 + $0x38] sm:$0xff]  ;;  %v1031_v16 = vld [vmem:[%s4942_s2 + $0x8] sm:$0xff]  ;;  %s3986_s10 = smov 120   ;;  %s3987_s1 = smov 88  }
 0x150   : > { %999 = vadd.xlane.f32.xlu0 %v998_v1  ;;  %v3307_v11 = vpack.c.bf16 %v2995_v8, %v2994_v7  ;;  %v3310_v14 = vpack.c.bf16 %v2997_v12, %v2996_v9  ;;  %v1030_v15 = vld [vmem:[%s4942_s2] sm:$0xff]  ;;  %v1032_v18 = vld [vmem:[%s4942_s2 + $0x10] sm:$0xff]  ;;  %v1033_v19 = vld [vmem:[%s4942_s2 + $0x18] sm:$0xff]  ;;  %s3990_s16 = smov 112   ;;  %s3992_s29 = smov 104  }
 0x151   : > { %v3313_v17 = vpack.c.bf16 %v1031_v16, %v1030_v15  ;;  %v3316_v20 = vpack.c.bf16 %v1033_v19, %v1032_v18  ;;  %v2992_v25 = vld [vmem:[%s4943_s12] ss:$0 sm:$0xff]  ;;  %v3001_v28 = vld [vmem:[%s4942_s2 + $0x48] sm:$0xff]  ;;  %v3002_v33 = vld [vmem:[%s4942_s2 + $0x50] sm:$0xff]  ;;  %s4945_s12 = sld [smem:[#allocation41_spill]] }
 0x152   : > { %3308 = vmatpush3.bf16.msra.mxu0 %v3307_v11  ;;  %v3000_v27 = vld [vmem:[%s4942_s2 + $0x40] sm:$0xff]  ;;  %v3003_v34 = vld [vmem:[%s4942_s2 + $0x58] sm:$0xff]  ;;  %v3010_v61 = vld [vmem:[%s4946_s20 + $0x28] sm:$0xff] }
 0x153   : > { %3309 = vmatprep.subr.bf16.mxu0 %v3981_v10  ;;  %3314 = vmatpush3.bf16.msra.mxu1 %v3313_v17  ;;  %v2993_v29 = vld [vmem:[%s4944_s9] ss:$0 sm:$0xff]  ;;  %v3319_v31 = vpack.c.bf16 %v3001_v28, %v3000_v27  ;;  %v3322_v35 = vpack.c.bf16 %v3003_v34, %v3002_v33  ;;  %v3011_v63 = vld [vmem:[%s4946_s20 + $0x30] sm:$0xff]  ;;  %v3016_v17 = vld [vmem:[%s4946_s20 + $0x48] sm:$0xff] }
 0x154   : > { %3315 = vmatprep.subr.bf16.mxu1 %v3981_v10  ;;  %v3009_v60 = vld [vmem:[%s4946_s20 + $0x20] sm:$0xff] }
 0x155   : > { %v3325_v62 = vpack.c.bf16 %v3010_v61, %v3009_v60  ;;  %v3015_v16 = vld [vmem:[%s4946_s20 + $0x40] sm:$0xff] }
 0x156   : > { %3311 = vmatpush3.bf16.msra.mxu0 %v3310_v14  ;;  %v3007_v14 = vld [vmem:[%s4947_s6] ss:$0 sm:$0xff]  ;;  %s4952_s6 = sld [smem:[#allocation37_spill]] }
 0x157   : > { %3318 = vmatprep.subr.bf16.mxu0 %v3981_v10  ;;  %3317 = vmatpush3.bf16.msra.mxu1 %v3316_v20  ;;  %v3005_v45 = vld [vmem:[%s4945_s12] ss:$0 sm:$0xff]  ;;  %v3337_v20 = vpack.c.bf16 %v3016_v17, %v3015_v16  ;;  %s3991_s12 = smov 72  }
 0x158   : > { %3324 = vmatprep.subr.bf16.mxu1 %v3981_v10  ;;  %v3008_v18 = vld [vmem:[%s4948_s5] ss:$0 sm:$0xff] }
 0x159   : > { %v3020_v34 = vld [vmem:[%s4949_s13] ss:$0 sm:$0xff]  ;;  %s4951_s13 = sld [smem:[#allocation48_spill]] }
 0x15c   : > { %s992_s0 = scalar_lea.vmem %s4952_s6, %s4448_s7  ;;  %s3989_s7 = smov 80  }
 0x15f   : > { %v3027_v16 = vld [vmem:[%s4951_s13 + $0x2] ss:$0 sm:$0xff] }
 0x1dd   : > { %v1000_v2 = vpop.xlane.xlu0 %999 }
 0x1de   : > { %v1002_v3 = vmul.f32 0.03125, %v1000_v2  ;;  %v1315_v2 = vld [vmem:[%s4946_s20] sm:$0xff] }
 0x1e0   : > { %v1003_v4 = vsub.f32 %v996_v0, %v1002_v3  ;;  %v3012_v0 = vld [vmem:[%s4946_s20 + $0x38] sm:$0xff]  ;;  %v1316_v3 = vld [vmem:[%s4946_s20 + $0x8] sm:$0xff] }
 0x1e1   : > { %v3328_v1 = vpack.c.bf16 %v3012_v0, %v3011_v63  ;;  %v3021_v63 = vld [vmem:[%s4950_s11] ss:$0 sm:$0xff]  ;;  %s4954_s11 = sld [smem:[#allocation51_spill]] }
 0x1e2   : > { %v1004_v5 = vmul.f32 %v1003_v4, %v1003_v4 }
 0x1e4   : > { %v1005_v6 = vsel %vm997_vm0, %v1004_v5, 0.0  ;;  %v1317_v5 = vld [vmem:[%s4946_s20 + $0x10] sm:$0xff] }
 0x1e5   : > { %1006 = vadd.xlane.f32.xlu0 %v1005_v6  ;;  %v1318_v6 = vld [vmem:[%s4946_s20 + $0x18] sm:$0xff] }
 0x1e6   : > { %v3334_v7 = vpack.c.bf16 %v1318_v6, %v1317_v5  ;;  %v3024_v6 = vld [vmem:[#allocation6] ss:$0 sm:$0xff] }
 0x272   : > { %v1007_v21 = vpop.xlane.xlu0 %1006 }
 0x273   : > { %v1008_v22 = vmul.f32 0.03125, %v1007_v21 }
 0x275   : > { %v1009_v23 = vadd.f32 1e-05, %v1008_v22  ;;  %v3017_v22 = vld [vmem:[%s4946_s20 + $0x50] sm:$0xff] }
 0x277   : > { %3540 = vrsqrt.f32 %v1009_v23  ;;  %v3018_v23 = vld [vmem:[%s4946_s20 + $0x58] sm:$0xff] }
 0x281   : > { %v3541_v24 = vpop.eup %3540 }
 0x282   : > { %v1011_v26 = vmul.f32 %v3541_v24, %v1003_v4  ;;  %v3331_v4 = vpack.c.bf16 %v1316_v3, %v1315_v2  ;;  %v3340_v24 = vpack.c.bf16 %v3018_v23, %v3017_v22 }
 0x284   : > { %v1019_v30 = vmul.f32 %v2992_v25, %v1011_v26 }
 0x286   : > { %v1027_v32 = vadd.f32 %v2993_v29, %v1019_v30 }
 0x288   : > { %1028 = vst.msk [vmem:[#allocation2 + $0x4] sm:$0xff] %vm997_vm0, %v1027_v32  ;;  %3149 = vmatmul.mubr.msk.f32.vlgmr.msra.gmra.mrb[0].mxu0 %vm997_vm0, %v1027_v32 }
 0x289   : > { %3320 = vmatpush3.bf16.msra.mxu0 %v3319_v31  ;;  %3170 = vmatprep.mubr.msk.f32.mxu0 %vm3982_vm1, %v3983_v13 }
 0x28a   : > { %3321 = vmatprep.subr.bf16.mxu0 %v3981_v10 }
 0x28d   : > { %3323 = vmatpush3.bf16.msra.mxu0 %v3322_v35 }
 0x28e   : > { %3330 = vmatprep.subr.bf16.mxu0 %v3981_v10 }
 0x28f   : > { %v1029_v36 = vld [vmem:[#allocation2 + $0x3] sm:$0xff] }
 0x290   : > { %v1185_v37 = vld [vmem:[#allocation2 + $0x5] sm:$0xff]  ;;  %3160 = vmatmul.mubr.msk.f32.vlgmr.msra.gmra.mrb[0].mxu1 %vm997_vm0, %v1029_v36 }
 0x291   : > { %3171 = vmatmul.mubr.msk.f32.vlgmr.msra.gmra.mrb[2].mxu0 %vm997_vm0, %v1185_v37  ;;  %3181 = vmatprep.mubr.msk.f32.mxu1 %vm3982_vm1, %v3983_v13 }
 0x292   : > { %3192 = vmatprep.mubr.msk.f32.mxu0 %vm3982_vm1, %v3983_v13  ;;  %3326 = vmatpush3.bf16.msra.mxu1 %v3325_v62 }
 0x293   : > { %3327 = vmatprep.subr.bf16.mxu1 %v3981_v10  ;;  %3332 = vmatpush3.bf16.msra.mxu0 %v3331_v4  ;;  %v3023_v4 = vld [vmem:[%s4951_s13 + $0x4] ss:$0 sm:$0xff] }
 0x294   : > { %3333 = vmatprep.subr.bf16.mxu0 %v3981_v10 }
 0x296   : > { %3329 = vmatpush3.bf16.msra.mxu1 %v3328_v1  ;;  %v3022_v1 = vld [vmem:[#allocation3] ss:$0 sm:$0xff] }
 0x297   : > { %3336 = vmatprep.subr.bf16.mxu1 %v3981_v10  ;;  %3335 = vmatpush3.bf16.msra.mxu0 %v3334_v7  ;;  %v3025_v7 = vld [vmem:[%s4951_s13] ss:$0 sm:$0xff] }
 0x298   : > { %3342 = vmatprep.subr.bf16.mxu0 %v3981_v10 }
 0x35b   : > { %v1108_v38 = vpop.f32.mrb[0].mxu0 }
 0x35c   : > { %v3150_v39 = vpop.f32.mrb[1].mxu0 }
 0x363   : > { %v1181_v40 = vpop.f32.mrb[0].mxu1 }
 0x364   : > { %v1260_v41 = vpop.f32.mrb[2].mxu0  ;;  %v1182_v42 = vadd.f32 %v1181_v40, %v1108_v38  ;;  %v3161_v43 = vpop.f32.mrb[1].mxu1 }
 0x365   : > { %v3172_v44 = vpop.f32.mrb[3].mxu0 }
 0x366   : > { %v1264_v46 = vadd.f32 %v1260_v41, %v1182_v42 }
 0x368   : > { %v1272_v47 = vadd.f32 %v3005_v45, %v1264_v46  ;;  %v1674_v46 = vld [vmem:[%s4866_s14] sm:$0xff] }
 0x36a   : > { %v3006_v48 = vmul.f32 -1.442695, %v1272_v47 }
 0x36c   : > { %3542 = vpow2.f32 %v3006_v48 }
 0x376   : > { %v3543_v49 = vpop.eup %3542 }
 0x377   : > { %v1276_v50 = vadd.f32 1.0, %v3543_v49  ;;  %v1676_v49 = vld [vmem:[%s4866_s14 + $0x10] sm:$0xff] }
 0x379   : > { %3544 = vrcp.f32 %v1276_v50  ;;  %v1677_v50 = vld [vmem:[%s4866_s14 + $0x18] sm:$0xff] }
 0x383   : > { %v3545_v51 = vpop.eup %3544 }
 0x384   : > { %1280 = vrot.lane.b32.xlu1 %v3545_v51, %s3984_s3  ;;  %v3346_v51 = vpack.c.bf16 %v1677_v50, %v1676_v49 }
 0x3f6   : > { %v1281_v52 = vpop.permute.xlu1 %1280 }
 0x3f7   : > { %v4528_v53 = vmul.f32 %v1281_v52, %v1272_v47  ;;  %v1675_v47 = vld [vmem:[%s4866_s14 + $0x8] sm:$0xff]  ;;  %v1678_v52 = vld [vmem:[%s4866_s14 + $0x20] sm:$0xff] }
 0x3f8   : > { %v3343_v48 = vpack.c.bf16 %v1675_v47, %v1674_v46 }
 0x3f9   : > { %v1284_v54 = vsel %vm997_vm0, %v4528_v53, 0.0 }
 0x3fa   : > { %1285 = vadd.xlane.f32.xlu1 %v1284_v54  ;;  %v1679_v54 = vld [vmem:[%s4866_s14 + $0x28] sm:$0xff] }
 0x487   : > { %v1286_v55 = vpop.xlane.xlu1 %1285 }
 0x488   : > { %v1287_v56 = vmul.f32 0.03125, %v1286_v55  ;;  %v3349_v55 = vpack.c.bf16 %v1679_v54, %v1678_v52  ;;  %v1792_v54 = vld [vmem:[%s4870_s18] sm:$0xff] }
 0x48a   : > { %v1288_v57 = vsub.f32 %v4528_v53, %v1287_v56  ;;  %v1680_v56 = vld [vmem:[%s4866_s14 + $0x30] sm:$0xff] }
 0x48c   : > { %v1289_v58 = vmul.f32 %v1288_v57, %v1288_v57 }
 0x48e   : > { %v1290_v59 = vsel %vm997_vm0, %v1289_v58, 0.0 }
 0x48f   : > { %1291 = vadd.xlane.f32.xlu0 %v1290_v59 }
 0x51c   : > { %v1292_v8 = vpop.xlane.xlu0 %1291 }
 0x51d   : > { %v1293_v9 = vmul.f32 0.03125, %v1292_v8 }
 0x51f   : > { %v1294_v11 = vadd.f32 1e-05, %v1293_v9 }
 0x521   : > { %3546 = vrsqrt.f32 %v1294_v11  ;;  %v3026_v11 = vld [vmem:[%s4951_s13 + $0x1] ss:$0 sm:$0xff] }
 0x52b   : > { %v3547_v12 = vpop.eup %3546 }
 0x52c   : > { %v1296_v15 = vmul.f32 %v3547_v12, %v1288_v57  ;;  %v1681_v57 = vld [vmem:[%s4866_s14 + $0x38] sm:$0xff] }
 0x52d   : > { %v3352_v58 = vpack.c.bf16 %v1681_v57, %v1680_v56  ;;  %v1795_v57 = vld [vmem:[%s4870_s18 + $0x18] sm:$0xff] }
 0x52e   : > { %v1304_v19 = vmul.f32 %v3007_v14, %v1296_v15 }
 0x530   : > { %v1312_v21 = vadd.f32 %v3008_v18, %v1304_v19 }
 0x532   : > { %1313 = vst.msk [vmem:[#allocation2 + $0x4] sm:$0xff] %vm997_vm0, %v1312_v21  ;;  %3182 = vmatmul.mubr.msk.f32.vlgmr.msra.gmra.mrb[2].mxu1 %vm997_vm0, %v1312_v21 }
 0x533   : > { %3338 = vmatpush3.bf16.msra.mxu1 %v3337_v20  ;;  %3203 = vmatprep.mubr.msk.f32.mxu1 %vm3982_vm1, %v3983_v13  ;;  %v3028_v20 = vld [vmem:[%s4951_s13 + $0x3] ss:$0 sm:$0xff] }
 0x534   : > { %3339 = vmatprep.subr.bf16.mxu1 %v3981_v10 }
 0x537   : > { %3341 = vmatpush3.bf16.msra.mxu1 %v3340_v24  ;;  %v3029_v24 = vld [vmem:[%s4951_s13 + $0x5] ss:$0 sm:$0xff] }
 0x538   : > { %3354 = vmatprep.subr.bf16.mxu1 %v3981_v10 }
 0x539   : > { %v1314_v25 = vld [vmem:[#allocation2 + $0x3] sm:$0xff] }
 0x53a   : > { %v1470_v26 = vld [vmem:[#allocation2 + $0x5] sm:$0xff]  ;;  %3193 = vmatmul.mubr.msk.f32.vlgmr.msra.gmra.mrb[4].mxu0 %vm997_vm0, %v1314_v25 }
 0x53b   : > { %3204 = vmatmul.mubr.msk.f32.vlgmr.msra.gmra.mrb[4].mxu1 %vm997_vm0, %v1470_v26  ;;  %3222 = vmatprep.mubr.msk.f32.mxu0 %vm3982_vm1, %v3983_v13 }
 0x53c   : > { %3233 = vmatprep.mubr.msk.f32.mxu1 %vm3982_vm1, %v3983_v13  ;;  %3344 = vmatpush3.bf16.msra.mxu0 %v3343_v48 }
 0x53d   : > { %3345 = vmatprep.subr.bf16.mxu0 %v3981_v10 }
 0x540   : > { %3347 = vmatpush3.bf16.msra.mxu0 %v3346_v51 }
 0x541   : > { %3348 = vmatprep.subr.bf16.mxu0 %v3981_v10 }
 0x544   : > { %3350 = vmatpush3.bf16.msra.mxu0 %v3349_v55  ;;  %v1793_v55 = vld [vmem:[%s4870_s18 + $0x8] sm:$0xff] }
 0x545   : > { %3351 = vmatprep.subr.bf16.mxu0 %v3981_v10  ;;  %v3355_v56 = vpack.c.bf16 %v1793_v55, %v1792_v54 }
 0x547   : > { %3356 = vmatpush3.bf16.msra.mxu1 %v3355_v56 }
 0x548   : > { %3353 = vmatpush3.bf16.msra.mxu0 %v3352_v58  ;;  %3357 = vmatprep.subr.bf16.mxu1 %v3981_v10 }
 0x549   : > { %3236 = vmatprep.subr.mxu0 %v3983_v13 }
 0x605   : > { %v1393_v27 = vpop.f32.mrb[2].mxu1 }
 0x606   : > { %v3183_v28 = vpop.f32.mrb[3].mxu1 }
 0x607   : > { %v3030_v28 = vld [vmem:[%s4951_s13 + $0x6] ss:$0 sm:$0xff] }
 0x60d   : > { %v1466_v29 = vpop.f32.mrb[4].mxu0 }
 0x60e   : > { %v1545_v30 = vpop.f32.mrb[4].mxu1  ;;  %v1467_v31 = vadd.f32 %v1466_v29, %v1393_v27  ;;  %v3194_v32 = vpop.f32.mrb[5].mxu0 }
 0x60f   : > { %v3205_v33 = vpop.f32.mrb[5].mxu1  ;;  %v3031_v32 = vld [vmem:[%s4951_s13 + $0x7] ss:$0 sm:$0xff] }
 0x610   : > { %v1549_v35 = vadd.f32 %v1545_v30, %v1467_v31 }
 0x612   : > { %v1557_v36 = vadd.f32 %v3020_v34, %v1549_v35 }
 0x614   : > { %v1558_v37 = vmax.f32 %v1557_v36, 0.0  ;;  %v3032_v36 = vld [vmem:[%s4951_s13 + $0x8] ss:$0 sm:$0xff] }
 0x616   : > { %1560 = vrot.lane.b32.xlu0 %v1558_v37, %s3985_s4 }
 0x688   : > { %v1561_v38 = vpop.permute.xlu0 %1560 }
 0x689   : > { %v1563_v39 = vadd.f32 %v1561_v38, %v1558_v37 }
 0x68b   : > { %v1565_v40 = vsel %vm993_vm2, %v1563_v39, 0.0 }
 0x68c   : > { %1566 = vadd.xlane.f32.xlu0 %v1565_v40 }
 0x719   : > { %v1567_v41 = vpop.xlane.xlu0 %1566 }
 0x71a   : > { %v1569_v42 = vmul.f32 0.015625, %v1567_v41 }
 0x71c   : > { %v1570_v43 = vsub.f32 %v1563_v39, %v1569_v42  ;;  %v3033_v42 = vld [vmem:[#allocation8] ss:$0 sm:$0xff] }
 0x71e   : > { %v1571_v44 = vmul.f32 %v1570_v43, %v1570_v43 }
 0x720   : > { %v1572_v45 = vsel %vm993_vm2, %v1571_v44, 0.0 }
 0x721   : > { %1573 = vadd.xlane.f32.xlu1 %v1572_v45 }
 0x7ae   : > { %v1574_v59 = vpop.xlane.xlu1 %1573 }
 0x7af   : > { %v1575_v60 = vmul.f32 0.015625, %v1574_v59 }
 0x7b1   : > { %v1576_v61 = vadd.f32 1e-05, %v1575_v60 }
 0x7b3   : > { %3548 = vrsqrt.f32 %v1576_v61 }
 0x7bd   : > { %v3549_v62 = vpop.eup %3548 }
 0x7be   : > { %v1578_v0 = vmul.f32 %v3549_v62, %v1570_v43 }
 0x7c0   : > { %v1586_v2 = vmul.f32 %v3021_v63, %v1578_v0  ;;  %v3035_v63 = vld [vmem:[#allocation9] ss:$0 sm:$0xff] }
 0x7c2   : > { %v1594_v3 = vadd.f32 %v3022_v1, %v1586_v2  ;;  %v3036_v1 = vld [vmem:[#allocation11] ss:$0 sm:$0xff] }
 0x7c4   : > { %1595 = vst.msk [vmem:[#allocation2 + $0x4] sm:$0xff] %vm993_vm2, %v1594_v3  ;;  %v1602_v5 = vmul.f32 %v3023_v4, %v1594_v3  ;;  %v3037_v4 = vld [vmem:[#allocation12] ss:$0 sm:$0xff] }
 0x7c6   : > { %v1609_v12 = vadd.f32 %v3024_v6, %v1602_v5 }
 0x7cb   : > { %v1610_v8 = vld [vmem:[#allocation2] sm:$0xff]  ;;  %v1666_v35 = vld [vmem:[#allocation2 + $0x8] sm:$0xff] }
 0x7cc   : > { %v1618_v9 = vld [vmem:[#allocation2 + $0x1] sm:$0xff]  ;;  %v1616_v14 = vmul.f32 %v3025_v7, %v1610_v8  ;;  %v1672_v40 = vmul.f32 %v3032_v36, %v1666_v35 }
 0x7cd   : > { %v1626_v15 = vld [vmem:[#allocation2 + $0x2] sm:$0xff]  ;;  %v1624_v18 = vmul.f32 %v3026_v11, %v1618_v9  ;;  %v1879_v11 = vlaneseq }
 0x7ce   : > { %v1617_v17 = vadd.f32 %v1616_v14, %v1609_v12  ;;  %v1634_v19 = vld [vmem:[#allocation2 + $0x3] sm:$0xff]  ;;  %v1632_v22 = vmul.f32 %v3027_v16, %v1626_v15  ;;  %v1876_v12 = vld [vmem:[%s992_s0] sm:$0x1]  ;;  %v3988_v16 = vmov -1e+09  }
 0x7cf   : > { %v1642_v23 = vld [vmem:[#allocation2 + $0x5] sm:$0xff]  ;;  %v1640_v26 = vmul.f32 %v3028_v20, %v1634_v19  ;;  %v1962_v14 = vshrl.u32 %v1879_v11, 7  ;;  %vm1877_vm4 = vcmp.ne.s32.totalorder %v1876_v12, 0 }
 0x7d0   : > { %v1625_v21 = vadd.f32 %v1624_v18, %v1617_v17  ;;  %v1650_v27 = vld [vmem:[#allocation2 + $0x6] sm:$0xff]  ;;  %v1648_v30 = vmul.f32 %v3029_v24, %v1642_v23  ;;  %v1878_v17 = vsel %vm1877_vm4, 0.0, %v3988_v16 }
 0x7d1   : > { %v1658_v31 = vld [vmem:[#allocation2 + $0x7] sm:$0xff]  ;;  %v1656_v34 = vmul.f32 %v3030_v28, %v1650_v27  ;;  %v1963_v15 = vsub.s32 0, %v1962_v14 }
 0x7d2   : > { %v1633_v25 = vadd.f32 %v1632_v22, %v1625_v21  ;;  %v1664_v38 = vmul.f32 %v3031_v32, %v1658_v31 }
 0x7d3   : > { %v4692_v18 = vrot.slane %v1878_v17, %v1963_v15 }
 0x7d4   : > { %v1641_v29 = vadd.f32 %v1640_v26, %v1633_v25 }
 0x7d6   : > { %v1649_v33 = vadd.f32 %v1648_v30, %v1641_v29  ;;  %v4704_v30 = vand.u32 127, %v1879_v11 }
 0x7d8   : > { %v1657_v37 = vadd.f32 %v1656_v34, %v1649_v33  ;;  %vm2076_vm5 = vcmp.ge.s32.totalorder %v4704_v30, 8  ;;  %vm2077_vm6 = vcmp.lt.s32.totalorder %v4704_v30, 16  ;;  %vm1979_vm8 = vcmp.lt.s32.totalorder %v4704_v30, 8 }
 0x7d9   : > { %vm2078_vm7 = vmand %vm2076_vm5, %vm2077_vm6  ;;  %vm2317_vm9 = vcmp.ge.s32.totalorder %v4704_v30, 16  ;;  %vm2318_vm10 = vcmp.lt.s32.totalorder %v4704_v30, 24  ;;  %vm2486_vm12 = vcmp.ge.s32.totalorder %v4704_v30, 24  ;;  %vm2487_vm13 = vcmp.lt.s32.totalorder %v4704_v30, 32 }
 0x7da   : > { %v1665_v39 = vadd.f32 %v1664_v38, %v1657_v37  ;;  %vm2319_vm11 = vmand %vm2317_vm9, %vm2318_vm10 }
 0x7db   : > { %vm2488_vm14 = vmand %vm2486_vm12, %vm2487_vm13 }
 0x7dc   : > { %v1673_v41 = vadd.f32 %v1672_v40, %v1665_v39 }
 0x7de   : > { %3223 = vmatmul.mubr.msk.f32.vlgmr.msra.gmra.mrb[6].mxu0 %vm993_vm2, %v1673_v41 }
 0x7df   : > { %3238 = vmatprep.mubr.msk.f32.mxu0 %vm3982_vm1, %v3983_v13 }
 0x8b1   : > { %v1758_v43 = vpop.f32.mrb[6].mxu0 }
 0x8b2   : > { %v1759_v44 = vadd.f32 %v3033_v42, %v1758_v43  ;;  %v3224_v45 = vpop.f32.mrb[7].mxu0 }
 0x8b4   : > { %v1762_v46 = vadd.f32 %v1759_v44, %v4528_v53  ;;  %v1794_v53 = vld [vmem:[%s4870_s18 + $0x10] sm:$0xff] }
 0x8b5   : > { %v3358_v58 = vpack.c.bf16 %v1795_v57, %v1794_v53 }
 0x8b6   : > { %v1763_v47 = vsel %vm997_vm0, %v1762_v46, 0.0 }
 0x8b7   : > { %1764 = vadd.xlane.f32.xlu1 %v1763_v47  ;;  %3359 = vmatpush3.bf16.msra.mxu1 %v3358_v58 }
 0x8b8   : > { %3241 = vmatprep.subr.mxu1 %v3983_v13 }
 0x944   : > { %v1765_v48 = vpop.xlane.xlu1 %1764 }
 0x945   : > { %v1766_v49 = vmul.f32 0.03125, %v1765_v48 }
 0x947   : > { %v1767_v50 = vsub.f32 %v1762_v46, %v1766_v49 }
 0x949   : > { %v1768_v51 = vmul.f32 %v1767_v50, %v1767_v50 }
 0x94b   : > { %v1769_v52 = vsel %vm997_vm0, %v1768_v51, 0.0 }
 0x94c   : > { %1770 = vadd.xlane.f32.xlu1 %v1769_v52 }
 0x9d9   : > { %v1771_v59 = vpop.xlane.xlu1 %1770 }
 0x9da   : > { %v1772_v60 = vmul.f32 0.03125, %v1771_v59 }
 0x9dc   : > { %v1773_v61 = vadd.f32 1e-05, %v1772_v60 }
 0x9de   : > { %3550 = vrsqrt.f32 %v1773_v61 }
 0x9e8   : > { %v3551_v62 = vpop.eup %3550 }
 0x9e9   : > { %v1775_v0 = vmul.f32 %v3551_v62, %v1767_v50 }
 0x9eb   : > { %v1783_v2 = vmul.f32 %v3035_v63, %v1775_v0 }
 0x9ed   : > { %v4677_v3 = vadd.f32 %v3036_v1, %v1783_v2 }
 0x9ef   : > { %3234 = vmatmul.mubr.msk.f32.vlgmr.msra.gmra.mrb[6].mxu1 %vm997_vm0, %v4677_v3 }
 0x9f0   : > { %3243 = vmatprep.mubr.msk.f32.mxu1 %vm3982_vm1, %v3983_v13 }
 0xac2   : > { %v1872_v5 = vpop.f32.mrb[6].mxu1 }
 0xac3   : > { %v1873_v6 = vadd.f32 %v3037_v4, %v1872_v5  ;;  %v3235_v7 = vpop.f32.mrb[7].mxu1 }
 0xac5   : > { %1985 = vrot.lane.b32.xlu0 %v1873_v6, %s3986_s10  ;;  %1987 = vrot.lane.b32.xlu1 %v1873_v6, %s3987_s1 }
 0xb37   : > { %v1988_v8 = vpop.permute.xlu1 %1987  ;;  %v1986_v9 = vpop.permute.xlu0 %1985 }
 0xb38   : > { %3242 = vmatpush3.xpose.msk.msra.mxu1 %vm1884_vm3, %v1988_v8 }
 0xb39   : > { %3251 = vmatprep.subr.mxu1 %v3983_v13 }
 0xb3b   : > { %3244 = vmatmul.mubr.msk.f32.vlgmr.msra.gmra.mrb[8].mxu1 %vm1884_vm3, %v1986_v9 }
 0xb3c   : > { %3253 = vmatprep.mubr.msk.f32.mxu1 %vm3982_vm1, %v3983_v13 }
 0xc0e   : > { %v2059_v19 = vpop.f32.mrb[8].mxu1 }
 0xc0f   : > { %v2063_v20 = vmul.f32 0.35355338, %v2059_v19  ;;  %v3245_v21 = vpop.f32.mrb[9].mxu1 }
 0xc11   : > { %v2064_v22 = vadd.f32 %v2063_v20, %v4692_v18 }
 0xc13   : > { %v2065_v23 = vsel %vm1884_vm3, %v2064_v22, -inf }
 0xc14   : > { %2066 = vmax.xlane.f32.xlu1 %v2065_v23 }
 0xc25   : > { %1882 = vrot.lane.b32.xlu1 %v1873_v6, %s3984_s3 }
 0xc29   : > { %2228 = vrot.lane.b32.xlu1 %v1873_v6, %s3989_s7  ;;  %s3993_s7 = smov [#allocation21]  }
 0xc2d   : > { %2226 = vrot.lane.b32.xlu1 %v1873_v6, %s3990_s16  ;;  %s3886_s16 = sshll.u32 %s3993_s7, 4  ;;  %s3887_s16 = int_to_ptr.vmem [resolvable:$false] %s3886_s16 }
 0xc31   : > { %2397 = vrot.lane.b32.xlu1 %v1873_v6, %s3991_s12  ;;  %s983_s12 = sand.u32 1, %s3960_s8  }
 0xc32   : > { %s2990_s3 = sshll.u32 %s983_s12, 3  ;;  %s2776_s0 = scalar_lea.sflag [#allocation5], %s983_s12 }
 0xc33   : > { %s985_s5 = scalar_lea.vmem [#allocation21], %s2990_s3  ;;  %s3888_s3 = scalar_lea.vmem %s3887_s16, 256 }
 0xc34   : > { %s2789_s10 = sshll.u32 %s985_s5, 4  ;;  %s4811_s10 = int_to_ptr.vmem [resolvable:$true] %s2789_s10 }
 0xc35   : > { %2395 = vrot.lane.b32.xlu1 %v1873_v6, %s3992_s29  ;;  %s4953_s29 = sld [smem:[#allocation34_spill]]  ;;  %p3889_p5 = scmp.lt.s32.totalorder %s4811_s10, %s3887_s16 }
 0xc3b   : > { %p4955_p1 = scmp.ne.s32.totalorder %s4953_s29, 0 }
 0xca1   : > { %v2067_v24 = vpop.xlane.xlu1 %2066 }
 0xca2   : > { %v2068_v25 = vsub.f32 %v2064_v22, %v2067_v24 }
 0xca4   : > { %v2069_v26 = vmul.f32 1.442695, %v2068_v25 }
 0xca5   : > { %v1883_v27 = vpop.permute.xlu1 %1882 }
 0xca6   : > { %3552 = vpow2.f32 %v2069_v26  ;;  %3237 = vmatpush3.xpose.msk.msra.mxu0 %vm1884_vm3, %v1883_v27 }
 0xca7   : > { %3246 = vmatprep.subr.mxu0 %v3983_v13 }
 0xca9   : > { %3239 = vmatmul.mubr.msk.f32.vlgmr.msra.gmra.mrb[8].mxu0 %vm1884_vm3, %v1873_v6  ;;  %v2229_v32 = vpop.permute.xlu1 %2228 }
 0xcaa   : > { %3248 = vmatprep.mubr.msk.f32.mxu0 %vm3982_vm1, %v3983_v13 }
 0xcad   : > { %v2227_v34 = vpop.permute.xlu1 %2226 }
 0xcb0   : > { %v3553_v28 = vpop.eup %3552 }
 0xcb1   : > { %v2071_v29 = vsel %vm1884_vm3, %v3553_v28, 0.0  ;;  %v2398_v37 = vpop.permute.xlu1 %2397 }
 0xcb2   : > { %2072 = vadd.xlane.f32.xlu0 %v2071_v29 }
 0xcb5   : > { %v2396_v38 = vpop.permute.xlu1 %2395 }
 0xcc8   : > { %1981 = vrot.lane.b32.xlu0 %v1873_v6, %s3985_s4  ;;  %s3063_s4 = sshll.u32 %s4160_s30, 7  ;;  %s3882_s30 = scalar_lea.vmem %s4811_s10, 128 }
 0xcc9   : > { %s4809_s6 = scalar_lea.hbm %s4954_s11, %s3063_s4  ;;  %p3883_p13 = scmp.ne.s32.totalorder %s4811_s10, %s3882_s30 }
 0xcca   : > { %p3890_p9 = scmp.lt.s32.totalorder %s3888_s3, %s3882_s30 }
 0xccb   : > { %p3884_p0 = pnand %p3883_p13, %p4955_p1 }
 0xccc   : > { %p3891_p12 = por %p3890_p9, %p3889_p5 }
 0xccd   : > { %p3885_p6 = pneg %p3884_p0 }
 0xccf   : > { %p3892_p10 = pnand %p3891_p12, %p3885_p6 }
 0xd3f   : > { %v2073_v31 = vpop.xlane.xlu0 %2072 }
 0xd40   : > { %3554 = vrcp.f32 %v2073_v31 }
 0xd43   : > { %v4709_v33 = vpop.permute.xlu0 %1981 }
 0xd44   : > { %3247 = vmatpush3.msk.msra.mxu0 %vm2078_vm7, %v4709_v33  ;;  %3252 = vmatpush3.msk.msra.mxu1 %vm1979_vm8, %v4709_v33 }
 0xd45   : > { %3256 = vmatprep.subr.mxu0 %v3983_v13  ;;  %3261 = vmatprep.subr.mxu1 %v3983_v13 }
 0xd4a   : > { %v3555_v35 = vpop.eup %3554 }
 0xd4b   : > { %v2075_v36 = vmul.f32 %v3555_v35, %v3553_v28 }
 0xd4d   : > { %3249 = vmatmul.mubr.msk.f32.vlgmr.msra.gmra.mrb[10].mxu0 %vm1884_vm3, %v2075_v36  ;;  %v2596_v36 = vld [vmem:[%s4876_s24 + $0x10] sm:$0xff] }
 0xd4e   : > { %3257 = vmatpush3.xpose.msk.msra.mxu0 %vm1884_vm3, %v2229_v32  ;;  %3258 = vmatprep.mubr.msk.f32.mxu0 %vm3982_vm1, %v3983_v13 }
 0xd4f   : > { %3266 = vmatprep.subr.mxu0 %v3983_v13 }
 0xd51   : > { %3259 = vmatmul.mubr.msk.f32.vlgmr.msra.gmra.mrb[12].mxu0 %vm1884_vm3, %v2227_v34  ;;  %v2594_v34 = vld [vmem:[%s4876_s24] sm:$0xff] }
 0xd52   : > { %3267 = vmatpush3.xpose.msk.msra.mxu0 %vm1884_vm3, %v2398_v37  ;;  %3268 = vmatprep.mubr.msk.f32.mxu0 %vm3982_vm1, %v3983_v13  ;;  %v2597_v37 = vld [vmem:[%s4876_s24 + $0x18] sm:$0xff] }
 0xd53   : > { %3360 = vmatprep.subr.bf16.mxu0 %v3981_v10 }
 0xd55   : > { %3269 = vmatmul.mubr.msk.f32.vlgmr.msra.gmra.mrb[14].mxu0 %vm1884_vm3, %v2396_v38  ;;  %v3364_v38 = vpack.c.bf16 %v2597_v37, %v2596_v36 }
 0xd56   : > { %3284 = vmatprep.mubr.msk.f32.mxu0 %vm3982_vm1, %v3983_v13 }
 0xd7c   : > { %v1955_v39 = vpop.f32.mrb[8].mxu0 }
 0xd7d   : > { %v1959_v40 = vmul.f32 0.35355338, %v1955_v39  ;;  %v3240_v41 = vpop.f32.mrb[9].mxu0 }
 0xd7f   : > { %v1966_v42 = vadd.f32 %v4692_v18, %v1959_v40 }
 0xd81   : > { %v1967_v43 = vsel %vm1884_vm3, %v1966_v42, -inf }
 0xd82   : > { %1968 = vmax.xlane.f32.xlu1 %v1967_v43  ;;  %v3055_v43 = vld [vmem:[#allocation15] ss:$0 sm:$0xff] }
 0xe0f   : > { %v1969_v44 = vpop.xlane.xlu1 %1968 }
 0xe10   : > { %v1970_v45 = vsub.f32 %v1966_v42, %v1969_v44 }
 0xe12   : > { %v1971_v46 = vmul.f32 1.442695, %v1970_v45  ;;  %v3056_v45 = vld [vmem:[#allocation17] ss:$0 sm:$0xff] }
 0xe14   : > { %3556 = vpow2.f32 %v1971_v46 }
 0xe1e   : > { %v3557_v47 = vpop.eup %3556 }
 0xe1f   : > { %v1973_v48 = vsel %vm1884_vm3, %v3557_v47, 0.0 }
 0xe20   : > { %v2149_v49 = vpop.f32.mrb[10].mxu0  ;;  %1974 = vadd.xlane.f32.xlu1 %v1973_v48  ;;  %v2685_v48 = vld [vmem:[%s4878_s26] sm:$0xff] }
 0xe21   : > { %v3250_v50 = vpop.f32.mrb[11].mxu0 }
 0xe24   : > { %v2300_v51 = vpop.f32.mrb[12].mxu0 }
 0xe25   : > { %v2304_v52 = vmul.f32 0.35355338, %v2300_v51  ;;  %v3260_v54 = vpop.f32.mrb[13].mxu0  ;;  %v2687_v51 = vld [vmem:[%s4878_s26 + $0x10] sm:$0xff] }
 0xe27   : > { %v2305_v55 = vadd.f32 %v2304_v52, %v4692_v18  ;;  %v2688_v52 = vld [vmem:[%s4878_s26 + $0x18] sm:$0xff] }
 0xe28   : > { %v2469_v56 = vpop.f32.mrb[14].mxu0  ;;  %v3370_v54 = vpack.c.bf16 %v2688_v52, %v2687_v51 }
 0xe29   : > { %v2473_v53 = vmul.f32 0.35355338, %v2469_v56  ;;  %v3270_v57 = vpop.f32.mrb[15].mxu0  ;;  %v2306_v58 = vsel %vm1884_vm3, %v2305_v55, -inf  ;;  %v2690_v56 = vld [vmem:[%s4878_s26 + $0x28] sm:$0xff] }
 0xe2a   : > { %2307 = vmax.xlane.f32.xlu0 %v2306_v58  ;;  %v2691_v57 = vld [vmem:[%s4878_s26 + $0x30] sm:$0xff]  ;;  %v2692_v58 = vld [vmem:[%s4878_s26 + $0x38] sm:$0xff] }
 0xe2b   : > { %v2474_v59 = vadd.f32 %v2473_v53, %v4692_v18 }
 0xe2d   : > { %v2475_v60 = vsel %vm1884_vm3, %v2474_v59, -inf }
 0xe2e   : > { %2476 = vmax.xlane.f32.xlu0 %v2475_v60  ;;  %v3057_v60 = vld [vmem:[#allocation18] ss:$0 sm:$0xff] }
 0xead   : > { %v1975_v61 = vpop.xlane.xlu1 %1974 }
 0xeae   : > { %3558 = vrcp.f32 %v1975_v61 }
 0xeb7   : > { %v2308_v62 = vpop.xlane.xlu0 %2307 }
 0xeb8   : > { %v3559_v63 = vpop.eup %3558  ;;  %v2309_v0 = vsub.f32 %v2305_v55, %v2308_v62  ;;  %v2689_v55 = vld [vmem:[%s4878_s26 + $0x20] sm:$0xff] }
 0xeb9   : > { %v1977_v1 = vmul.f32 %v3559_v63, %v3557_v47  ;;  %v3373_v53 = vpack.c.bf16 %v2690_v56, %v2689_v55 }
 0xeba   : > { %v2310_v2 = vmul.f32 1.442695, %v2309_v0 }
 0xebb   : > { %v2477_v4 = vpop.xlane.xlu0 %2476  ;;  %3254 = vmatmul.mubr.msk.f32.vlgmr.msra.gmra.mrb[10].mxu1 %vm1884_vm3, %v1977_v1 }
 0xebc   : > { %3560 = vpow2.f32 %v2310_v2  ;;  %v2478_v5 = vsub.f32 %v2474_v59, %v2477_v4  ;;  %3262 = vmatpush3.msk.msra.mxu1 %vm2319_vm11, %v4709_v33  ;;  %3263 = vmatprep.mubr.msk.f32.mxu1 %vm3982_vm1, %v3983_v13  ;;  %v3376_v59 = vpack.c.bf16 %v2692_v58, %v2691_v57 }
 0xebd   : > { %3271 = vmatprep.subr.mxu1 %v3983_v13 }
 0xebe   : > { %v2479_v6 = vmul.f32 1.442695, %v2478_v5  ;;  %v3060_v5 = vld [vmem:[#allocation20] ss:$0 sm:$0xff] }
 0xec0   : > { %3562 = vpow2.f32 %v2479_v6 }
 0xec6   : > { %v3561_v7 = vpop.eup %3560 }
 0xec7   : > { %v2312_v8 = vsel %vm1884_vm3, %v3561_v7, 0.0 }
 0xec8   : > { %2313 = vadd.xlane.f32.xlu0 %v2312_v8 }
 0xeca   : > { %v3563_v9 = vpop.eup %3562 }
 0xecb   : > { %v2481_v11 = vsel %vm1884_vm3, %v3563_v9, 0.0 }
 0xecc   : > { %2482 = vadd.xlane.f32.xlu1 %v2481_v11 }
 0xf55   : > { %v2314_v12 = vpop.xlane.xlu0 %2313 }
 0xf56   : > { %3564 = vrcp.f32 %v2314_v12 }
 0xf59   : > { %v2483_v14 = vpop.xlane.xlu1 %2482 }
 0xf5a   : > { %3566 = vrcp.f32 %v2483_v14 }
 0xf60   : > { %v3565_v15 = vpop.eup %3564 }
 0xf61   : > { %v2316_v16 = vmul.f32 %v3565_v15, %v3561_v7 }
 0xf63   : > { %3264 = vmatmul.mubr.msk.f32.vlgmr.msra.gmra.mrb[12].mxu1 %vm1884_vm3, %v2316_v16 }
 0xf64   : > { %v3567_v17 = vpop.eup %3566  ;;  %3272 = vmatpush3.msk.msra.mxu1 %vm2488_vm14, %v4709_v33  ;;  %3273 = vmatprep.mubr.msk.f32.mxu1 %vm3982_vm1, %v3983_v13 }
 0xf65   : > { %v2485_v18 = vmul.f32 %v3567_v17, %v3563_v9  ;;  %3366 = vmatprep.subr.bf16.mxu1 %v3981_v10 }
 0xf67   : > { %3274 = vmatmul.mubr.msk.f32.vlgmr.msra.gmra.mrb[14].mxu1 %vm1884_vm3, %v2485_v18 }
 0xf68   : > { %3303 = vmatprep.mubr.msk.f32.mxu1 %vm3982_vm1, %v3983_v13 }
 0xf8e   : > { %v2222_v19 = vpop.f32.mrb[10].mxu1 }
 0xf8f   : > { %v2223_v20 = vadd.f32 %v2222_v19, %v2149_v49  ;;  %v3255_v21 = vpop.f32.mrb[11].mxu1  ;;  %v2686_v49 = vld [vmem:[%s4878_s26 + $0x8] sm:$0xff] }
 0xf90   : > { %v3367_v50 = vpack.c.bf16 %v2686_v49, %v2685_v48 }
 0xf92   : > { %3368 = vmatpush3.bf16.msra.mxu1 %v3367_v50 }
 0xf93   : > { %3369 = vmatprep.subr.bf16.mxu1 %v3981_v10 }
 0xf96   : > { %3371 = vmatpush3.bf16.msra.mxu1 %v3370_v54 }
 0xf97   : > { %3372 = vmatprep.subr.bf16.mxu1 %v3981_v10 }
 0xf9a   : > { %3374 = vmatpush3.bf16.msra.mxu1 %v3373_v53 }
 0xf9b   : > { %3375 = vmatprep.subr.bf16.mxu1 %v3981_v10 }
 0xf9e   : > { %3377 = vmatpush3.bf16.msra.mxu1 %v3376_v59 }
0x1036   : > { %v2390_v22 = vpop.f32.mrb[12].mxu1 }
0x1037   : > { %v2394_v23 = vadd.f32 %v2390_v22, %v2223_v20  ;;  %v3265_v24 = vpop.f32.mrb[13].mxu1 }
0x103a   : > { %v2559_v25 = vpop.f32.mrb[14].mxu1 }
0x103b   : > { %v2563_v26 = vadd.f32 %v2559_v25, %v2394_v23  ;;  %v3275_v27 = vpop.f32.mrb[15].mxu1 }
0x103d   : > { %v4755_v28 = vadd.f32 %v2563_v26, %v4677_v3  ;;  %v2595_v3 = vld [vmem:[%s4876_s24 + $0x8] sm:$0xff] }
0x103e   : > { %v3361_v35 = vpack.c.bf16 %v2595_v3, %v2594_v34 }
0x103f   : > { %v2565_v29 = vsel %vm997_vm0, %v4755_v28, 0.0 }
0x1040   : > { %2566 = vadd.xlane.f32.xlu0 %v2565_v29  ;;  %3362 = vmatpush3.bf16.msra.mxu0 %v3361_v35 }
0x1041   : > { %3363 = vmatprep.subr.bf16.mxu0 %v3981_v10 }
0x1044   : > { %3365 = vmatpush3.bf16.msra.mxu0 %v3364_v38 }
0x10cd   : > { %v2567_v30 = vpop.xlane.xlu0 %2566 }
0x10ce   : > { %v2568_v31 = vmul.f32 0.03125, %v2567_v30 }
0x10d0   : > { %v2569_v13 = vsub.f32 %v4755_v28, %v2568_v31 }
0x10d2   : > { %v2570_v32 = vmul.f32 %v2569_v13, %v2569_v13 }
0x10d4   : > { %v2571_v33 = vsel %vm997_vm0, %v2570_v32, 0.0 }
0x10d5   : > { %2572 = vadd.xlane.f32.xlu1 %v2571_v33 }
0x1162   : > { %v2573_v39 = vpop.xlane.xlu1 %2572 }
0x1163   : > { %v2574_v40 = vmul.f32 0.03125, %v2573_v39 }
0x1165   : > { %v2575_v41 = vadd.f32 1e-05, %v2574_v40 }
0x1167   : > { %3568 = vrsqrt.f32 %v2575_v41 }
0x1171   : > { %v3569_v42 = vpop.eup %3568 }
0x1172   : > { %v2577_v44 = vmul.f32 %v3569_v42, %v2569_v13 }
0x1174   : > { %v2585_v46 = vmul.f32 %v3055_v43, %v2577_v44 }
0x1176   : > { %v2593_v47 = vadd.f32 %v3056_v45, %v2585_v46 }
0x1178   : > { %3285 = vmatmul.mubr.msk.f32.vlgmr.msra.gmra.mrb[16].mxu0 %vm997_vm0, %v2593_v47 }
0x124b   : > { %v2674_v61 = vpop.f32.mrb[16].mxu0 }
0x124c   : > { %v2675_v62 = vadd.f32 %v3057_v60, %v2674_v61  ;;  %v3286_v63 = vpop.f32.mrb[17].mxu0 }
0x124e   : > { %v3059_v0 = vmul.f32 -1.442695, %v2675_v62 }
0x1250   : > { %3570 = vpow2.f32 %v3059_v0 }
0x125a   : > { %v3571_v1 = vpop.eup %3570 }
0x125b   : > { %v2681_v10 = vadd.f32 1.0, %v3571_v1 }
0x125d   : > { %3572 = vrcp.f32 %v2681_v10 }
0x1267   : > { %v3573_v2 = vpop.eup %3572 }
0x1268   : > { %v2684_v4 = vmul.f32 %v3573_v2, %v2675_v62 }
0x126a   : > { %3304 = vmatmul.mubr.msk.f32.vlgmr.msra.gmra.mrb[16].mxu1 %vm993_vm2, %v2684_v4 }
0x133d   : > { %v2769_v6 = vpop.f32.mrb[16].mxu1 }
0x133e   : > { %v2770_v7 = vadd.f32 %v3060_v5, %v2769_v6  ;;  %v3305_v8 = vpop.f32.mrb[17].mxu1 }
0x1340   : > { %v2773_v9 = vadd.f32 %v2770_v7, %v4755_v28 }
0x1342   : > { %2774 = vst.msk [vmem:[%s985_s5] sm:$0xff] %vm997_vm0, %v2773_v9 }
0x1343   : > { %3895 = shalt.err (!%p3892_p10)
}
0x1344   : > { %s3896_s12 = scalar_lea.hbm %s4809_s6, 128  ;;  %s3900_s1 = scalar_lea.hbm %s4954_s11, 256 }
0x1345   : > { %p3897_p2 = scmp.ne.s32.totalorder %s4809_s6, %s3896_s12  ;;  %p3901_p7 = scmp.lt.u32.totalorder %s4809_s6, %s4954_s11 }
0x1346   : > { %p3902_p8 = scmp.lt.u32.totalorder %s3900_s1, %s3896_s12  ;;  %p3904_p13 = scmp.lt.u32.totalorder %s3896_s12, %s4809_s6 }
0x1347   : > { %p3898_p3 = pnand %p3897_p2, %p4955_p1 }
0x1348   : > { %p3903_p11 = por %p3902_p8, %p3901_p7 }
0x1349   : > { %p3899_p4 = pneg %p3898_p3 }
0x134a   : > { %p3905_p0 = por %p3904_p13, %p3903_p11 }
0x134c   : > { %p3906_p6 = pnand %p3905_p0, %p3899_p4 }
0x134e   : > { %3909 = shalt.err (!%p3906_p6)
}
0x134f   : > { %3422 = dma.vmem_to_hbm [thread:$0]  (%p4955_p1), %s4811_s10, 128, %s4809_s6, %s2776_s0  }
0x1350 PF: > { %s4956_s30 = sld [smem:[#allocation31_spill]]  ;;  %s4957_s16 = sld [smem:[#allocation29_spill]] }
0x1351   : > { %s4958_s3 = sld [smem:[#allocation35_spill]] }
0x1356   : > { %p3484_p5 = scmp.ge.s32.totalorder %s4956_s30, 2  ;;  %s2801_s4 = sand.u32 1, %s4957_s16  }
0x1357   : > { %p4959_p9 = scmp.ne.s32.totalorder %s4958_s3, 0  ;;  %s2802_s5 = scalar_lea.sflag [#allocation5], %s2801_s4 }
0x1359   : > { %p3459_p12 = pnand %p3484_p5, %p4959_p9 }
0x135b   : > { %3951 = dma.done.wait (!%p3459_p12), %s2802_s5, 128  }
0x135c   : > { %3953 = vsyncadd (!%p3459_p12), %s2802_s5, 4294967168  ;;  %s4960_s9 = sld [smem:[#allocation32_spill]]  ;;  %s4961_s12 = sld [smem:[#allocation30_spill]] }
0x135d   : > { %s4962_s5 = sld [smem:[#allocation33_spill]]  ;;  %s4963_s4 = smov %s3960_s8 }
0x1362   : > { %p44_p10 = scmp.ge.s32.totalorder %s4960_s9, 4   ;;  %s4964_s8 = smov %s4961_s12 }
0x1364   :  { %46 = sbr.rel (!%p44_p10) target bundleno = 26 (0x1a), region = 219 }
0x136b   :  { %2807 = vsyncpa [#allocation4], 1 }
0x136c   :  { %2809 = vsyncpa [#allocation4 + $0x1], 1 }
0x136d   :  { %2810 = vsyncpa [#allocation7], 1 }
0x136e   :  { %2811 = vsyncpa [#allocation10], 1 }
0x136f   :  { %2812 = vsyncpa [#allocation13], 1 }
0x1370   :  { %2813 = vsyncpa [#allocation16], 1 }
0x1371   :  { %2814 = vsyncpa [#allocation19], 1 }
0x1372   :  { %2815 = vsyncpa [#allocation5], 1 }
0x1373   :  { %2817 = vsyncpa [#allocation5 + $0x1], 1 }

</bundles_post_ra>
